<compile_context>
chip_gen: v5e
topology: v5e:2x2
jax: 0.10.0
libtpu: 0.0.40
codegen_flags: <defaults>
</compile_context>

<pallas_src>
import math

import jax
import jax.numpy as jnp
from jax.experimental import pallas as pl
from jax.experimental.pallas import tpu as pltpu


def _mm_nt(a, b):
    """a @ b.T for 2-D operands, f32 MXU accumulation, no materialized transpose."""
    return jax.lax.dot_general(a, b, (((1,), (1,)), ((), ())),
                               preferred_element_type=jnp.float32)


def _layer_norm(x2, g, b, eps):
    """x2: (N, H); g, b: (1, H). Biased variance (PyTorch LayerNorm)."""
    mu = jnp.mean(x2, axis=-1, keepdims=True)
    xc = x2 - mu
    var = jnp.mean(xc * xc, axis=-1, keepdims=True)
    return xc * jax.lax.rsqrt(var + eps) * g + b


def _encoder_math(x, maskf, pos, wqkv, bqkv, wo, bo,
                  ln1g, ln1b, ln2g, ln2b, w1, b1, w2, b2,
                  *, n_layers, n_heads, agg_func, eps=1e-5):
    """Shared math: used inside the Pallas kernel AND as the pure-JAX reference.

    x: (B, S, H) f32; maskf: (B, S) f32 (1.0 = padded key); pos: (S, H).
    Per-layer weights stacked with leading dim L. Returns (B, H).
    """
    B, S, H = x.shape
    hd = H // n_heads
    scale = 1.0 / math.sqrt(hd)

    x = x + pos[None, :, :]
    key_bias = (maskf * jnp.float32(-1e30))[:, None, :]          # (B, 1, S)

    h2 = x.reshape(B * S, H)
    for l in range(n_layers):
        # ---- multi-head self-attention with key_padding_mask ----
        qkv = _mm_nt(h2, wqkv[l]) + bqkv[l:l + 1]                 # (B*S, 3H)
        q = qkv[:, 0 * H:1 * H].reshape(B, S, H)
        k = qkv[:, 1 * H:2 * H].reshape(B, S, H)
        v = qkv[:, 2 * H:3 * H].reshape(B, S, H)

        attn2 = jnp.zeros((B * S, H), jnp.float32)
        for h in range(n_heads):
            sl = slice(h * hd, (h + 1) * hd)
            s = jnp.einsum('bqd,bkd->bqk', q[:, :, sl], k[:, :, sl],
                           preferred_element_type=jnp.float32) * scale
            s = s + key_bias
            s = s - jnp.max(s, axis=-1, keepdims=True)
            p = jnp.exp(s)
            p = p / jnp.sum(p, axis=-1, keepdims=True)
            ctx = jnp.einsum('bqk,bkd->bqd', p, v[:, :, sl],
                             preferred_element_type=jnp.float32)  # (B, S, hd)
            # fold the output projection per head: ctx_h @ Wo[:, head].T
            attn2 = attn2 + _mm_nt(ctx.reshape(B * S, hd), wo[l][:, sl])
        attn2 = attn2 + bo[l:l + 1]

        # ---- post-norm residual + ReLU feed-forward ----
        y2 = _layer_norm(h2 + attn2, ln1g[l:l + 1], ln1b[l:l + 1], eps)
        ff = jnp.maximum(_mm_nt(y2, w1[l]) + b1[l:l + 1], 0.0)
        ff = _mm_nt(ff, w2[l]) + b2[l:l + 1]
        h2 = _layer_norm(y2 + ff, ln2g[l:l + 1], ln2b[l:l + 1], eps)

    z = h2.reshape(B, S, H)
    keep = (1.0 - maskf)[:, :, None]                              # (B, S, 1)
    if agg_func == 'mean':
        return jnp.sum(z * keep, axis=-2) / jnp.maximum(jnp.sum(keep, axis=-2), 1.0)
    if agg_func == 'sum':
        return jnp.sum(z * keep, axis=-2)
    if agg_func == 'max':
        return jnp.max(jnp.where(maskf[:, :, None] > 0.5, -jnp.inf, z), axis=-2)
    raise NotImplementedError(agg_func)


_WEIGHT_KEYS = ('pos', 'wqkv', 'bqkv', 'wo', 'bo',
                'ln1g', 'ln1b', 'ln2g', 'ln2b', 'w1', 'b1', 'w2', 'b2')


def _make_kernel(n_layers, n_heads, agg_func):
    def kernel(x_ref, mask_ref, pos_ref, wqkv_ref, bqkv_ref, wo_ref, bo_ref,
               ln1g_ref, ln1b_ref, ln2g_ref, ln2b_ref,
               w1_ref, b1_ref, w2_ref, b2_ref, out_ref):
        out = _encoder_math(
            x_ref[...].astype(jnp.float32),
            mask_ref[...][:, 0, :].astype(jnp.float32),
            pos_ref[...].astype(jnp.float32),
            wqkv_ref[...], bqkv_ref[...], wo_ref[...], bo_ref[...],
            ln1g_ref[...], ln1b_ref[...], ln2g_ref[...], ln2b_ref[...],
            w1_ref[...], b1_ref[...], w2_ref[...], b2_ref[...],
            n_layers=n_layers, n_heads=n_heads, agg_func=agg_func)
        out_ref[...] = out[:, None, :].astype(out_ref.dtype)
    return kernel


def _pick_tile_b(B, max_tile=8):
    divs = [t for t in range(1, B + 1) if B % t == 0 and t <= max_tile]
    multi = [t for t in divs if B // t >= 2]   # keep >= 2 grid steps for megacore / v7x
    return max(multi) if multi else max(divs)


def aggregated_encoder_pallas(x, mask, params, *, n_layers, n_heads, agg_func):
    *prefix, S, H = x.shape
    assert mask.shape == tuple(prefix) + (S,), f'{x.shape} vs {mask.shape}'
    assert params['pos'].shape == (S, H)
    B = max(1, math.prod(prefix))
    L = n_layers
    F = params['w1'].shape[1]

    xb = x.reshape(B, S, H).astype(jnp.float32)
    mb = mask.reshape(B, 1, S).astype(jnp.float32)    # 1.0 = padded key
    tb = _pick_tile_b(B)

    const2 = lambda i: (0, 0)
    const3 = lambda i: (0, 0, 0)
    in_specs = [
        pl.BlockSpec((tb, S, H), lambda i: (i, 0, 0)),   # x batch tile
        pl.BlockSpec((tb, 1, S), lambda i: (i, 0, 0)),   # mask batch tile
        pl.BlockSpec((S, H), const2),                    # pos (resident)
        pl.BlockSpec((L, 3 * H, H), const3),             # wqkv
        pl.BlockSpec((L, 3 * H), const2),                # bqkv
        pl.BlockSpec((L, H, H), const3),                 # wo
        pl.BlockSpec((L, H), const2),                    # bo
        pl.BlockSpec((L, H), const2),                    # ln1 gamma
        pl.BlockSpec((L, H), const2),                    # ln1 beta
        pl.BlockSpec((L, H), const2),                    # ln2 gamma
        pl.BlockSpec((L, H), const2),                    # ln2 beta
        pl.BlockSpec((L, F, H), const3),                 # ffn w1
        pl.BlockSpec((L, F), const2),                    # ffn b1
        pl.BlockSpec((L, H, F), const3),                 # ffn w2
        pl.BlockSpec((L, H), const2),                    # ffn b2
    ]

    out = pl.pallas_call(
        _make_kernel(n_layers, n_heads, agg_func),
        out_shape=jax.ShapeDtypeStruct((B, 1, H), jnp.float32),
        grid_spec=pltpu.PrefetchScalarGridSpec(
            num_scalar_prefetch=0,
            grid=(B // tb,),
            in_specs=in_specs,
            out_specs=pl.BlockSpec((tb, 1, H), lambda i: (i, 0, 0)),
        ),
        compiler_params=pltpu.CompilerParams(
            dimension_semantics=("parallel",)),
    )(xb, mb, *(params[k] for k in _WEIGHT_KEYS))

    return out[:, 0, :].reshape(*prefix, H)


class AggregatedAttentionEncoderLayerPallas:
    """Pallas/JAX port of AggregatedAttentionEncoderLayer (eval mode: dropout = identity)."""

    def __init__(self, max_len, tf_n_layers, tf_n_heads, tf_hidden_dim, tf_ff_dim,
                 tf_dropout, tf_pos_emb, agg_func, *, key):
        assert tf_n_layers > 0, "tf_n_layers == 0 (MHA-only) branch not implemented"
        assert tf_pos_emb == 'one_hot'   # reference forward() asserts pos_enc exists
        assert agg_func in ('mean', 'sum', 'max')
        # TODO(synk): agg_func == 'attn' (AttentionAggregationLayer with a learned query)
        # and the tf_n_layers == 0 MHA-only branch are not implemented in this kernel.
        del tf_dropout  # eval-mode forward: dropout is identity
        self.n_layers, self.n_heads, self.agg_func = tf_n_layers, tf_n_heads, agg_func
        L, H, F, S = tf_n_layers, tf_hidden_dim, tf_ff_dim, max_len
        ks = jax.random.split(key, 9)
        nrm = lambda k, shape, sc: sc * jax.random.normal(k, shape, jnp.float32)
        self.params = {
            'pos':  nrm(ks[0], (S, H), 0.02),
            'wqkv': nrm(ks[1], (L, 3 * H, H), 1.0 / math.sqrt(H)),
            'bqkv': nrm(ks[2], (L, 3 * H), 0.02),
            'wo':   nrm(ks[3], (L, H, H), 1.0 / math.sqrt(H)),
            'bo':   nrm(ks[4], (L, H), 0.02),
            'ln1g': jnp.ones((L, H), jnp.float32),
            'ln1b': jnp.zeros((L, H), jnp.float32),
            'ln2g': jnp.ones((L, H), jnp.float32),
            'ln2b': jnp.zeros((L, H), jnp.float32),
            'w1':   nrm(ks[5], (L, F, H), 1.0 / math.sqrt(H)),
            'b1':   nrm(ks[6], (L, F), 0.02),
            'w2':   nrm(ks[7], (L, H, F), 1.0 / math.sqrt(F)),
            'b2':   nrm(ks[8], (L, H), 0.02),
        }

    def forward(self, x, mask):
        return aggregated_encoder_pallas(
            x, mask, self.params,
            n_layers=self.n_layers, n_heads=self.n_heads, agg_func=self.agg_func)


if __name__ == "__main__":
    key = jax.random.PRNGKey(0)
    k_mod, k_x, k_len = jax.random.split(key, 3)

    max_len, n_layers, n_heads, hidden, ff_dim = 8, 2, 4, 32, 64
    prefix = (2, 3)                       # shape_prefix; flattened batch B = 6

    module = AggregatedAttentionEncoderLayerPallas(
        max_len, n_layers, n_heads, hidden, ff_dim,
        tf_dropout=0.0, tf_pos_emb='one_hot', agg_func='mean', key=k_mod)

    x = jax.random.normal(k_x, (*prefix, max_len, hidden), jnp.float32)
    lengths = jax.random.randint(k_len, prefix, 3, max_len + 1)          # >= 3 valid tokens
    mask = jnp.arange(max_len)[None, None, :] >= lengths[:, :, None]     # True = padded key

    out = module.forward(x, mask)
    out = jax.block_until_ready(out)
    assert out.shape == (*prefix, hidden), out.shape

    # Pure-JAX reference (identical math, traced by XLA instead of Pallas).
    B = math.prod(prefix)
    with jax.default_matmul_precision('float32'):
        ref = _encoder_math(
            x.reshape(B, max_len, hidden),
            mask.reshape(B, max_len).astype(jnp.float32),
            *(module.params[k] for k in _WEIGHT_KEYS),
            n_layers=n_layers, n_heads=n_heads, agg_func='mean')
    ref = ref.reshape(*prefix, hidden)

    err = float(jnp.max(jnp.abs(out - ref)))
    assert err < 2e-3, f"max abs err {err}"
    print("KERNEL_OK")
</pallas_src>

<mosaic_0001>
module attributes {stable_mosaic.version = 11 : i64} {
  func.func @kernel(%arg0: i32, %arg1: memref<3x8x32xf32, #tpu.memory_space<vmem>>, %arg2: memref<3x1x8xf32, #tpu.memory_space<vmem>>, %arg3: memref<8x32xf32, #tpu.memory_space<vmem>>, %arg4: memref<2x96x32xf32, #tpu.memory_space<vmem>>, %arg5: memref<2x96xf32, #tpu.memory_space<vmem>>, %arg6: memref<2x32x32xf32, #tpu.memory_space<vmem>>, %arg7: memref<2x32xf32, #tpu.memory_space<vmem>>, %arg8: memref<2x32xf32, #tpu.memory_space<vmem>>, %arg9: memref<2x32xf32, #tpu.memory_space<vmem>>, %arg10: memref<2x32xf32, #tpu.memory_space<vmem>>, %arg11: memref<2x32xf32, #tpu.memory_space<vmem>>, %arg12: memref<2x64x32xf32, #tpu.memory_space<vmem>>, %arg13: memref<2x64xf32, #tpu.memory_space<vmem>>, %arg14: memref<2x32x64xf32, #tpu.memory_space<vmem>>, %arg15: memref<2x32xf32, #tpu.memory_space<vmem>>, %arg16: memref<3x1x32xf32, #tpu.memory_space<vmem>>) attributes {dimension_semantics = [#tpu.dimension_semantics<parallel>], iteration_bounds = array<i64: 2>, scalar_prefetch = 0 : i64, scratch_operands = 0 : i64, tpu.core_type = #tpu.core_type<tc>, window_params = [{transform_indices = @transform_0, window_bounds = array<i64: 3, 8, 32>}, {transform_indices = @transform_1, window_bounds = array<i64: 3, 1, 8>}, {pipeline_mode = #tpu.pipeline_mode<synchronous>, transform_indices = @transform_2, window_bounds = array<i64: 8, 32>}, {pipeline_mode = #tpu.pipeline_mode<synchronous>, transform_indices = @transform_3, window_bounds = array<i64: 2, 96, 32>}, {pipeline_mode = #tpu.pipeline_mode<synchronous>, transform_indices = @transform_4, window_bounds = array<i64: 2, 96>}, {pipeline_mode = #tpu.pipeline_mode<synchronous>, transform_indices = @transform_5, window_bounds = array<i64: 2, 32, 32>}, {pipeline_mode = #tpu.pipeline_mode<synchronous>, transform_indices = @transform_6, window_bounds = array<i64: 2, 32>}, {pipeline_mode = #tpu.pipeline_mode<synchronous>, transform_indices = @transform_7, window_bounds = array<i64: 2, 32>}, {pipeline_mode = #tpu.pipeline_mode<synchronous>, transform_indices = @transform_8, window_bounds = array<i64: 2, 32>}, {pipeline_mode = #tpu.pipeline_mode<synchronous>, transform_indices = @transform_9, window_bounds = array<i64: 2, 32>}, {pipeline_mode = #tpu.pipeline_mode<synchronous>, transform_indices = @transform_10, window_bounds = array<i64: 2, 32>}, {pipeline_mode = #tpu.pipeline_mode<synchronous>, transform_indices = @transform_11, window_bounds = array<i64: 2, 64, 32>}, {pipeline_mode = #tpu.pipeline_mode<synchronous>, transform_indices = @transform_12, window_bounds = array<i64: 2, 64>}, {pipeline_mode = #tpu.pipeline_mode<synchronous>, transform_indices = @transform_13, window_bounds = array<i64: 2, 32, 64>}, {pipeline_mode = #tpu.pipeline_mode<synchronous>, transform_indices = @transform_14, window_bounds = array<i64: 2, 32>}, {transform_indices = @transform_15, window_bounds = array<i64: 3, 1, 32>}]} {
    %c0 = arith.constant 0 : index
    %c0_0 = arith.constant 0 : index
    %c0_1 = arith.constant 0 : index
    %0 = vector.load %arg1[%c0, %c0_0, %c0_1] : memref<3x8x32xf32, #tpu.memory_space<vmem>>, vector<3x8x32xf32>
    %c0_2 = arith.constant 0 : index
    %c0_3 = arith.constant 0 : index
    %c0_4 = arith.constant 0 : index
    %1 = vector.load %arg2[%c0_2, %c0_3, %c0_4] : memref<3x1x8xf32, #tpu.memory_space<vmem>>, vector<3x1x8xf32>
    %2 = vector.shape_cast %1 : vector<3x1x8xf32> to vector<3x8xf32>
    %c0_5 = arith.constant 0 : index
    %c0_6 = arith.constant 0 : index
    %3 = vector.load %arg3[%c0_5, %c0_6] : memref<8x32xf32, #tpu.memory_space<vmem>>, vector<8x32xf32>
    %c0_7 = arith.constant 0 : index
    %c0_8 = arith.constant 0 : index
    %c0_9 = arith.constant 0 : index
    %4 = vector.load %arg4[%c0_7, %c0_8, %c0_9] : memref<2x96x32xf32, #tpu.memory_space<vmem>>, vector<2x96x32xf32>
    %c0_10 = arith.constant 0 : index
    %c0_11 = arith.constant 0 : index
    %5 = vector.load %arg5[%c0_10, %c0_11] : memref<2x96xf32, #tpu.memory_space<vmem>>, vector<2x96xf32>
    %c0_12 = arith.constant 0 : index
    %c0_13 = arith.constant 0 : index
    %c0_14 = arith.constant 0 : index
    %6 = vector.load %arg6[%c0_12, %c0_13, %c0_14] : memref<2x32x32xf32, #tpu.memory_space<vmem>>, vector<2x32x32xf32>
    %c0_15 = arith.constant 0 : index
    %c0_16 = arith.constant 0 : index
    %7 = vector.load %arg7[%c0_15, %c0_16] : memref<2x32xf32, #tpu.memory_space<vmem>>, vector<2x32xf32>
    %c0_17 = arith.constant 0 : index
    %c0_18 = arith.constant 0 : index
    %8 = vector.load %arg8[%c0_17, %c0_18] : memref<2x32xf32, #tpu.memory_space<vmem>>, vector<2x32xf32>
    %c0_19 = arith.constant 0 : index
    %c0_20 = arith.constant 0 : index
    %9 = vector.load %arg9[%c0_19, %c0_20] : memref<2x32xf32, #tpu.memory_space<vmem>>, vector<2x32xf32>
    %c0_21 = arith.constant 0 : index
    %c0_22 = arith.constant 0 : index
    %10 = vector.load %arg10[%c0_21, %c0_22] : memref<2x32xf32, #tpu.memory_space<vmem>>, vector<2x32xf32>
    %c0_23 = arith.constant 0 : index
    %c0_24 = arith.constant 0 : index
    %11 = vector.load %arg11[%c0_23, %c0_24] : memref<2x32xf32, #tpu.memory_space<vmem>>, vector<2x32xf32>
    %c0_25 = arith.constant 0 : index
    %c0_26 = arith.constant 0 : index
    %c0_27 = arith.constant 0 : index
    %12 = vector.load %arg12[%c0_25, %c0_26, %c0_27] : memref<2x64x32xf32, #tpu.memory_space<vmem>>, vector<2x64x32xf32>
    %c0_28 = arith.constant 0 : index
    %c0_29 = arith.constant 0 : index
    %13 = vector.load %arg13[%c0_28, %c0_29] : memref<2x64xf32, #tpu.memory_space<vmem>>, vector<2x64xf32>
    %c0_30 = arith.constant 0 : index
    %c0_31 = arith.constant 0 : index
    %c0_32 = arith.constant 0 : index
    %14 = vector.load %arg14[%c0_30, %c0_31, %c0_32] : memref<2x32x64xf32, #tpu.memory_space<vmem>>, vector<2x32x64xf32>
    %c0_33 = arith.constant 0 : index
    %c0_34 = arith.constant 0 : index
    %15 = vector.load %arg15[%c0_33, %c0_34] : memref<2x32xf32, #tpu.memory_space<vmem>>, vector<2x32xf32>
    %16 = vector.shape_cast %3 : vector<8x32xf32> to vector<1x8x32xf32>
    %17 = vector.broadcast %16 : vector<1x8x32xf32> to vector<3x8x32xf32>
    %18 = arith.addf %0, %17 : vector<3x8x32xf32>
    %cst = arith.constant -1.000000e+30 : f32
    %19 = vector.broadcast %cst : f32 to vector<3x8xf32>
    %20 = arith.mulf %2, %19 : vector<3x8xf32>
    %21 = vector.shape_cast %20 : vector<3x8xf32> to vector<3x1x8xf32>
    %22 = vector.shape_cast %18 : vector<3x8x32xf32> to vector<24x32xf32>
    %23 = vector.extract_strided_slice %4 {offsets = [0, 0, 0], sizes = [1, 96, 32], strides = [1, 1, 1]} : vector<2x96x32xf32> to vector<1x96x32xf32>
    %24 = vector.shape_cast %23 : vector<1x96x32xf32> to vector<96x32xf32>
    %cst_35 = arith.constant dense<0.000000e+00> : vector<24x96xf32>
    %25 = tpu.matmul %22, %24, %cst_35 {dimension_numbers = #tpu.dot_dimension_numbers<[1], [1], [0], [0], [0, 0, 1, 0], [], []>} : vector<24x32xf32>, vector<96x32xf32>, vector<24x96xf32> -> vector<24x96xf32>
    %26 = vector.extract_strided_slice %5 {offsets = [0, 0], sizes = [1, 96], strides = [1, 1]} : vector<2x96xf32> to vector<1x96xf32>
    %27 = vector.broadcast %26 : vector<1x96xf32> to vector<24x96xf32>
    %28 = arith.addf %25, %27 : vector<24x96xf32>
    %29 = vector.extract_strided_slice %28 {offsets = [0, 0], sizes = [24, 32], strides = [1, 1]} : vector<24x96xf32> to vector<24x32xf32>
    %30 = vector.shape_cast %29 : vector<24x32xf32> to vector<3x8x32xf32>
    %31 = vector.extract_strided_slice %28 {offsets = [0, 32], sizes = [24, 32], strides = [1, 1]} : vector<24x96xf32> to vector<24x32xf32>
    %32 = vector.shape_cast %31 : vector<24x32xf32> to vector<3x8x32xf32>
    %33 = vector.extract_strided_slice %28 {offsets = [0, 64], sizes = [24, 32], strides = [1, 1]} : vector<24x96xf32> to vector<24x32xf32>
    %34 = vector.shape_cast %33 : vector<24x32xf32> to vector<3x8x32xf32>
    %cst_36 = arith.constant 0.000000e+00 : f32
    %35 = vector.broadcast %cst_36 : f32 to vector<24x32xf32>
    %36 = vector.extract_strided_slice %30 {offsets = [0, 0, 0], sizes = [3, 8, 8], strides = [1, 1, 1]} : vector<3x8x32xf32> to vector<3x8x8xf32>
    %37 = vector.extract_strided_slice %32 {offsets = [0, 0, 0], sizes = [3, 8, 8], strides = [1, 1, 1]} : vector<3x8x32xf32> to vector<3x8x8xf32>
    "tpu.trace_start"() <{level = 10 : i32, message = "bqd,bkd->bqk"}> : () -> ()
    %cst_37 = arith.constant dense<0.000000e+00> : vector<3x8x8xf32>
    %38 = tpu.matmul %36, %37, %cst_37 {dimension_numbers = #tpu.dot_dimension_numbers<[2], [2], [1], [1], [0, 0, 0, 1, 1, 1], [0], [0]>} : vector<3x8x8xf32>, vector<3x8x8xf32>, vector<3x8x8xf32> -> vector<3x8x8xf32>
    "tpu.trace_stop"() : () -> ()
    %cst_38 = arith.constant 0.353553385 : f32
    %39 = vector.broadcast %cst_38 : f32 to vector<3x8x8xf32>
    %40 = arith.mulf %38, %39 : vector<3x8x8xf32>
    %41 = vector.broadcast %21 : vector<3x1x8xf32> to vector<3x8x8xf32>
    %42 = arith.addf %40, %41 : vector<3x8x8xf32>
    %cst_39 = arith.constant dense<0xFF800000> : vector<3x8xf32>
    %43 = vector.multi_reduction <maximumf>, %42, %cst_39 [2] : vector<3x8x8xf32> to vector<3x8xf32>
    %44 = vector.shape_cast %43 : vector<3x8xf32> to vector<3x8x1xf32>
    %45 = vector.broadcast %44 : vector<3x8x1xf32> to vector<3x8x8xf32>
    %46 = arith.subf %42, %45 : vector<3x8x8xf32>
    %47 = math.exp %46 : vector<3x8x8xf32>
    %cst_40 = arith.constant dense<0.000000e+00> : vector<3x8xf32>
    %48 = vector.multi_reduction <add>, %47, %cst_40 [2] : vector<3x8x8xf32> to vector<3x8xf32>
    %49 = vector.shape_cast %48 : vector<3x8xf32> to vector<3x8x1xf32>
    %50 = vector.broadcast %49 : vector<3x8x1xf32> to vector<3x8x8xf32>
    %51 = arith.divf %47, %50 : vector<3x8x8xf32>
    %52 = vector.extract_strided_slice %34 {offsets = [0, 0, 0], sizes = [3, 8, 8], strides = [1, 1, 1]} : vector<3x8x32xf32> to vector<3x8x8xf32>
    "tpu.trace_start"() <{level = 10 : i32, message = "bqk,bkd->bqd"}> : () -> ()
    %cst_41 = arith.constant dense<0.000000e+00> : vector<3x8x8xf32>
    %53 = tpu.matmul %51, %52, %cst_41 {dimension_numbers = #tpu.dot_dimension_numbers<[2], [1], [1], [2], [0, 0, 0, 1, 1, 2], [0], [0]>} : vector<3x8x8xf32>, vector<3x8x8xf32>, vector<3x8x8xf32> -> vector<3x8x8xf32>
    "tpu.trace_stop"() : () -> ()
    %54 = vector.shape_cast %53 : vector<3x8x8xf32> to vector<24x8xf32>
    %55 = vector.extract_strided_slice %6 {offsets = [0, 0, 0], sizes = [1, 32, 32], strides = [1, 1, 1]} : vector<2x32x32xf32> to vector<1x32x32xf32>
    %56 = vector.shape_cast %55 : vector<1x32x32xf32> to vector<32x32xf32>
    %57 = vector.extract_strided_slice %56 {offsets = [0, 0], sizes = [32, 8], strides = [1, 1]} : vector<32x32xf32> to vector<32x8xf32>
    %cst_42 = arith.constant dense<0.000000e+00> : vector<24x32xf32>
    %58 = tpu.matmul %54, %57, %cst_42 {dimension_numbers = #tpu.dot_dimension_numbers<[1], [1], [0], [0], [0, 0, 1, 0], [], []>} : vector<24x8xf32>, vector<32x8xf32>, vector<24x32xf32> -> vector<24x32xf32>
    %59 = arith.addf %35, %58 : vector<24x32xf32>
    %60 = vector.extract_strided_slice %30 {offsets = [0, 0, 8], sizes = [3, 8, 8], strides = [1, 1, 1]} : vector<3x8x32xf32> to vector<3x8x8xf32>
    %61 = vector.extract_strided_slice %32 {offsets = [0, 0, 8], sizes = [3, 8, 8], strides = [1, 1, 1]} : vector<3x8x32xf32> to vector<3x8x8xf32>
    "tpu.trace_start"() <{level = 10 : i32, message = "bqd,bkd->bqk"}> : () -> ()
    %cst_43 = arith.constant dense<0.000000e+00> : vector<3x8x8xf32>
    %62 = tpu.matmul %60, %61, %cst_43 {dimension_numbers = #tpu.dot_dimension_numbers<[2], [2], [1], [1], [0, 0, 0, 1, 1, 1], [0], [0]>} : vector<3x8x8xf32>, vector<3x8x8xf32>, vector<3x8x8xf32> -> vector<3x8x8xf32>
    "tpu.trace_stop"() : () -> ()
    %cst_44 = arith.constant 0.353553385 : f32
    %63 = vector.broadcast %cst_44 : f32 to vector<3x8x8xf32>
    %64 = arith.mulf %62, %63 : vector<3x8x8xf32>
    %65 = vector.broadcast %21 : vector<3x1x8xf32> to vector<3x8x8xf32>
    %66 = arith.addf %64, %65 : vector<3x8x8xf32>
    %cst_45 = arith.constant dense<0xFF800000> : vector<3x8xf32>
    %67 = vector.multi_reduction <maximumf>, %66, %cst_45 [2] : vector<3x8x8xf32> to vector<3x8xf32>
    %68 = vector.shape_cast %67 : vector<3x8xf32> to vector<3x8x1xf32>
    %69 = vector.broadcast %68 : vector<3x8x1xf32> to vector<3x8x8xf32>
    %70 = arith.subf %66, %69 : vector<3x8x8xf32>
    %71 = math.exp %70 : vector<3x8x8xf32>
    %cst_46 = arith.constant dense<0.000000e+00> : vector<3x8xf32>
    %72 = vector.multi_reduction <add>, %71, %cst_46 [2] : vector<3x8x8xf32> to vector<3x8xf32>
    %73 = vector.shape_cast %72 : vector<3x8xf32> to vector<3x8x1xf32>
    %74 = vector.broadcast %73 : vector<3x8x1xf32> to vector<3x8x8xf32>
    %75 = arith.divf %71, %74 : vector<3x8x8xf32>
    %76 = vector.extract_strided_slice %34 {offsets = [0, 0, 8], sizes = [3, 8, 8], strides = [1, 1, 1]} : vector<3x8x32xf32> to vector<3x8x8xf32>
    "tpu.trace_start"() <{level = 10 : i32, message = "bqk,bkd->bqd"}> : () -> ()
    %cst_47 = arith.constant dense<0.000000e+00> : vector<3x8x8xf32>
    %77 = tpu.matmul %75, %76, %cst_47 {dimension_numbers = #tpu.dot_dimension_numbers<[2], [1], [1], [2], [0, 0, 0, 1, 1, 2], [0], [0]>} : vector<3x8x8xf32>, vector<3x8x8xf32>, vector<3x8x8xf32> -> vector<3x8x8xf32>
    "tpu.trace_stop"() : () -> ()
    %78 = vector.shape_cast %77 : vector<3x8x8xf32> to vector<24x8xf32>
    %79 = vector.extract_strided_slice %6 {offsets = [0, 0, 0], sizes = [1, 32, 32], strides = [1, 1, 1]} : vector<2x32x32xf32> to vector<1x32x32xf32>
    %80 = vector.shape_cast %79 : vector<1x32x32xf32> to vector<32x32xf32>
    %81 = vector.extract_strided_slice %80 {offsets = [0, 8], sizes = [32, 8], strides = [1, 1]} : vector<32x32xf32> to vector<32x8xf32>
    %cst_48 = arith.constant dense<0.000000e+00> : vector<24x32xf32>
    %82 = tpu.matmul %78, %81, %cst_48 {dimension_numbers = #tpu.dot_dimension_numbers<[1], [1], [0], [0], [0, 0, 1, 0], [], []>} : vector<24x8xf32>, vector<32x8xf32>, vector<24x32xf32> -> vector<24x32xf32>
    %83 = arith.addf %59, %82 : vector<24x32xf32>
    %84 = vector.extract_strided_slice %30 {offsets = [0, 0, 16], sizes = [3, 8, 8], strides = [1, 1, 1]} : vector<3x8x32xf32> to vector<3x8x8xf32>
    %85 = vector.extract_strided_slice %32 {offsets = [0, 0, 16], sizes = [3, 8, 8], strides = [1, 1, 1]} : vector<3x8x32xf32> to vector<3x8x8xf32>
    "tpu.trace_start"() <{level = 10 : i32, message = "bqd,bkd->bqk"}> : () -> ()
    %cst_49 = arith.constant dense<0.000000e+00> : vector<3x8x8xf32>
    %86 = tpu.matmul %84, %85, %cst_49 {dimension_numbers = #tpu.dot_dimension_numbers<[2], [2], [1], [1], [0, 0, 0, 1, 1, 1], [0], [0]>} : vector<3x8x8xf32>, vector<3x8x8xf32>, vector<3x8x8xf32> -> vector<3x8x8xf32>
    "tpu.trace_stop"() : () -> ()
    %cst_50 = arith.constant 0.353553385 : f32
    %87 = vector.broadcast %cst_50 : f32 to vector<3x8x8xf32>
    %88 = arith.mulf %86, %87 : vector<3x8x8xf32>
    %89 = vector.broadcast %21 : vector<3x1x8xf32> to vector<3x8x8xf32>
    %90 = arith.addf %88, %89 : vector<3x8x8xf32>
    %cst_51 = arith.constant dense<0xFF800000> : vector<3x8xf32>
    %91 = vector.multi_reduction <maximumf>, %90, %cst_51 [2] : vector<3x8x8xf32> to vector<3x8xf32>
    %92 = vector.shape_cast %91 : vector<3x8xf32> to vector<3x8x1xf32>
    %93 = vector.broadcast %92 : vector<3x8x1xf32> to vector<3x8x8xf32>
    %94 = arith.subf %90, %93 : vector<3x8x8xf32>
    %95 = math.exp %94 : vector<3x8x8xf32>
    %cst_52 = arith.constant dense<0.000000e+00> : vector<3x8xf32>
    %96 = vector.multi_reduction <add>, %95, %cst_52 [2] : vector<3x8x8xf32> to vector<3x8xf32>
    %97 = vector.shape_cast %96 : vector<3x8xf32> to vector<3x8x1xf32>
    %98 = vector.broadcast %97 : vector<3x8x1xf32> to vector<3x8x8xf32>
    %99 = arith.divf %95, %98 : vector<3x8x8xf32>
    %100 = vector.extract_strided_slice %34 {offsets = [0, 0, 16], sizes = [3, 8, 8], strides = [1, 1, 1]} : vector<3x8x32xf32> to vector<3x8x8xf32>
    "tpu.trace_start"() <{level = 10 : i32, message = "bqk,bkd->bqd"}> : () -> ()
    %cst_53 = arith.constant dense<0.000000e+00> : vector<3x8x8xf32>
    %101 = tpu.matmul %99, %100, %cst_53 {dimension_numbers = #tpu.dot_dimension_numbers<[2], [1], [1], [2], [0, 0, 0, 1, 1, 2], [0], [0]>} : vector<3x8x8xf32>, vector<3x8x8xf32>, vector<3x8x8xf32> -> vector<3x8x8xf32>
    "tpu.trace_stop"() : () -> ()
    %102 = vector.shape_cast %101 : vector<3x8x8xf32> to vector<24x8xf32>
    %103 = vector.extract_strided_slice %6 {offsets = [0, 0, 0], sizes = [1, 32, 32], strides = [1, 1, 1]} : vector<2x32x32xf32> to vector<1x32x32xf32>
    %104 = vector.shape_cast %103 : vector<1x32x32xf32> to vector<32x32xf32>
    %105 = vector.extract_strided_slice %104 {offsets = [0, 16], sizes = [32, 8], strides = [1, 1]} : vector<32x32xf32> to vector<32x8xf32>
    %cst_54 = arith.constant dense<0.000000e+00> : vector<24x32xf32>
    %106 = tpu.matmul %102, %105, %cst_54 {dimension_numbers = #tpu.dot_dimension_numbers<[1], [1], [0], [0], [0, 0, 1, 0], [], []>} : vector<24x8xf32>, vector<32x8xf32>, vector<24x32xf32> -> vector<24x32xf32>
    %107 = arith.addf %83, %106 : vector<24x32xf32>
    %108 = vector.extract_strided_slice %30 {offsets = [0, 0, 24], sizes = [3, 8, 8], strides = [1, 1, 1]} : vector<3x8x32xf32> to vector<3x8x8xf32>
    %109 = vector.extract_strided_slice %32 {offsets = [0, 0, 24], sizes = [3, 8, 8], strides = [1, 1, 1]} : vector<3x8x32xf32> to vector<3x8x8xf32>
    "tpu.trace_start"() <{level = 10 : i32, message = "bqd,bkd->bqk"}> : () -> ()
    %cst_55 = arith.constant dense<0.000000e+00> : vector<3x8x8xf32>
    %110 = tpu.matmul %108, %109, %cst_55 {dimension_numbers = #tpu.dot_dimension_numbers<[2], [2], [1], [1], [0, 0, 0, 1, 1, 1], [0], [0]>} : vector<3x8x8xf32>, vector<3x8x8xf32>, vector<3x8x8xf32> -> vector<3x8x8xf32>
    "tpu.trace_stop"() : () -> ()
    %cst_56 = arith.constant 0.353553385 : f32
    %111 = vector.broadcast %cst_56 : f32 to vector<3x8x8xf32>
    %112 = arith.mulf %110, %111 : vector<3x8x8xf32>
    %113 = vector.broadcast %21 : vector<3x1x8xf32> to vector<3x8x8xf32>
    %114 = arith.addf %112, %113 : vector<3x8x8xf32>
    %cst_57 = arith.constant dense<0xFF800000> : vector<3x8xf32>
    %115 = vector.multi_reduction <maximumf>, %114, %cst_57 [2] : vector<3x8x8xf32> to vector<3x8xf32>
    %116 = vector.shape_cast %115 : vector<3x8xf32> to vector<3x8x1xf32>
    %117 = vector.broadcast %116 : vector<3x8x1xf32> to vector<3x8x8xf32>
    %118 = arith.subf %114, %117 : vector<3x8x8xf32>
    %119 = math.exp %118 : vector<3x8x8xf32>
    %cst_58 = arith.constant dense<0.000000e+00> : vector<3x8xf32>
    %120 = vector.multi_reduction <add>, %119, %cst_58 [2] : vector<3x8x8xf32> to vector<3x8xf32>
    %121 = vector.shape_cast %120 : vector<3x8xf32> to vector<3x8x1xf32>
    %122 = vector.broadcast %121 : vector<3x8x1xf32> to vector<3x8x8xf32>
    %123 = arith.divf %119, %122 : vector<3x8x8xf32>
    %124 = vector.extract_strided_slice %34 {offsets = [0, 0, 24], sizes = [3, 8, 8], strides = [1, 1, 1]} : vector<3x8x32xf32> to vector<3x8x8xf32>
    "tpu.trace_start"() <{level = 10 : i32, message = "bqk,bkd->bqd"}> : () -> ()
    %cst_59 = arith.constant dense<0.000000e+00> : vector<3x8x8xf32>
    %125 = tpu.matmul %123, %124, %cst_59 {dimension_numbers = #tpu.dot_dimension_numbers<[2], [1], [1], [2], [0, 0, 0, 1, 1, 2], [0], [0]>} : vector<3x8x8xf32>, vector<3x8x8xf32>, vector<3x8x8xf32> -> vector<3x8x8xf32>
    "tpu.trace_stop"() : () -> ()
    %126 = vector.shape_cast %125 : vector<3x8x8xf32> to vector<24x8xf32>
    %127 = vector.extract_strided_slice %6 {offsets = [0, 0, 0], sizes = [1, 32, 32], strides = [1, 1, 1]} : vector<2x32x32xf32> to vector<1x32x32xf32>
    %128 = vector.shape_cast %127 : vector<1x32x32xf32> to vector<32x32xf32>
    %129 = vector.extract_strided_slice %128 {offsets = [0, 24], sizes = [32, 8], strides = [1, 1]} : vector<32x32xf32> to vector<32x8xf32>
    %cst_60 = arith.constant dense<0.000000e+00> : vector<24x32xf32>
    %130 = tpu.matmul %126, %129, %cst_60 {dimension_numbers = #tpu.dot_dimension_numbers<[1], [1], [0], [0], [0, 0, 1, 0], [], []>} : vector<24x8xf32>, vector<32x8xf32>, vector<24x32xf32> -> vector<24x32xf32>
    %131 = arith.addf %107, %130 : vector<24x32xf32>
    %132 = vector.extract_strided_slice %7 {offsets = [0, 0], sizes = [1, 32], strides = [1, 1]} : vector<2x32xf32> to vector<1x32xf32>
    %133 = vector.broadcast %132 : vector<1x32xf32> to vector<24x32xf32>
    %134 = arith.addf %131, %133 : vector<24x32xf32>
    %135 = arith.addf %22, %134 : vector<24x32xf32>
    %136 = vector.extract_strided_slice %8 {offsets = [0, 0], sizes = [1, 32], strides = [1, 1]} : vector<2x32xf32> to vector<1x32xf32>
    %137 = vector.extract_strided_slice %9 {offsets = [0, 0], sizes = [1, 32], strides = [1, 1]} : vector<2x32xf32> to vector<1x32xf32>
    %cst_61 = arith.constant dense<0.000000e+00> : vector<24xf32>
    %138 = vector.multi_reduction <add>, %135, %cst_61 [1] : vector<24x32xf32> to vector<24xf32>
    %139 = vector.shape_cast %138 : vector<24xf32> to vector<24x1xf32>
    %cst_62 = arith.constant 3.200000e+01 : f32
    %140 = vector.broadcast %cst_62 : f32 to vector<24x1xf32>
    %141 = arith.divf %139, %140 : vector<24x1xf32>
    %142 = vector.broadcast %141 : vector<24x1xf32> to vector<24x32xf32>
    %143 = arith.subf %135, %142 : vector<24x32xf32>
    %144 = arith.mulf %143, %143 : vector<24x32xf32>
    %cst_63 = arith.constant dense<0.000000e+00> : vector<24xf32>
    %145 = vector.multi_reduction <add>, %144, %cst_63 [1] : vector<24x32xf32> to vector<24xf32>
    %146 = vector.shape_cast %145 : vector<24xf32> to vector<24x1xf32>
    %cst_64 = arith.constant 3.200000e+01 : f32
    %147 = vector.broadcast %cst_64 : f32 to vector<24x1xf32>
    %148 = arith.divf %146, %147 : vector<24x1xf32>
    %cst_65 = arith.constant 9.99999974E-6 : f32
    %149 = vector.broadcast %cst_65 : f32 to vector<24x1xf32>
    %150 = arith.addf %148, %149 : vector<24x1xf32>
    %151 = math.rsqrt %150 : vector<24x1xf32>
    %152 = vector.broadcast %151 : vector<24x1xf32> to vector<24x32xf32>
    %153 = arith.mulf %143, %152 : vector<24x32xf32>
    %154 = vector.broadcast %136 : vector<1x32xf32> to vector<24x32xf32>
    %155 = arith.mulf %153, %154 : vector<24x32xf32>
    %156 = vector.broadcast %137 : vector<1x32xf32> to vector<24x32xf32>
    %157 = arith.addf %155, %156 : vector<24x32xf32>
    %158 = vector.extract_strided_slice %12 {offsets = [0, 0, 0], sizes = [1, 64, 32], strides = [1, 1, 1]} : vector<2x64x32xf32> to vector<1x64x32xf32>
    %159 = vector.shape_cast %158 : vector<1x64x32xf32> to vector<64x32xf32>
    %cst_66 = arith.constant dense<0.000000e+00> : vector<24x64xf32>
    %160 = tpu.matmul %157, %159, %cst_66 {dimension_numbers = #tpu.dot_dimension_numbers<[1], [1], [0], [0], [0, 0, 1, 0], [], []>} : vector<24x32xf32>, vector<64x32xf32>, vector<24x64xf32> -> vector<24x64xf32>
    %161 = vector.extract_strided_slice %13 {offsets = [0, 0], sizes = [1, 64], strides = [1, 1]} : vector<2x64xf32> to vector<1x64xf32>
    %162 = vector.broadcast %161 : vector<1x64xf32> to vector<24x64xf32>
    %163 = arith.addf %160, %162 : vector<24x64xf32>
    %cst_67 = arith.constant 0.000000e+00 : f32
    %164 = vector.broadcast %cst_67 : f32 to vector<24x64xf32>
    %165 = arith.maximumf %163, %164 : vector<24x64xf32>
    %166 = vector.extract_strided_slice %14 {offsets = [0, 0, 0], sizes = [1, 32, 64], strides = [1, 1, 1]} : vector<2x32x64xf32> to vector<1x32x64xf32>
    %167 = vector.shape_cast %166 : vector<1x32x64xf32> to vector<32x64xf32>
    %cst_68 = arith.constant dense<0.000000e+00> : vector<24x32xf32>
    %168 = tpu.matmul %165, %167, %cst_68 {dimension_numbers = #tpu.dot_dimension_numbers<[1], [1], [0], [0], [0, 0, 1, 0], [], []>} : vector<24x64xf32>, vector<32x64xf32>, vector<24x32xf32> -> vector<24x32xf32>
    %169 = vector.extract_strided_slice %15 {offsets = [0, 0], sizes = [1, 32], strides = [1, 1]} : vector<2x32xf32> to vector<1x32xf32>
    %170 = vector.broadcast %169 : vector<1x32xf32> to vector<24x32xf32>
    %171 = arith.addf %168, %170 : vector<24x32xf32>
    %172 = arith.addf %157, %171 : vector<24x32xf32>
    %173 = vector.extract_strided_slice %10 {offsets = [0, 0], sizes = [1, 32], strides = [1, 1]} : vector<2x32xf32> to vector<1x32xf32>
    %174 = vector.extract_strided_slice %11 {offsets = [0, 0], sizes = [1, 32], strides = [1, 1]} : vector<2x32xf32> to vector<1x32xf32>
    %cst_69 = arith.constant dense<0.000000e+00> : vector<24xf32>
    %175 = vector.multi_reduction <add>, %172, %cst_69 [1] : vector<24x32xf32> to vector<24xf32>
    %176 = vector.shape_cast %175 : vector<24xf32> to vector<24x1xf32>
    %cst_70 = arith.constant 3.200000e+01 : f32
    %177 = vector.broadcast %cst_70 : f32 to vector<24x1xf32>
    %178 = arith.divf %176, %177 : vector<24x1xf32>
    %179 = vector.broadcast %178 : vector<24x1xf32> to vector<24x32xf32>
    %180 = arith.subf %172, %179 : vector<24x32xf32>
    %181 = arith.mulf %180, %180 : vector<24x32xf32>
    %cst_71 = arith.constant dense<0.000000e+00> : vector<24xf32>
    %182 = vector.multi_reduction <add>, %181, %cst_71 [1] : vector<24x32xf32> to vector<24xf32>
    %183 = vector.shape_cast %182 : vector<24xf32> to vector<24x1xf32>
    %cst_72 = arith.constant 3.200000e+01 : f32
    %184 = vector.broadcast %cst_72 : f32 to vector<24x1xf32>
    %185 = arith.divf %183, %184 : vector<24x1xf32>
    %cst_73 = arith.constant 9.99999974E-6 : f32
    %186 = vector.broadcast %cst_73 : f32 to vector<24x1xf32>
    %187 = arith.addf %185, %186 : vector<24x1xf32>
    %188 = math.rsqrt %187 : vector<24x1xf32>
    %189 = vector.broadcast %188 : vector<24x1xf32> to vector<24x32xf32>
    %190 = arith.mulf %180, %189 : vector<24x32xf32>
    %191 = vector.broadcast %173 : vector<1x32xf32> to vector<24x32xf32>
    %192 = arith.mulf %190, %191 : vector<24x32xf32>
    %193 = vector.broadcast %174 : vector<1x32xf32> to vector<24x32xf32>
    %194 = arith.addf %192, %193 : vector<24x32xf32>
    %195 = vector.extract_strided_slice %4 {offsets = [1, 0, 0], sizes = [1, 96, 32], strides = [1, 1, 1]} : vector<2x96x32xf32> to vector<1x96x32xf32>
    %196 = vector.shape_cast %195 : vector<1x96x32xf32> to vector<96x32xf32>
    %cst_74 = arith.constant dense<0.000000e+00> : vector<24x96xf32>
    %197 = tpu.matmul %194, %196, %cst_74 {dimension_numbers = #tpu.dot_dimension_numbers<[1], [1], [0], [0], [0, 0, 1, 0], [], []>} : vector<24x32xf32>, vector<96x32xf32>, vector<24x96xf32> -> vector<24x96xf32>
    %198 = vector.extract_strided_slice %5 {offsets = [1, 0], sizes = [1, 96], strides = [1, 1]} : vector<2x96xf32> to vector<1x96xf32>
    %199 = vector.broadcast %198 : vector<1x96xf32> to vector<24x96xf32>
    %200 = arith.addf %197, %199 : vector<24x96xf32>
    %201 = vector.extract_strided_slice %200 {offsets = [0, 0], sizes = [24, 32], strides = [1, 1]} : vector<24x96xf32> to vector<24x32xf32>
    %202 = vector.shape_cast %201 : vector<24x32xf32> to vector<3x8x32xf32>
    %203 = vector.extract_strided_slice %200 {offsets = [0, 32], sizes = [24, 32], strides = [1, 1]} : vector<24x96xf32> to vector<24x32xf32>
    %204 = vector.shape_cast %203 : vector<24x32xf32> to vector<3x8x32xf32>
    %205 = vector.extract_strided_slice %200 {offsets = [0, 64], sizes = [24, 32], strides = [1, 1]} : vector<24x96xf32> to vector<24x32xf32>
    %206 = vector.shape_cast %205 : vector<24x32xf32> to vector<3x8x32xf32>
    %cst_75 = arith.constant 0.000000e+00 : f32
    %207 = vector.broadcast %cst_75 : f32 to vector<24x32xf32>
    %208 = vector.extract_strided_slice %202 {offsets = [0, 0, 0], sizes = [3, 8, 8], strides = [1, 1, 1]} : vector<3x8x32xf32> to vector<3x8x8xf32>
    %209 = vector.extract_strided_slice %204 {offsets = [0, 0, 0], sizes = [3, 8, 8], strides = [1, 1, 1]} : vector<3x8x32xf32> to vector<3x8x8xf32>
    "tpu.trace_start"() <{level = 10 : i32, message = "bqd,bkd->bqk"}> : () -> ()
    %cst_76 = arith.constant dense<0.000000e+00> : vector<3x8x8xf32>
    %210 = tpu.matmul %208, %209, %cst_76 {dimension_numbers = #tpu.dot_dimension_numbers<[2], [2], [1], [1], [0, 0, 0, 1, 1, 1], [0], [0]>} : vector<3x8x8xf32>, vector<3x8x8xf32>, vector<3x8x8xf32> -> vector<3x8x8xf32>
    "tpu.trace_stop"() : () -> ()
    %cst_77 = arith.constant 0.353553385 : f32
    %211 = vector.broadcast %cst_77 : f32 to vector<3x8x8xf32>
    %212 = arith.mulf %210, %211 : vector<3x8x8xf32>
    %213 = vector.broadcast %21 : vector<3x1x8xf32> to vector<3x8x8xf32>
    %214 = arith.addf %212, %213 : vector<3x8x8xf32>
    %cst_78 = arith.constant dense<0xFF800000> : vector<3x8xf32>
    %215 = vector.multi_reduction <maximumf>, %214, %cst_78 [2] : vector<3x8x8xf32> to vector<3x8xf32>
    %216 = vector.shape_cast %215 : vector<3x8xf32> to vector<3x8x1xf32>
    %217 = vector.broadcast %216 : vector<3x8x1xf32> to vector<3x8x8xf32>
    %218 = arith.subf %214, %217 : vector<3x8x8xf32>
    %219 = math.exp %218 : vector<3x8x8xf32>
    %cst_79 = arith.constant dense<0.000000e+00> : vector<3x8xf32>
    %220 = vector.multi_reduction <add>, %219, %cst_79 [2] : vector<3x8x8xf32> to vector<3x8xf32>
    %221 = vector.shape_cast %220 : vector<3x8xf32> to vector<3x8x1xf32>
    %222 = vector.broadcast %221 : vector<3x8x1xf32> to vector<3x8x8xf32>
    %223 = arith.divf %219, %222 : vector<3x8x8xf32>
    %224 = vector.extract_strided_slice %206 {offsets = [0, 0, 0], sizes = [3, 8, 8], strides = [1, 1, 1]} : vector<3x8x32xf32> to vector<3x8x8xf32>
    "tpu.trace_start"() <{level = 10 : i32, message = "bqk,bkd->bqd"}> : () -> ()
    %cst_80 = arith.constant dense<0.000000e+00> : vector<3x8x8xf32>
    %225 = tpu.matmul %223, %224, %cst_80 {dimension_numbers = #tpu.dot_dimension_numbers<[2], [1], [1], [2], [0, 0, 0, 1, 1, 2], [0], [0]>} : vector<3x8x8xf32>, vector<3x8x8xf32>, vector<3x8x8xf32> -> vector<3x8x8xf32>
    "tpu.trace_stop"() : () -> ()
    %226 = vector.shape_cast %225 : vector<3x8x8xf32> to vector<24x8xf32>
    %227 = vector.extract_strided_slice %6 {offsets = [1, 0, 0], sizes = [1, 32, 32], strides = [1, 1, 1]} : vector<2x32x32xf32> to vector<1x32x32xf32>
    %228 = vector.shape_cast %227 : vector<1x32x32xf32> to vector<32x32xf32>
    %229 = vector.extract_strided_slice %228 {offsets = [0, 0], sizes = [32, 8], strides = [1, 1]} : vector<32x32xf32> to vector<32x8xf32>
    %cst_81 = arith.constant dense<0.000000e+00> : vector<24x32xf32>
    %230 = tpu.matmul %226, %229, %cst_81 {dimension_numbers = #tpu.dot_dimension_numbers<[1], [1], [0], [0], [0, 0, 1, 0], [], []>} : vector<24x8xf32>, vector<32x8xf32>, vector<24x32xf32> -> vector<24x32xf32>
    %231 = arith.addf %207, %230 : vector<24x32xf32>
    %232 = vector.extract_strided_slice %202 {offsets = [0, 0, 8], sizes = [3, 8, 8], strides = [1, 1, 1]} : vector<3x8x32xf32> to vector<3x8x8xf32>
    %233 = vector.extract_strided_slice %204 {offsets = [0, 0, 8], sizes = [3, 8, 8], strides = [1, 1, 1]} : vector<3x8x32xf32> to vector<3x8x8xf32>
    "tpu.trace_start"() <{level = 10 : i32, message = "bqd,bkd->bqk"}> : () -> ()
    %cst_82 = arith.constant dense<0.000000e+00> : vector<3x8x8xf32>
    %234 = tpu.matmul %232, %233, %cst_82 {dimension_numbers = #tpu.dot_dimension_numbers<[2], [2], [1], [1], [0, 0, 0, 1, 1, 1], [0], [0]>} : vector<3x8x8xf32>, vector<3x8x8xf32>, vector<3x8x8xf32> -> vector<3x8x8xf32>
    "tpu.trace_stop"() : () -> ()
    %cst_83 = arith.constant 0.353553385 : f32
    %235 = vector.broadcast %cst_83 : f32 to vector<3x8x8xf32>
    %236 = arith.mulf %234, %235 : vector<3x8x8xf32>
    %237 = vector.broadcast %21 : vector<3x1x8xf32> to vector<3x8x8xf32>
    %238 = arith.addf %236, %237 : vector<3x8x8xf32>
    %cst_84 = arith.constant dense<0xFF800000> : vector<3x8xf32>
    %239 = vector.multi_reduction <maximumf>, %238, %cst_84 [2] : vector<3x8x8xf32> to vector<3x8xf32>
    %240 = vector.shape_cast %239 : vector<3x8xf32> to vector<3x8x1xf32>
    %241 = vector.broadcast %240 : vector<3x8x1xf32> to vector<3x8x8xf32>
    %242 = arith.subf %238, %241 : vector<3x8x8xf32>
    %243 = math.exp %242 : vector<3x8x8xf32>
    %cst_85 = arith.constant dense<0.000000e+00> : vector<3x8xf32>
    %244 = vector.multi_reduction <add>, %243, %cst_85 [2] : vector<3x8x8xf32> to vector<3x8xf32>
    %245 = vector.shape_cast %244 : vector<3x8xf32> to vector<3x8x1xf32>
    %246 = vector.broadcast %245 : vector<3x8x1xf32> to vector<3x8x8xf32>
    %247 = arith.divf %243, %246 : vector<3x8x8xf32>
    %248 = vector.extract_strided_slice %206 {offsets = [0, 0, 8], sizes = [3, 8, 8], strides = [1, 1, 1]} : vector<3x8x32xf32> to vector<3x8x8xf32>
    "tpu.trace_start"() <{level = 10 : i32, message = "bqk,bkd->bqd"}> : () -> ()
    %cst_86 = arith.constant dense<0.000000e+00> : vector<3x8x8xf32>
    %249 = tpu.matmul %247, %248, %cst_86 {dimension_numbers = #tpu.dot_dimension_numbers<[2], [1], [1], [2], [0, 0, 0, 1, 1, 2], [0], [0]>} : vector<3x8x8xf32>, vector<3x8x8xf32>, vector<3x8x8xf32> -> vector<3x8x8xf32>
    "tpu.trace_stop"() : () -> ()
    %250 = vector.shape_cast %249 : vector<3x8x8xf32> to vector<24x8xf32>
    %251 = vector.extract_strided_slice %6 {offsets = [1, 0, 0], sizes = [1, 32, 32], strides = [1, 1, 1]} : vector<2x32x32xf32> to vector<1x32x32xf32>
    %252 = vector.shape_cast %251 : vector<1x32x32xf32> to vector<32x32xf32>
    %253 = vector.extract_strided_slice %252 {offsets = [0, 8], sizes = [32, 8], strides = [1, 1]} : vector<32x32xf32> to vector<32x8xf32>
    %cst_87 = arith.constant dense<0.000000e+00> : vector<24x32xf32>
    %254 = tpu.matmul %250, %253, %cst_87 {dimension_numbers = #tpu.dot_dimension_numbers<[1], [1], [0], [0], [0, 0, 1, 0], [], []>} : vector<24x8xf32>, vector<32x8xf32>, vector<24x32xf32> -> vector<24x32xf32>
    %255 = arith.addf %231, %254 : vector<24x32xf32>
    %256 = vector.extract_strided_slice %202 {offsets = [0, 0, 16], sizes = [3, 8, 8], strides = [1, 1, 1]} : vector<3x8x32xf32> to vector<3x8x8xf32>
    %257 = vector.extract_strided_slice %204 {offsets = [0, 0, 16], sizes = [3, 8, 8], strides = [1, 1, 1]} : vector<3x8x32xf32> to vector<3x8x8xf32>
    "tpu.trace_start"() <{level = 10 : i32, message = "bqd,bkd->bqk"}> : () -> ()
    %cst_88 = arith.constant dense<0.000000e+00> : vector<3x8x8xf32>
    %258 = tpu.matmul %256, %257, %cst_88 {dimension_numbers = #tpu.dot_dimension_numbers<[2], [2], [1], [1], [0, 0, 0, 1, 1, 1], [0], [0]>} : vector<3x8x8xf32>, vector<3x8x8xf32>, vector<3x8x8xf32> -> vector<3x8x8xf32>
    "tpu.trace_stop"() : () -> ()
    %cst_89 = arith.constant 0.353553385 : f32
    %259 = vector.broadcast %cst_89 : f32 to vector<3x8x8xf32>
    %260 = arith.mulf %258, %259 : vector<3x8x8xf32>
    %261 = vector.broadcast %21 : vector<3x1x8xf32> to vector<3x8x8xf32>
    %262 = arith.addf %260, %261 : vector<3x8x8xf32>
    %cst_90 = arith.constant dense<0xFF800000> : vector<3x8xf32>
    %263 = vector.multi_reduction <maximumf>, %262, %cst_90 [2] : vector<3x8x8xf32> to vector<3x8xf32>
    %264 = vector.shape_cast %263 : vector<3x8xf32> to vector<3x8x1xf32>
    %265 = vector.broadcast %264 : vector<3x8x1xf32> to vector<3x8x8xf32>
    %266 = arith.subf %262, %265 : vector<3x8x8xf32>
    %267 = math.exp %266 : vector<3x8x8xf32>
    %cst_91 = arith.constant dense<0.000000e+00> : vector<3x8xf32>
    %268 = vector.multi_reduction <add>, %267, %cst_91 [2] : vector<3x8x8xf32> to vector<3x8xf32>
    %269 = vector.shape_cast %268 : vector<3x8xf32> to vector<3x8x1xf32>
    %270 = vector.broadcast %269 : vector<3x8x1xf32> to vector<3x8x8xf32>
    %271 = arith.divf %267, %270 : vector<3x8x8xf32>
    %272 = vector.extract_strided_slice %206 {offsets = [0, 0, 16], sizes = [3, 8, 8], strides = [1, 1, 1]} : vector<3x8x32xf32> to vector<3x8x8xf32>
    "tpu.trace_start"() <{level = 10 : i32, message = "bqk,bkd->bqd"}> : () -> ()
    %cst_92 = arith.constant dense<0.000000e+00> : vector<3x8x8xf32>
    %273 = tpu.matmul %271, %272, %cst_92 {dimension_numbers = #tpu.dot_dimension_numbers<[2], [1], [1], [2], [0, 0, 0, 1, 1, 2], [0], [0]>} : vector<3x8x8xf32>, vector<3x8x8xf32>, vector<3x8x8xf32> -> vector<3x8x8xf32>
    "tpu.trace_stop"() : () -> ()
    %274 = vector.shape_cast %273 : vector<3x8x8xf32> to vector<24x8xf32>
    %275 = vector.extract_strided_slice %6 {offsets = [1, 0, 0], sizes = [1, 32, 32], strides = [1, 1, 1]} : vector<2x32x32xf32> to vector<1x32x32xf32>
    %276 = vector.shape_cast %275 : vector<1x32x32xf32> to vector<32x32xf32>
    %277 = vector.extract_strided_slice %276 {offsets = [0, 16], sizes = [32, 8], strides = [1, 1]} : vector<32x32xf32> to vector<32x8xf32>
    %cst_93 = arith.constant dense<0.000000e+00> : vector<24x32xf32>
    %278 = tpu.matmul %274, %277, %cst_93 {dimension_numbers = #tpu.dot_dimension_numbers<[1], [1], [0], [0], [0, 0, 1, 0], [], []>} : vector<24x8xf32>, vector<32x8xf32>, vector<24x32xf32> -> vector<24x32xf32>
    %279 = arith.addf %255, %278 : vector<24x32xf32>
    %280 = vector.extract_strided_slice %202 {offsets = [0, 0, 24], sizes = [3, 8, 8], strides = [1, 1, 1]} : vector<3x8x32xf32> to vector<3x8x8xf32>
    %281 = vector.extract_strided_slice %204 {offsets = [0, 0, 24], sizes = [3, 8, 8], strides = [1, 1, 1]} : vector<3x8x32xf32> to vector<3x8x8xf32>
    "tpu.trace_start"() <{level = 10 : i32, message = "bqd,bkd->bqk"}> : () -> ()
    %cst_94 = arith.constant dense<0.000000e+00> : vector<3x8x8xf32>
    %282 = tpu.matmul %280, %281, %cst_94 {dimension_numbers = #tpu.dot_dimension_numbers<[2], [2], [1], [1], [0, 0, 0, 1, 1, 1], [0], [0]>} : vector<3x8x8xf32>, vector<3x8x8xf32>, vector<3x8x8xf32> -> vector<3x8x8xf32>
    "tpu.trace_stop"() : () -> ()
    %cst_95 = arith.constant 0.353553385 : f32
    %283 = vector.broadcast %cst_95 : f32 to vector<3x8x8xf32>
    %284 = arith.mulf %282, %283 : vector<3x8x8xf32>
    %285 = vector.broadcast %21 : vector<3x1x8xf32> to vector<3x8x8xf32>
    %286 = arith.addf %284, %285 : vector<3x8x8xf32>
    %cst_96 = arith.constant dense<0xFF800000> : vector<3x8xf32>
    %287 = vector.multi_reduction <maximumf>, %286, %cst_96 [2] : vector<3x8x8xf32> to vector<3x8xf32>
    %288 = vector.shape_cast %287 : vector<3x8xf32> to vector<3x8x1xf32>
    %289 = vector.broadcast %288 : vector<3x8x1xf32> to vector<3x8x8xf32>
    %290 = arith.subf %286, %289 : vector<3x8x8xf32>
    %291 = math.exp %290 : vector<3x8x8xf32>
    %cst_97 = arith.constant dense<0.000000e+00> : vector<3x8xf32>
    %292 = vector.multi_reduction <add>, %291, %cst_97 [2] : vector<3x8x8xf32> to vector<3x8xf32>
    %293 = vector.shape_cast %292 : vector<3x8xf32> to vector<3x8x1xf32>
    %294 = vector.broadcast %293 : vector<3x8x1xf32> to vector<3x8x8xf32>
    %295 = arith.divf %291, %294 : vector<3x8x8xf32>
    %296 = vector.extract_strided_slice %206 {offsets = [0, 0, 24], sizes = [3, 8, 8], strides = [1, 1, 1]} : vector<3x8x32xf32> to vector<3x8x8xf32>
    "tpu.trace_start"() <{level = 10 : i32, message = "bqk,bkd->bqd"}> : () -> ()
    %cst_98 = arith.constant dense<0.000000e+00> : vector<3x8x8xf32>
    %297 = tpu.matmul %295, %296, %cst_98 {dimension_numbers = #tpu.dot_dimension_numbers<[2], [1], [1], [2], [0, 0, 0, 1, 1, 2], [0], [0]>} : vector<3x8x8xf32>, vector<3x8x8xf32>, vector<3x8x8xf32> -> vector<3x8x8xf32>
    "tpu.trace_stop"() : () -> ()
    %298 = vector.shape_cast %297 : vector<3x8x8xf32> to vector<24x8xf32>
    %299 = vector.extract_strided_slice %6 {offsets = [1, 0, 0], sizes = [1, 32, 32], strides = [1, 1, 1]} : vector<2x32x32xf32> to vector<1x32x32xf32>
    %300 = vector.shape_cast %299 : vector<1x32x32xf32> to vector<32x32xf32>
    %301 = vector.extract_strided_slice %300 {offsets = [0, 24], sizes = [32, 8], strides = [1, 1]} : vector<32x32xf32> to vector<32x8xf32>
    %cst_99 = arith.constant dense<0.000000e+00> : vector<24x32xf32>
    %302 = tpu.matmul %298, %301, %cst_99 {dimension_numbers = #tpu.dot_dimension_numbers<[1], [1], [0], [0], [0, 0, 1, 0], [], []>} : vector<24x8xf32>, vector<32x8xf32>, vector<24x32xf32> -> vector<24x32xf32>
    %303 = arith.addf %279, %302 : vector<24x32xf32>
    %304 = vector.extract_strided_slice %7 {offsets = [1, 0], sizes = [1, 32], strides = [1, 1]} : vector<2x32xf32> to vector<1x32xf32>
    %305 = vector.broadcast %304 : vector<1x32xf32> to vector<24x32xf32>
    %306 = arith.addf %303, %305 : vector<24x32xf32>
    %307 = arith.addf %194, %306 : vector<24x32xf32>
    %308 = vector.extract_strided_slice %8 {offsets = [1, 0], sizes = [1, 32], strides = [1, 1]} : vector<2x32xf32> to vector<1x32xf32>
    %309 = vector.extract_strided_slice %9 {offsets = [1, 0], sizes = [1, 32], strides = [1, 1]} : vector<2x32xf32> to vector<1x32xf32>
    %cst_100 = arith.constant dense<0.000000e+00> : vector<24xf32>
    %310 = vector.multi_reduction <add>, %307, %cst_100 [1] : vector<24x32xf32> to vector<24xf32>
    %311 = vector.shape_cast %310 : vector<24xf32> to vector<24x1xf32>
    %cst_101 = arith.constant 3.200000e+01 : f32
    %312 = vector.broadcast %cst_101 : f32 to vector<24x1xf32>
    %313 = arith.divf %311, %312 : vector<24x1xf32>
    %314 = vector.broadcast %313 : vector<24x1xf32> to vector<24x32xf32>
    %315 = arith.subf %307, %314 : vector<24x32xf32>
    %316 = arith.mulf %315, %315 : vector<24x32xf32>
    %cst_102 = arith.constant dense<0.000000e+00> : vector<24xf32>
    %317 = vector.multi_reduction <add>, %316, %cst_102 [1] : vector<24x32xf32> to vector<24xf32>
    %318 = vector.shape_cast %317 : vector<24xf32> to vector<24x1xf32>
    %cst_103 = arith.constant 3.200000e+01 : f32
    %319 = vector.broadcast %cst_103 : f32 to vector<24x1xf32>
    %320 = arith.divf %318, %319 : vector<24x1xf32>
    %cst_104 = arith.constant 9.99999974E-6 : f32
    %321 = vector.broadcast %cst_104 : f32 to vector<24x1xf32>
    %322 = arith.addf %320, %321 : vector<24x1xf32>
    %323 = math.rsqrt %322 : vector<24x1xf32>
    %324 = vector.broadcast %323 : vector<24x1xf32> to vector<24x32xf32>
    %325 = arith.mulf %315, %324 : vector<24x32xf32>
    %326 = vector.broadcast %308 : vector<1x32xf32> to vector<24x32xf32>
    %327 = arith.mulf %325, %326 : vector<24x32xf32>
    %328 = vector.broadcast %309 : vector<1x32xf32> to vector<24x32xf32>
    %329 = arith.addf %327, %328 : vector<24x32xf32>
    %330 = vector.extract_strided_slice %12 {offsets = [1, 0, 0], sizes = [1, 64, 32], strides = [1, 1, 1]} : vector<2x64x32xf32> to vector<1x64x32xf32>
    %331 = vector.shape_cast %330 : vector<1x64x32xf32> to vector<64x32xf32>
    %cst_105 = arith.constant dense<0.000000e+00> : vector<24x64xf32>
    %332 = tpu.matmul %329, %331, %cst_105 {dimension_numbers = #tpu.dot_dimension_numbers<[1], [1], [0], [0], [0, 0, 1, 0], [], []>} : vector<24x32xf32>, vector<64x32xf32>, vector<24x64xf32> -> vector<24x64xf32>
    %333 = vector.extract_strided_slice %13 {offsets = [1, 0], sizes = [1, 64], strides = [1, 1]} : vector<2x64xf32> to vector<1x64xf32>
    %334 = vector.broadcast %333 : vector<1x64xf32> to vector<24x64xf32>
    %335 = arith.addf %332, %334 : vector<24x64xf32>
    %cst_106 = arith.constant 0.000000e+00 : f32
    %336 = vector.broadcast %cst_106 : f32 to vector<24x64xf32>
    %337 = arith.maximumf %335, %336 : vector<24x64xf32>
    %338 = vector.extract_strided_slice %14 {offsets = [1, 0, 0], sizes = [1, 32, 64], strides = [1, 1, 1]} : vector<2x32x64xf32> to vector<1x32x64xf32>
    %339 = vector.shape_cast %338 : vector<1x32x64xf32> to vector<32x64xf32>
    %cst_107 = arith.constant dense<0.000000e+00> : vector<24x32xf32>
    %340 = tpu.matmul %337, %339, %cst_107 {dimension_numbers = #tpu.dot_dimension_numbers<[1], [1], [0], [0], [0, 0, 1, 0], [], []>} : vector<24x64xf32>, vector<32x64xf32>, vector<24x32xf32> -> vector<24x32xf32>
    %341 = vector.extract_strided_slice %15 {offsets = [1, 0], sizes = [1, 32], strides = [1, 1]} : vector<2x32xf32> to vector<1x32xf32>
    %342 = vector.broadcast %341 : vector<1x32xf32> to vector<24x32xf32>
    %343 = arith.addf %340, %342 : vector<24x32xf32>
    %344 = arith.addf %329, %343 : vector<24x32xf32>
    %345 = vector.extract_strided_slice %10 {offsets = [1, 0], sizes = [1, 32], strides = [1, 1]} : vector<2x32xf32> to vector<1x32xf32>
    %346 = vector.extract_strided_slice %11 {offsets = [1, 0], sizes = [1, 32], strides = [1, 1]} : vector<2x32xf32> to vector<1x32xf32>
    %cst_108 = arith.constant dense<0.000000e+00> : vector<24xf32>
    %347 = vector.multi_reduction <add>, %344, %cst_108 [1] : vector<24x32xf32> to vector<24xf32>
    %348 = vector.shape_cast %347 : vector<24xf32> to vector<24x1xf32>
    %cst_109 = arith.constant 3.200000e+01 : f32
    %349 = vector.broadcast %cst_109 : f32 to vector<24x1xf32>
    %350 = arith.divf %348, %349 : vector<24x1xf32>
    %351 = vector.broadcast %350 : vector<24x1xf32> to vector<24x32xf32>
    %352 = arith.subf %344, %351 : vector<24x32xf32>
    %353 = arith.mulf %352, %352 : vector<24x32xf32>
    %cst_110 = arith.constant dense<0.000000e+00> : vector<24xf32>
    %354 = vector.multi_reduction <add>, %353, %cst_110 [1] : vector<24x32xf32> to vector<24xf32>
    %355 = vector.shape_cast %354 : vector<24xf32> to vector<24x1xf32>
    %cst_111 = arith.constant 3.200000e+01 : f32
    %356 = vector.broadcast %cst_111 : f32 to vector<24x1xf32>
    %357 = arith.divf %355, %356 : vector<24x1xf32>
    %cst_112 = arith.constant 9.99999974E-6 : f32
    %358 = vector.broadcast %cst_112 : f32 to vector<24x1xf32>
    %359 = arith.addf %357, %358 : vector<24x1xf32>
    %360 = math.rsqrt %359 : vector<24x1xf32>
    %361 = vector.broadcast %360 : vector<24x1xf32> to vector<24x32xf32>
    %362 = arith.mulf %352, %361 : vector<24x32xf32>
    %363 = vector.broadcast %345 : vector<1x32xf32> to vector<24x32xf32>
    %364 = arith.mulf %362, %363 : vector<24x32xf32>
    %365 = vector.broadcast %346 : vector<1x32xf32> to vector<24x32xf32>
    %366 = arith.addf %364, %365 : vector<24x32xf32>
    %367 = vector.shape_cast %366 : vector<24x32xf32> to vector<3x8x32xf32>
    %cst_113 = arith.constant 1.000000e+00 : f32
    %368 = vector.broadcast %cst_113 : f32 to vector<3x8xf32>
    %369 = arith.subf %368, %2 : vector<3x8xf32>
    %370 = vector.shape_cast %369 : vector<3x8xf32> to vector<3x8x1xf32>
    %371 = vector.broadcast %370 : vector<3x8x1xf32> to vector<3x8x32xf32>
    %372 = arith.mulf %367, %371 : vector<3x8x32xf32>
    %cst_114 = arith.constant dense<0.000000e+00> : vector<3x32xf32>
    %373 = vector.multi_reduction <add>, %372, %cst_114 [1] : vector<3x8x32xf32> to vector<3x32xf32>
    %cst_115 = arith.constant dense<0.000000e+00> : vector<3x1xf32>
    %374 = vector.multi_reduction <add>, %370, %cst_115 [1] : vector<3x8x1xf32> to vector<3x1xf32>
    %cst_116 = arith.constant 1.000000e+00 : f32
    %375 = vector.broadcast %cst_116 : f32 to vector<3x1xf32>
    %376 = arith.maximumf %374, %375 : vector<3x1xf32>
    %377 = vector.broadcast %376 : vector<3x1xf32> to vector<3x32xf32>
    %378 = arith.divf %373, %377 : vector<3x32xf32>
    %379 = vector.shape_cast %378 : vector<3x32xf32> to vector<3x1x32xf32>
    %c0_117 = arith.constant 0 : index
    %c0_118 = arith.constant 0 : index
    %c0_119 = arith.constant 0 : index
    %380 = vector.load %arg16[%c0_117, %c0_118, %c0_119] : memref<3x1x32xf32, #tpu.memory_space<vmem>>, vector<3x1x32xf32>
    tpu.vector_store %arg16[%c0_117, %c0_118, %c0_119], %379 {strides = array<i32>} : memref<3x1x32xf32, #tpu.memory_space<vmem>>, vector<3x1x32xf32>,
    return
  }
  func.func @transform_0(%arg0: i32) -> (i32, i32, i32) {
    %c0_i32 = arith.constant 0 : i32
    %c0_i32_0 = arith.constant 0 : i32
    %c0_i32_1 = arith.constant 0 : i32
    return %arg0, %c0_i32, %c0_i32_0 : i32, i32, i32
  }
  func.func @transform_1(%arg0: i32) -> (i32, i32, i32) {
    %c0_i32 = arith.constant 0 : i32
    %c0_i32_0 = arith.constant 0 : i32
    %c0_i32_1 = arith.constant 0 : i32
    return %arg0, %c0_i32, %c0_i32_0 : i32, i32, i32
  }
  func.func @transform_2(%arg0: i32) -> (i32, i32) {
    %c0_i32 = arith.constant 0 : i32
    %c0_i32_0 = arith.constant 0 : i32
    %c0_i32_1 = arith.constant 0 : i32
    return %c0_i32, %c0_i32_0 : i32, i32
  }
  func.func @transform_3(%arg0: i32) -> (i32, i32, i32) {
    %c0_i32 = arith.constant 0 : i32
    %c0_i32_0 = arith.constant 0 : i32
    %c0_i32_1 = arith.constant 0 : i32
    %c0_i32_2 = arith.constant 0 : i32
    return %c0_i32, %c0_i32_0, %c0_i32_1 : i32, i32, i32
  }
  func.func @transform_4(%arg0: i32) -> (i32, i32) {
    %c0_i32 = arith.constant 0 : i32
    %c0_i32_0 = arith.constant 0 : i32
    %c0_i32_1 = arith.constant 0 : i32
    return %c0_i32, %c0_i32_0 : i32, i32
  }
  func.func @transform_5(%arg0: i32) -> (i32, i32, i32) {
    %c0_i32 = arith.constant 0 : i32
    %c0_i32_0 = arith.constant 0 : i32
    %c0_i32_1 = arith.constant 0 : i32
    %c0_i32_2 = arith.constant 0 : i32
    return %c0_i32, %c0_i32_0, %c0_i32_1 : i32, i32, i32
  }
  func.func @transform_6(%arg0: i32) -> (i32, i32) {
    %c0_i32 = arith.constant 0 : i32
    %c0_i32_0 = arith.constant 0 : i32
    %c0_i32_1 = arith.constant 0 : i32
    return %c0_i32, %c0_i32_0 : i32, i32
  }
  func.func @transform_7(%arg0: i32) -> (i32, i32) {
    %c0_i32 = arith.constant 0 : i32
    %c0_i32_0 = arith.constant 0 : i32
    %c0_i32_1 = arith.constant 0 : i32
    return %c0_i32, %c0_i32_0 : i32, i32
  }
  func.func @transform_8(%arg0: i32) -> (i32, i32) {
    %c0_i32 = arith.constant 0 : i32
    %c0_i32_0 = arith.constant 0 : i32
    %c0_i32_1 = arith.constant 0 : i32
    return %c0_i32, %c0_i32_0 : i32, i32
  }
  func.func @transform_9(%arg0: i32) -> (i32, i32) {
    %c0_i32 = arith.constant 0 : i32
    %c0_i32_0 = arith.constant 0 : i32
    %c0_i32_1 = arith.constant 0 : i32
    return %c0_i32, %c0_i32_0 : i32, i32
  }
  func.func @transform_10(%arg0: i32) -> (i32, i32) {
    %c0_i32 = arith.constant 0 : i32
    %c0_i32_0 = arith.constant 0 : i32
    %c0_i32_1 = arith.constant 0 : i32
    return %c0_i32, %c0_i32_0 : i32, i32
  }
  func.func @transform_11(%arg0: i32) -> (i32, i32, i32) {
    %c0_i32 = arith.constant 0 : i32
    %c0_i32_0 = arith.constant 0 : i32
    %c0_i32_1 = arith.constant 0 : i32
    %c0_i32_2 = arith.constant 0 : i32
    return %c0_i32, %c0_i32_0, %c0_i32_1 : i32, i32, i32
  }
  func.func @transform_12(%arg0: i32) -> (i32, i32) {
    %c0_i32 = arith.constant 0 : i32
    %c0_i32_0 = arith.constant 0 : i32
    %c0_i32_1 = arith.constant 0 : i32
    return %c0_i32, %c0_i32_0 : i32, i32
  }
  func.func @transform_13(%arg0: i32) -> (i32, i32, i32) {
    %c0_i32 = arith.constant 0 : i32
    %c0_i32_0 = arith.constant 0 : i32
    %c0_i32_1 = arith.constant 0 : i32
    %c0_i32_2 = arith.constant 0 : i32
    return %c0_i32, %c0_i32_0, %c0_i32_1 : i32, i32, i32
  }
  func.func @transform_14(%arg0: i32) -> (i32, i32) {
    %c0_i32 = arith.constant 0 : i32
    %c0_i32_0 = arith.constant 0 : i32
    %c0_i32_1 = arith.constant 0 : i32
    return %c0_i32, %c0_i32_0 : i32, i32
  }
  func.func @transform_15(%arg0: i32) -> (i32, i32, i32) {
    %c0_i32 = arith.constant 0 : i32
    %c0_i32_0 = arith.constant 0 : i32
    %c0_i32_1 = arith.constant 0 : i32
    return %arg0, %c0_i32, %c0_i32_0 : i32, i32, i32
  }
}

</mosaic_0001>

<bundles_post_ra>
// kernel: tpu_custom_call.1
= control target key start
LH: loop header
LB: loop body
LE: loop exit
PB: predicated region body
PF: predicated region fallthrough
CT: control target
= control target key end

     0   :  { %s5544_s0 = inlined_call_operand.vmem [shape: f32[6,8,32], index: 0, kind: input, shape index: {}]   ;;  %s5545_s1 = inlined_call_operand.vmem [shape: f32[6,1,8], index: 1, kind: input, shape index: {}]   ;;  %s5546_s2 = inlined_call_operand.vmem [shape: f32[8,32], index: 2, kind: input, shape index: {}]   ;;  %s5547_s3 = inlined_call_operand.vmem [shape: f32[2,96,32], index: 3, kind: input, shape index: {}]   ;;  %s5548_s4 = inlined_call_operand.vmem [shape: f32[2,96], index: 4, kind: input, shape index: {}]   ;;  %s5549_s5 = inlined_call_operand.vmem [shape: f32[2,32,32], index: 5, kind: input, shape index: {}]   ;;  %s5550_s6 = inlined_call_operand.vmem [shape: f32[2,32], index: 6, kind: input, shape index: {}]   ;;  %s5551_s7 = inlined_call_operand.vmem [shape: f32[2,32], index: 7, kind: input, shape index: {}]   ;;  %s5552_s8 = inlined_call_operand.vmem [shape: f32[2,32], index: 8, kind: input, shape index: {}]   ;;  %s5553_s9 = inlined_call_operand.vmem [shape: f32[2,32], index: 9, kind: input, shape index: {}]   ;;  %s5554_s10 = inlined_call_operand.vmem [shape: f32[2,32], index: 10, kind: input, shape index: {}]   ;;  %s5555_s11 = inlined_call_operand.vmem [shape: f32[2,64,32], index: 11, kind: input, shape index: {}]   ;;  %s5556_s12 = inlined_call_operand.vmem [shape: f32[2,64], index: 12, kind: input, shape index: {}]   ;;  %s5557_s13 = inlined_call_operand.vmem [shape: f32[2,32,64], index: 13, kind: input, shape index: {}]   ;;  %s5558_s14 = inlined_call_operand.vmem [shape: f32[2,32], index: 14, kind: input, shape index: {}]   ;;  %s5559_s15 = inlined_call_operand.hbm [shape: f32[6,1,32], index: 15, kind: output, shape index: {}]  }
   0x1   :  { %5584 = sst [smem:[#allocation10_spill]] %s5544_s0 }
   0x2   :  { %5585 = sst [smem:[#allocation11_spill]] %s5545_s1 }
   0x3   :  { %20 = vsyncpa [#allocation3], 0 }
   0x4   :  { %22 = vsyncpa [#allocation3 + $0x1], 0  ;;  %s4422_s18 = smov 0   ;;  %s4424_s19 = smov 0  }
   0x5   :  { %s4426_s20 = smov 0   ;;  %s4428_s21 = smov 0  }
   0x6 LB: > { %5586 = sst [smem:[#allocation5_spill]] %s4314_s18  ;;  %s5560_s22 = sadd.s32 4294967295, %s4326_s21   ;;  %s4326_s21 = sphi %s4428_s21, %s5613_s21   ;;  %s4322_s20 = sphi %s4426_s20, %s5615_s20   ;;  %s4318_s19 = sphi %s4424_s19, %s5617_s19   ;;  %s4314_s18 = sphi %s4422_s18, %s5616_s18  }
   0x7   : > { %5587 = sst [smem:[#allocation6_spill]] %s4322_s20  ;;  %s3823_s23 = sadd.s32 4294967294, %s4326_s21  }
   0x8   : > { %s4445_s24 = sadd.s32 1, %s4326_s21   ;;  %s360_s25 = sadd.s32 1, %s4322_s20 }
   0x9   : > { %5588 = sst [smem:[#allocation7_spill]] %s4445_s24  ;;  %s357_s26 = ssub.s32 %s4326_s21, %s4445_s24 }
   0xa   : > { %p370_p0 = scmp.ne.s32.totalorder %s4322_s20, %s4318_s19  ;;  %p358_p1 = scmp.eq.s32.totalorder %s357_s26, 0 }
   0xb   : > { %p371_p2 = scmp.eq.s32.totalorder %s5560_s22, 1  ;;  %p376_p3 = scmp.ne.s32.totalorder %s4318_s19, %s4314_s18 }
   0xc   : > { %p377_p4 = scmp.eq.s32.totalorder %s3823_s23, 1  ;;  %p3826_p7 = scmp.ge.s32.totalorder %s4326_s21, 1 }
   0xd   : > { %s4457_s27 = scalar_select %p358_p1, %s4322_s20, %s360_s25  }
   0xe   : > { %p4459_p5 = por %p371_p2, %p370_p0  ;;  %p4463_p6 = por %p377_p4, %p376_p3 }
   0xf   : > { %5589 = sst [smem:[#allocation8_spill]] %s4457_s27  ;;  %p451_p8 = scmp.lt.s32.totalorder %s4326_s21, 3 }
  0x10   : > { %s5591_s29 = scalar_select %p4463_p6, 1, 0 }
  0x11   : > { %p452_p9 = pnand %p3826_p7, %p451_p8 }
  0x12   : > { %5592 = sst [smem:[#allocation9_spill]] %s5591_s29  ;;  %s5593_s22 = sadd.s32 (!%p452_p9), 4294967295, %s4326_s21  }
  0x13   : > { %455 = sbr.rel (%p452_p9) target bundleno = 6094 (0x17ce), region = 80  ;;  %s5594_s0 = sld [smem:[#allocation10_spill]] (!%p452_p9) }
  0x14   : > { %s4498_s27 = smul.u32 (!%p452_p9), 3, %s5593_s22  ;;  %s4328_s24 = smov (!%p452_p9), 96  }
  0x15   : > { %s5570_s29 = smov (!%p452_p9), 88   ;;  %s4330_s30 = smov (!%p452_p9), 120  }
  0x16   : > { %p504_p10 = scmp.lt.s32.totalorder (!%p452_p9), %s4498_s27, 5  ;;  %s5595_s1 = sld [smem:[#allocation11_spill]] (!%p452_p9) }
  0x17   : > { %s5566_s26 = smov (!%p452_p9), 80   ;;  %s5580_s22 = smov (!%p452_p9), 112  }
  0x18   : > { %v533_v0 = vld [vmem:[%s5547_s3 + $0x58] sm:$0xff]  ;;  %vm593_vm0 = vcmask 261120   ;;  %v532_v1 = vld [vmem:[%s5547_s3 + $0x50] sm:$0xff]  ;;  %v531_v2 = vld [vmem:[%s5547_s3 + $0x48] sm:$0xff]  ;;  %s4510_s25 = scalar_select %p504_p10, %s4498_s27, 5  ;;  %vm668_vm1 = vcmask 64512  }
  0x19   : > { %3828 = vmatpush.xpose.msk.msra.mxu0 %vm593_vm0, %v533_v0  ;;  %v530_v3 = vld [vmem:[%s5547_s3 + $0x40] sm:$0xff]  ;;  %v529_v4 = vld [vmem:[%s5547_s3 + $0x38] sm:$0xff]  ;;  %v528_v5 = vld [vmem:[%s5547_s3 + $0x30] sm:$0xff]  ;;  %s5568_s18 = smov 64   ;;  %s5602_s16 = smov 72  }
  0x1a   : > { %v527_v6 = vld [vmem:[%s5547_s3 + $0x28] sm:$0xff]  ;;  %v526_v7 = vld [vmem:[%s5547_s3 + $0x20] sm:$0xff]  ;;  %v525_v8 = vld [vmem:[%s5547_s3 + $0x18] sm:$0xff]  ;;  %s3827_s20 = sshll.u32 %s4510_s25, 3 }
  0x1b   : > { %v524_v9 = vld [vmem:[%s5547_s3 + $0x10] sm:$0xff]  ;;  %v523_v10 = vld [vmem:[%s5547_s3 + $0x8] sm:$0xff]  ;;  %s507_s17 = scalar_lea.vmem %s5594_s0, %s3827_s20  ;;  %v521_v12 = vld [vmem:[%s5546_s2] sm:$0xff]  ;;  %s5601_s20 = smov 48  }
  0x1c   : > { %v515_v11 = vld [vmem:[%s507_s17] sm:$0xff]  ;;  %v516_v15 = vld [vmem:[%s507_s17 + $0x8] sm:$0xff]  ;;  %v517_v17 = vld [vmem:[%s507_s17 + $0x10] sm:$0xff]  ;;  %s4576_s23 = scalar_lea.vmem %s5595_s1, %s4510_s25  ;;  %s5582_s25 = smov 56  }
  0x1d   : > { %3829 = vmatpush.xpose.msk.msra.mxu0 %vm593_vm0, %v532_v1  ;;  %v522_v13 = vld [vmem:[%s5547_s3] sm:$0xff]  ;;  %v4531_v14 = vadd.f32 %v521_v12, %v515_v11  ;;  %v4536_v16 = vadd.f32 %v521_v12, %v516_v15  ;;  %v4540_v18 = vadd.f32 %v521_v12, %v517_v17  ;;  %s5572_s17 = smov 40  }
  0x1e   : > { %v546_v19 = vld [vmem:[%s5548_s4] sm:$0x3]  ;;  %v520_v30 = vld [vmem:[%s4576_s23 + $0x2] sm:$0x1] }
  0x1f   : > { %v592_v20 = vperm.slane %v546_v19, 0  ;;  %v591_v31 = vmul.f32 -1e+30, %v520_v30  ;;  %v519_v33 = vld [vmem:[%s4576_s23 + $0x1] sm:$0x1] }
  0x20   : > { %v590_v36 = vmul.f32 -1e+30, %v519_v33  ;;  %v518_v56 = vld [vmem:[%s4576_s23] sm:$0x1] }
  0x21   : > { %3830 = vmatpush.xpose.msk.msra.mxu0 %vm593_vm0, %v531_v2  ;;  %v4579_v32 = vperm.slane %v591_v31, 0  ;;  %v589_v57 = vmul.f32 -1e+30, %v518_v56 }
  0x22   : > { %v4584_v39 = vperm.slane %v590_v36, 0 }
  0x23   : > { %v4610_v59 = vperm.slane %v589_v57, 0 }
  0x25   : > { %3831 = vmatpush.xpose.msk.msra.mxu0 %vm593_vm0, %v530_v3 }
  0x29   : > { %3832 = vmatpush.xpose.msk.msra.mxu0 %vm593_vm0, %v529_v4 }
  0x2d   : > { %3833 = vmatpush.xpose.msk.msra.mxu0 %vm593_vm0, %v528_v5 }
  0x31   : > { %3834 = vmatpush.xpose.msk.msra.mxu0 %vm593_vm0, %v527_v6 }
  0x35   : > { %3835 = vmatpush.xpose.msk.msra.mxu0 %vm593_vm0, %v526_v7 }
  0x39   : > { %3836 = vmatpush.xpose.msk.msra.mxu0 %vm593_vm0, %v525_v8 }
  0x3d   : > { %3837 = vmatpush.xpose.msk.msra.mxu0 %vm593_vm0, %v524_v9 }
  0x41   : > { %3838 = vmatpush.xpose.msk.msra.mxu0 %vm593_vm0, %v523_v10 }
  0x45   : > { %3839 = vmatpush.xpose.msk.msra.mxu0 %vm593_vm0, %v522_v13 }
  0x48   : > { %3840 = vmatmul.msk.f32.vlgmr.msra.gmra.mxu0 %vm593_vm0, %v4531_v14 }
  0x50   : > { %3841 = vmatmul.msk.f32.gmra.mxu0 %vm593_vm0, %v4536_v16 }
  0x58   : > { %3842 = vmatmul.msk.f32.gmra.mxu0 %vm593_vm0, %v4540_v18 }
  0xc5   : > { %v656_v21 = vpop.f32.mrf.mxu0 }
  0xc6   : > { %v4547_v22 = vadd.f32 %v656_v21, %v592_v20 }
  0xc8   : > { %666 = vrot.lane.b32.xlu1 %v4547_v22, %s4328_s24 }
  0xcd   : > { %v659_v23 = vpop.f32.mrf.mxu0 }
  0xce   : > { %v4555_v26 = vadd.f32 %v659_v23, %v592_v20 }
  0xd5   : > { %v662_v24 = vpop.f32.mrf.mxu0 }
  0xd6   : > { %v4551_v25 = vadd.f32 %v662_v24, %v592_v20 }
  0xd8   : > { %721 = vrot.lane.b32.xlu0 %v4551_v25, %s4328_s24 }
  0xe0   : > { %694 = vrot.lane.b32.xlu0 %v4555_v26, %s4328_s24 }
  0xe8   : > { %970 = vrot.lane.b32.xlu0 %v4551_v25, %s5570_s29 }
  0xf0   : > { %968 = vrot.lane.b32.xlu0 %v4551_v25, %s4330_s30 }
 0x13a   : > { %v667_v27 = vpop.permute.xlu1 %666 }
 0x13b   : > { %3843 = vmatpush.xpose.msk.msra.mxu1 %vm668_vm1, %v667_v27  ;;  %v4082_v27 = vpack.i.bf16 %v4547_v22, %v4555_v26 }
 0x13e   : > { %3844 = vmatmul.msk.f32.vlgmr.msra.gmra.mxu1 %vm668_vm1, %v4547_v22 }
 0x14a   : > { %v722_v28 = vpop.permute.xlu0 %721 }
 0x14b   : > { %3847 = vmatpush.xpose.msk.msra.mxu3 %vm668_vm1, %v722_v28 }
 0x14e   : > { %3848 = vmatmul.msk.f32.vlgmr.msra.gmra.mxu3 %vm668_vm1, %v4551_v25 }
 0x152   : > { %v695_v29 = vpop.permute.xlu0 %694 }
 0x153   : > { %3845 = vmatpush.xpose.msk.msra.mxu2 %vm668_vm1, %v695_v29 }
 0x156   : > { %3846 = vmatmul.msk.f32.vlgmr.msra.gmra.mxu2 %vm668_vm1, %v4555_v26 }
 0x15a   : > { %v971_v44 = vpop.permute.xlu0 %970 }
 0x162   : > { %v969_v45 = vpop.permute.xlu0 %968 }
 0x1bb   : > { %v690_v58 = vpop.f32.mrf.mxu1 }
 0x1bc   : > { %v747_v60 = vmul.f32 0.35355338, %v690_v58 }
 0x1be   : > { %v759_v61 = vadd.f32 %v4610_v59, %v747_v60 }
 0x1c0   : > { %v762_v62 = vsel %vm668_vm1, %v759_v61, -inf }
 0x1d1   : > { %v744_v34 = vpop.f32.mrf.mxu3 }
 0x1d2   : > { %v749_v35 = vmul.f32 0.35355338, %v744_v34 }
 0x1d4   : > { %v761_v37 = vadd.f32 %v4579_v32, %v749_v35 }
 0x1d6   : > { %v768_v38 = vsel %vm668_vm1, %v761_v37, -inf }
 0x1d7   : > { %769 = vmax.xlane.f32.xlu1 %v768_v38 }
 0x1d9   : > { %v717_v40 = vpop.f32.mrf.mxu2 }
 0x1da   : > { %v748_v41 = vmul.f32 0.35355338, %v717_v40 }
 0x1dc   : > { %v760_v42 = vadd.f32 %v4584_v39, %v748_v41 }
 0x1de   : > { %v765_v43 = vsel %vm668_vm1, %v760_v42, -inf }
 0x1df   : > { %766 = vmax.xlane.f32.xlu0 %v765_v43 }
 0x1f3   : > { %940 = vrot.lane.b32.xlu0 %v4555_v26, %s4330_s30 }
 0x1fb   : > { %912 = vrot.lane.b32.xlu0 %v4547_v22, %s4330_s30 }
 0x203   : > { %1126 = vrot.lane.b32.xlu0 %v4551_v25, %s5582_s25 }
 0x20b   : > { %1252 = vrot.lane.b32.xlu0 %v4547_v22, %s5566_s26 }
 0x213   : > { %1250 = vrot.lane.b32.xlu0 %v4547_v22, %s5580_s22 }
 0x21b   : > { %1280 = vrot.lane.b32.xlu0 %v4555_v26, %s5566_s26 }
 0x223   : > { %1278 = vrot.lane.b32.xlu0 %v4555_v26, %s5580_s22 }
 0x24a   : > { %v770_v46 = vpop.xlane.xlu1 %769 }
 0x24b   : > { %v773_v47 = vsub.f32 %v761_v37, %v770_v46 }
 0x24d   : > { %v778_v48 = vmul.f32 1.442695, %v773_v47 }
 0x24f   : > { %4125 = vpow2.f32 %v778_v48 }
 0x252   : > { %v767_v49 = vpop.xlane.xlu0 %766 }
 0x253   : > { %v772_v50 = vsub.f32 %v760_v42, %v767_v49 }
 0x255   : > { %v4126_v51 = vpop.eup %4125  ;;  %v776_v52 = vmul.f32 1.442695, %v772_v50 }
 0x256   : > { %v786_v53 = vsel %vm668_vm1, %v4126_v51, 0.0 }
 0x257   : > { %4127 = vpow2.f32 %v776_v52  ;;  %787 = vadd.xlane.f32.xlu2 %v786_v53 }
 0x25d   : > { %v4603_v54 = vpop.eup %4127 }
 0x25e   : > { %v783_v55 = vsel %vm668_vm1, %v4603_v54, 0.0 }
 0x25f   : > { %784 = vadd.xlane.f32.xlu1 %v783_v55 }
 0x265   : > { %v4616_v63 = vpop.permute.xlu0 %940 }
 0x26d   : > { %v4618_v2 = vpop.permute.xlu0 %912 }
 0x26f   : > { %886 = vrot.lane.b32.xlu2 %v4551_v25, %s5568_s18 }
 0x275   : > { %v1127_v13 = vpop.permute.xlu0 %1126 }
 0x27d   : > { %v1253_v17 = vpop.permute.xlu0 %1252 }
 0x298   : > { %763 = vmax.xlane.f32.xlu2 %v762_v62 }
 0x2b0   : > { %942 = vrot.lane.b32.xlu2 %v4555_v26, %s5570_s29 }
 0x2ca   : > { %v788_v0 = vpop.xlane.xlu2 %787 }
 0x2cb   : > { %4129 = vrcp.f32 %v788_v0  ;;  %v830_v6 = vand.u32 2147483648, %v788_v0  ;;  %v828_v8 = vand.u32 2147483647, %v788_v0  ;;  %vm824_vm3 = vweird.f32 %v788_v0 }
 0x2cd   : > { %v831_v10 = vor.u32 1.1754944e-38, %v830_v6  ;;  %vm829_vm5 = vcmp.eq.f32.partialorder %v828_v8, 8.507059e+37  ;;  %v4648_v6 = vld [vmem:[%s5549_s5 + $0x18] sm:$0xff]  ;;  %v4663_v8 = vld [vmem:[%s5549_s5 + $0x8] sm:$0xff] }
 0x2ce   : > { %3868 = vmatpush.xpose.msk.msrb.mxu0 %vm668_vm1, %v4648_v6 }
 0x2d1   : > { %v4130_v1 = vpop.eup %4129 }
 0x2d2   : > { %v820_v3 = vmul.f32 %v4130_v1, %v788_v0  ;;  %v887_v4 = vpop.permute.xlu2 %886  ;;  %vm825_vm2 = vweird.f32 %v4130_v1  ;;  %v785_v34 = vpop.xlane.xlu1 %784 }
 0x2d3   : > { %907 = vmatpush.msrb.mxu3 %v887_v4  ;;  %vm826_vm4 = vmor %vm824_vm3, %vm825_vm2  ;;  %vm809_vm8 = vweird.f32 %v785_v34  ;;  %v815_v47 = vand.u32 2147483648, %v785_v34  ;;  %v813_v49 = vand.u32 2147483647, %v785_v34 }
 0x2d4   : > { %v821_v5 = vsub.f32 1.0, %v820_v3 }
 0x2d5   : > { %3856 = vmatpush.xpose.msk.msra.mxu3 %vm668_vm1, %v971_v44  ;;  %v816_v53 = vor.u32 1.1754944e-38, %v815_v47  ;;  %vm814_vm12 = vcmp.eq.f32.partialorder %v813_v49, 8.507059e+37 }
 0x2d6   : > { %v822_v7 = vmul.f32 %v4130_v1, %v821_v5 }
 0x2d8   : > { %v823_v9 = vadd.f32 %v4130_v1, %v822_v7  ;;  %v4655_v7 = vld [vmem:[%s5549_s5 + $0x10] sm:$0xff] }
 0x2d9   : > { %3869 = vmatpush.xpose.msk.msrb.mxu0 %vm668_vm1, %v4655_v7 }
 0x2da   : > { %v827_v11 = vsel %vm826_vm4, %v4130_v1, %v823_v9  ;;  %v4670_v9 = vld [vmem:[%s5549_s5] sm:$0xff] }
 0x2db   : > { %v832_v12 = vsel %vm829_vm5, %v831_v10, %v827_v11 }
 0x2dc   : > { %v833_v15 = vmul.f32 %v4126_v51, %v832_v12 }
 0x2dd   : > { %3870 = vmatpush.xpose.msk.msrb.mxu0 %vm668_vm1, %v4663_v8 }
 0x2de   : > { %3851 = vmatmul.msk.f32.vlgmr.msrb.gmra.mxu3 %vm668_vm1, %v833_v15 }
 0x2df   : > { %1147 = vmatpush.msrb.mxu3 %v1127_v13 }
 0x2e1   : > { %3871 = vmatpush.xpose.msk.msrb.mxu0 %vm668_vm1, %v4670_v9 }
 0x2e6   : > { %3857 = vmatmul.msk.f32.vlgmr.msra.gmra.mxu3 %vm668_vm1, %v969_v45 }
 0x2e7   : > { %3875 = vmatpush.xpose.msk.msra.mxu3 %vm668_vm1, %v1253_v17 }
 0x30b   : > { %v764_v19 = vpop.xlane.xlu2 %763 }
 0x30c   : > { %v771_v20 = vsub.f32 %v759_v61, %v764_v19 }
 0x30e   : > { %v774_v21 = vmul.f32 1.442695, %v771_v20 }
 0x310   : > { %4131 = vpow2.f32 %v774_v21 }
 0x311   : > { %4133 = vrcp.f32 %v785_v34 }
 0x313   : > { %v943_v1 = vpop.permute.xlu2 %942 }
 0x316   : > { %v4132_v23 = vpop.eup %4131 }
 0x317   : > { %v780_v24 = vsel %vm668_vm1, %v4132_v23, 0.0  ;;  %v4134_v36 = vpop.eup %4133 }
 0x318   : > { %781 = vadd.xlane.f32.xlu1 %v780_v24  ;;  %v805_v37 = vmul.f32 %v4134_v36, %v785_v34  ;;  %vm810_vm6 = vweird.f32 %v4134_v36 }
 0x319   : > { %vm811_vm9 = vmor %vm809_vm8, %vm810_vm6 }
 0x31a   : > { %v806_v40 = vsub.f32 1.0, %v805_v37 }
 0x31c   : > { %v807_v43 = vmul.f32 %v4134_v36, %v806_v40 }
 0x31e   : > { %v808_v45 = vadd.f32 %v4134_v36, %v807_v43 }
 0x320   : > { %v812_v52 = vsel %vm811_vm9, %v4134_v36, %v808_v45 }
 0x321   : > { %v817_v57 = vsel %vm814_vm12, %v816_v53, %v812_v52 }
 0x322   : > { %v818_v0 = vmul.f32 %v4603_v54, %v817_v57  ;;  %v4087_v57 = vpack.i.bf16 %v4555_v26, %v4547_v22 }
 0x331   : > { %4083 = vrot.lane.b32.xlu1 %v4082_v27, %s5568_s18  ;;  %s5574_s18 = smov 104  }
 0x339   : > { %914 = vrot.lane.b32.xlu1 %v4547_v22, %s5570_s29  ;;  %s5578_s29 = smov 48  }
 0x361   : > { %v4630_v28 = vpop.f32.mrf.mxu3 }
 0x369   : > { %v993_v29 = vpop.f32.mrf.mxu3 }
 0x36a   : > { %v998_v30 = vmul.f32 0.35355338, %v993_v29 }
 0x36c   : > { %v1001_v31 = vadd.f32 %v998_v30, %v4579_v32  ;;  %v1251_v30 = vpop.permute.xlu0 %1250 }
 0x36e   : > { %v1008_v33 = vsel %vm668_vm1, %v1001_v31, -inf }
 0x36f   : > { %1009 = vmax.xlane.f32.xlu2 %v1008_v33 }
 0x387   : > { %1308 = vrot.lane.b32.xlu2 %v4551_v25, %s5566_s26  ;;  %s5576_s26 = smov 72  }
 0x38b   : > { %v782_v35 = vpop.xlane.xlu1 %781 }
 0x38c   : > { %4135 = vrcp.f32 %v782_v35  ;;  %v800_v48 = vand.u32 2147483648, %v782_v35  ;;  %vm794_vm10 = vweird.f32 %v782_v35  ;;  %v798_v50 = vand.u32 2147483647, %v782_v35 }
 0x38e   : > { %v801_v55 = vor.u32 1.1754944e-38, %v800_v48  ;;  %vm799_vm13 = vcmp.eq.f32.partialorder %v798_v50, 8.507059e+37 }
 0x392   : > { %v4136_v38 = vpop.eup %4135 }
 0x393   : > { %v790_v41 = vmul.f32 %v4136_v38, %v782_v35  ;;  %vm795_vm7 = vweird.f32 %v4136_v38 }
 0x394   : > { %vm796_vm11 = vmor %vm794_vm10, %vm795_vm7 }
 0x395   : > { %v791_v42 = vsub.f32 1.0, %v790_v41 }
 0x397   : > { %v792_v44 = vmul.f32 %v4136_v38, %v791_v42  ;;  %v1281_v42 = vpop.permute.xlu0 %1280 }
 0x399   : > { %v793_v46 = vadd.f32 %v4136_v38, %v792_v44 }
 0x39b   : > { %v797_v51 = vsel %vm796_vm11, %v4136_v38, %v793_v46 }
 0x39c   : > { %v802_v56 = vsel %vm799_vm13, %v801_v55, %v797_v51 }
 0x39d   : > { %v803_v62 = vmul.f32 %v4132_v23, %v802_v56 }
 0x39f   : > { %v1279_v44 = vpop.permute.xlu0 %1278 }
 0x3a3   : > { %v4084_v58 = vpop.permute.xlu1 %4083 }
 0x3a4   : > { %v4086_v60 = vunpack.i.h.bf16 %v4084_v58  ;;  %v4085_v61 = vunpack.i.l.bf16 %v4084_v58 }
 0x3a6   : > { %855 = vmatpush.msrb.mxu1 %v4086_v60  ;;  %881 = vmatpush.msrb.mxu2 %v4085_v61 }
 0x3a7   : > { %3849 = vmatmul.msk.f32.vlgmr.msrb.gmra.mxu1 %vm668_vm1, %v803_v62  ;;  %3850 = vmatmul.msk.f32.vlgmr.msrb.gmra.mxu2 %vm668_vm1, %v818_v0 }
 0x3a8   : > { %3854 = vmatpush.xpose.msk.msra.mxu2 %vm668_vm1, %v943_v1 }
 0x3ab   : > { %v915_v3 = vpop.permute.xlu1 %914 }
 0x3ac   : > { %3852 = vmatpush.xpose.msk.msra.mxu1 %vm668_vm1, %v915_v3 }
 0x3af   : > { %3853 = vmatmul.msk.f32.vlgmr.msra.gmra.mxu1 %vm668_vm1, %v4618_v2  ;;  %3855 = vmatmul.msk.f32.vlgmr.msra.gmra.mxu2 %vm668_vm1, %v4616_v63 }
 0x3e2   : > { %v1010_v4 = vpop.xlane.xlu2 %1009 }
 0x3e3   : > { %v1013_v54 = vsub.f32 %v1001_v31, %v1010_v4 }
 0x3e5   : > { %v1018_v5 = vmul.f32 1.442695, %v1013_v54 }
 0x3e7   : > { %4137 = vpow2.f32 %v1018_v5 }
 0x3ea   : > { %v1309_v43 = vpop.permute.xlu2 %1308 }
 0x3ed   : > { %v4138_v2 = vpop.eup %4137 }
 0x3ee   : > { %v1026_v63 = vsel %vm668_vm1, %v4138_v2, 0.0 }
 0x3ef   : > { %1027 = vadd.xlane.f32.xlu1 %v1026_v63 }
 0x408   : > { %1306 = vrot.lane.b32.xlu1 %v4551_v25, %s5580_s22 }
 0x424   : > { %v857_v10 = vpop.f32.mrf.mxu1 }
 0x425   : > { %3872 = vmatmul.msk.f32.vlgmr.msrb.gmra.mxu0 %vm668_vm1, %v857_v10 }
 0x42a   : > { %v883_v11 = vpop.f32.mrf.mxu2 }
 0x42c   : > { %v937_v12 = vpop.f32.mrf.mxu1 }
 0x42d   : > { %v996_v13 = vmul.f32 0.35355338, %v937_v12  ;;  %3873 = vmatmul.msk.f32.gmra.mxu0 %vm668_vm1, %v883_v11 }
 0x42f   : > { %v999_v15 = vadd.f32 %v996_v13, %v4610_v59 }
 0x431   : > { %v1002_v17 = vsel %vm668_vm1, %v999_v15, -inf }
 0x432   : > { %1003 = vmax.xlane.f32.xlu0 %v1002_v17  ;;  %v965_v19 = vpop.f32.mrf.mxu2 }
 0x433   : > { %v997_v20 = vmul.f32 0.35355338, %v965_v19 }
 0x435   : > { %v1000_v21 = vadd.f32 %v997_v20, %v4584_v39 }
 0x437   : > { %v1005_v23 = vsel %vm668_vm1, %v1000_v21, -inf }
 0x438   : > { %1006 = vmax.xlane.f32.xlu2 %v1005_v23 }
 0x462   : > { %v1028_v24 = vpop.xlane.xlu1 %1027 }
 0x463   : > { %4139 = vrcp.f32 %v1028_v24  ;;  %v1070_v33 = vand.u32 2147483648, %v1028_v24  ;;  %v1068_v35 = vand.u32 2147483647, %v1028_v24  ;;  %vm1064_vm15 = vweird.f32 %v1028_v24 }
 0x465   : > { %v1071_v37 = vor.u32 1.1754944e-38, %v1070_v33  ;;  %vm1069_vm3 = vcmp.eq.f32.partialorder %v1068_v35, 8.507059e+37 }
 0x469   : > { %v4140_v27 = vpop.eup %4139 }
 0x46a   : > { %v1060_v29 = vmul.f32 %v4140_v27, %v1028_v24  ;;  %vm1065_vm14 = vweird.f32 %v4140_v27 }
 0x46b   : > { %vm1066_vm2 = vmor %vm1064_vm15, %vm1065_vm14 }
 0x46c   : > { %v1061_v31 = vsub.f32 1.0, %v1060_v29 }
 0x46e   : > { %v1062_v34 = vmul.f32 %v4140_v27, %v1061_v31 }
 0x470   : > { %v1063_v36 = vadd.f32 %v4140_v27, %v1062_v34 }
 0x472   : > { %v1067_v38 = vsel %vm1066_vm2, %v4140_v27, %v1063_v36 }
 0x473   : > { %v1072_v40 = vsel %vm1069_vm3, %v1071_v37, %v1067_v38 }
 0x474   : > { %v1073_v41 = vmul.f32 %v4138_v2, %v1072_v40 }
 0x476   : > { %3860 = vmatmul.msk.f32.vlgmr.msrb.gmra.mxu3 %vm668_vm1, %v1073_v41 }
 0x477   : > { %3877 = vmatpush.xpose.msk.msrb.mxu3 %vm668_vm1, %v1281_v42 }
 0x47a   : > { %v1307_v45 = vpop.permute.xlu1 %1306 }
 0x47e   : > { %3876 = vmatmul.msk.f32.vlgmr.msra.gmra.mxu3 %vm668_vm1, %v1251_v30 }
 0x47f   : > { %3879 = vmatpush.xpose.msk.msra.mxu3 %vm668_vm1, %v1309_v43 }
 0x486   : > { %3878 = vmatmul.msk.f32.vlgmr.msrb.gmra.mxu3 %vm668_vm1, %v1279_v44 }
 0x48e   : > { %3880 = vmatmul.msk.f32.vlgmr.msra.gmra.mxu3 %vm668_vm1, %v1307_v45 }
 0x4a5   : > { %v1004_v46 = vpop.xlane.xlu0 %1003 }
 0x4a6   : > { %v1011_v47 = vsub.f32 %v999_v15, %v1004_v46 }
 0x4a8   : > { %v1014_v48 = vmul.f32 1.442695, %v1011_v47 }
 0x4aa   : > { %4141 = vpow2.f32 %v1014_v48  ;;  %v4092_v48 = vpack.i.bf16 %v4555_v26, %v4551_v25 }
 0x4ab   : > { %v1007_v49 = vpop.xlane.xlu2 %1006 }
 0x4ac   : > { %v1012_v50 = vsub.f32 %v1000_v21, %v1007_v49 }
 0x4ae   : > { %v1016_v51 = vmul.f32 1.442695, %v1012_v50 }
 0x4b0   : > { %v4142_v52 = vpop.eup %4141  ;;  %4143 = vpow2.f32 %v1016_v51 }
 0x4b1   : > { %v1020_v53 = vsel %vm668_vm1, %v4142_v52, 0.0 }
 0x4b2   : > { %1021 = vadd.xlane.f32.xlu1 %v1020_v53 }
 0x4b6   : > { %v4144_v55 = vpop.eup %4143 }
 0x4b7   : > { %v1023_v56 = vsel %vm668_vm1, %v4144_v55, 0.0 }
 0x4b8   : > { %1024 = vadd.xlane.f32.xlu0 %v1023_v56 }
 0x4cb   : > { %1162 = vrot.lane.b32.xlu1 %v4648_v6, %s4330_s30 }
 0x4cc   : > { %4088 = vrot.lane.b32.xlu0 %v4087_v57, %s5582_s25  ;;  %s5599_s25 = smov 112  }
 0x4f9   : > { %v4695_v58 = vpop.f32.mrf.mxu3 }
 0x501   : > { %v1275_v60 = vpop.f32.mrf.mxu3 }
 0x502   : > { %v1334_v61 = vmul.f32 0.35355338, %v1275_v60 }
 0x504   : > { %v4698_v62 = vadd.f32 %v1334_v61, %v4610_v59 }
 0x506   : > { %v1340_v0 = vsel %vm668_vm1, %v4698_v62, -inf }
 0x507   : > { %1341 = vmax.xlane.f32.xlu2 %v1340_v0 }
 0x509   : > { %v1303_v1 = vpop.f32.mrf.mxu3 }
 0x50a   : > { %v1335_v40 = vmul.f32 0.35355338, %v1303_v1 }
 0x50c   : > { %v1338_v45 = vadd.f32 %v1335_v40, %v4584_v39 }
 0x50e   : > { %v1343_v46 = vsel %vm668_vm1, %v1338_v45, -inf }
 0x511   : > { %v1331_v3 = vpop.f32.mrf.mxu3 }
 0x512   : > { %v1336_v4 = vmul.f32 0.35355338, %v1331_v3 }
 0x514   : > { %v4703_v54 = vadd.f32 %v1336_v4, %v4579_v32 }
 0x516   : > { %v1346_v5 = vsel %vm668_vm1, %v4703_v54, -inf }
 0x517   : > { %1347 = vmax.xlane.f32.xlu1 %v1346_v5 }
 0x51f   : > { %1160 = vrot.lane.b32.xlu2 %v4655_v7, %s4330_s30 }
 0x525   : > { %v1022_v2 = vpop.xlane.xlu1 %1021 }
 0x526   : > { %4145 = vrcp.f32 %v1022_v2  ;;  %v1040_v21 = vand.u32 2147483648, %v1022_v2  ;;  %vm1034_vm6 = vweird.f32 %v1022_v2  ;;  %v1038_v27 = vand.u32 2147483647, %v1022_v2 }
 0x528   : > { %v1041_v33 = vor.u32 1.1754944e-38, %v1040_v21  ;;  %vm1039_vm10 = vcmp.eq.f32.partialorder %v1038_v27, 8.507059e+37 }
 0x52b   : > { %v1025_v63 = vpop.xlane.xlu0 %1024 }
 0x52c   : > { %v4146_v10 = vpop.eup %4145  ;;  %4147 = vrcp.f32 %v1025_v63  ;;  %v1055_v24 = vand.u32 2147483648, %v1025_v63  ;;  %v1053_v29 = vand.u32 2147483647, %v1025_v63  ;;  %vm1049_vm8 = vweird.f32 %v1025_v63 }
 0x52d   : > { %v1030_v11 = vmul.f32 %v4146_v10, %v1022_v2  ;;  %vm1035_vm4 = vweird.f32 %v4146_v10 }
 0x52e   : > { %vm1036_vm7 = vmor %vm1034_vm6, %vm1035_vm4  ;;  %v1056_v35 = vor.u32 1.1754944e-38, %v1055_v24  ;;  %vm1054_vm11 = vcmp.eq.f32.partialorder %v1053_v29, 8.507059e+37 }
 0x52f   : > { %v1031_v12 = vsub.f32 1.0, %v1030_v11 }
 0x530   : > { %1158 = vrot.lane.b32.xlu1 %v4663_v8, %s4330_s30 }
 0x531   : > { %v1032_v15 = vmul.f32 %v4146_v10, %v1031_v12 }
 0x532   : > { %v4148_v13 = vpop.eup %4147 }
 0x533   : > { %v1045_v17 = vmul.f32 %v4148_v13, %v1025_v63  ;;  %v1033_v20 = vadd.f32 %v4146_v10, %v1032_v15  ;;  %vm1050_vm5 = vweird.f32 %v4148_v13 }
 0x534   : > { %vm1051_vm9 = vmor %vm1049_vm8, %vm1050_vm5 }
 0x535   : > { %v1046_v19 = vsub.f32 1.0, %v1045_v17  ;;  %v1037_v31 = vsel %vm1036_vm7, %v4146_v10, %v1033_v20 }
 0x536   : > { %v1042_v36 = vsel %vm1039_vm10, %v1041_v33, %v1037_v31 }
 0x537   : > { %v1047_v23 = vmul.f32 %v4148_v13, %v1046_v19  ;;  %v1043_v43 = vmul.f32 %v4142_v52, %v1042_v36 }
 0x539   : > { %v1048_v30 = vadd.f32 %v4148_v13, %v1047_v23 }
 0x53b   : > { %v1052_v34 = vsel %vm1051_vm9, %v4148_v13, %v1048_v30 }
 0x53c   : > { %v1057_v37 = vsel %vm1054_vm11, %v1056_v35, %v1052_v34 }
 0x53d   : > { %v1058_v44 = vmul.f32 %v4144_v55, %v1057_v37  ;;  %v1163_v47 = vpop.permute.xlu1 %1162 }
 0x53e   : > { %v4089_v38 = vpop.permute.xlu0 %4088 }
 0x53f   : > { %v4091_v41 = vunpack.i.h.bf16 %v4089_v38  ;;  %v4090_v42 = vunpack.i.l.bf16 %v4089_v38 }
 0x541   : > { %1095 = vmatpush.msrb.mxu1 %v4090_v42  ;;  %1121 = vmatpush.msrb.mxu2 %v4091_v41 }
 0x542   : > { %3858 = vmatmul.msk.f32.vlgmr.msrb.gmra.mxu1 %vm668_vm1, %v1043_v43  ;;  %3859 = vmatmul.msk.f32.vlgmr.msrb.gmra.mxu2 %vm668_vm1, %v1058_v44 }
 0x543   : > { %4024 = vmatpush.xpose.msk.msra.mxu2 %vm668_vm1, %v4648_v6  ;;  %3861 = vmatpush.xpose.msk.msra.mxu1 %vm668_vm1, %v1163_v47 }
 0x547   : > { %4025 = vmatpush.xpose.msk.msra.mxu2 %vm668_vm1, %v4655_v7 }
 0x548   : > { %1344 = vmax.xlane.f32.xlu2 %v1343_v46 }
 0x54b   : > { %4026 = vmatpush.xpose.msk.msra.mxu2 %vm668_vm1, %v4663_v8 }
 0x54f   : > { %4027 = vmatpush.xpose.msk.msra.mxu2 %vm668_vm1, %v4670_v9 }
 0x552   : > { %3874 = vmatmul.msk.f32.vlgmr.msra.gmra.mxu2 %vm668_vm1, %v4630_v28 }
 0x560   : > { %1156 = vrot.lane.b32.xlu2 %v4670_v9, %s4330_s30 }
 0x568   : > { %1412 = vrot.lane.b32.xlu2 %v4547_v22, %s5578_s29 }
 0x570   : > { %1546 = vrot.lane.b32.xlu2 %v4547_v22, %s5576_s26 }
 0x578   : > { %4093 = vrot.lane.b32.xlu2 %v4092_v48, %s5578_s29  ;;  %s5596_s29 = smov 88  }
 0x57a   : > { %v1342_v28 = vpop.xlane.xlu2 %1341 }
 0x57b   : > { %v1349_v49 = vsub.f32 %v4698_v62, %v1342_v28 }
 0x57d   : > { %v1352_v50 = vmul.f32 1.442695, %v1349_v49 }
 0x57f   : > { %4149 = vpow2.f32 %v1352_v50 }
 0x580   : > { %1602 = vrot.lane.b32.xlu2 %v4551_v25, %s5576_s26 }
 0x582   : > { %v1161_v51 = vpop.permute.xlu2 %1160 }
 0x583   : > { %3862 = vmatpush.xpose.msk.msra.mxu1 %vm668_vm1, %v1161_v51 }
 0x585   : > { %v4150_v52 = vpop.eup %4149 }
 0x586   : > { %v1358_v53 = vsel %vm668_vm1, %v4150_v52, 0.0 }
 0x587   : > { %1359 = vadd.xlane.f32.xlu0 %v1358_v53 }
 0x588   : > { %1574 = vrot.lane.b32.xlu2 %v4555_v26, %s5576_s26  ;;  %s5598_s26 = smov 56  }
 0x58a   : > { %v1348_v55 = vpop.xlane.xlu1 %1347 }
 0x58b   : > { %v1351_v56 = vsub.f32 %v4703_v54, %v1348_v55 }
 0x58d   : > { %v1356_v57 = vmul.f32 1.442695, %v1351_v56 }
 0x58f   : > { %4151 = vpow2.f32 %v1356_v57 }
 0x595   : > { %v4743_v60 = vpop.eup %4151 }
 0x596   : > { %v1364_v61 = vsel %vm668_vm1, %v4743_v60, 0.0 }
 0x597   : > { %1365 = vadd.xlane.f32.xlu1 %v1364_v61 }
 0x5a2   : > { %v1159_v62 = vpop.permute.xlu1 %1158 }
 0x5a3   : > { %3863 = vmatpush.xpose.msk.msra.mxu1 %vm668_vm1, %v1159_v62 }
 0x5bb   : > { %v1345_v0 = vpop.xlane.xlu2 %1344 }
 0x5bc   : > { %v1350_v1 = vsub.f32 %v1338_v45, %v1345_v0 }
 0x5be   : > { %v1354_v3 = vmul.f32 1.442695, %v1350_v1 }
 0x5bf   : > { %v1097_v54 = vpop.f32.mrf.mxu1 }
 0x5c0   : > { %4153 = vpow2.f32 %v1354_v3 }
 0x5c3   : > { %v1157_v4 = vpop.permute.xlu2 %1156 }
 0x5c4   : > { %3864 = vmatpush.xpose.msk.msra.mxu1 %vm668_vm1, %v1157_v4 }
 0x5c5   : > { %v1123_v10 = vpop.f32.mrf.mxu2 }
 0x5c6   : > { %v4749_v5 = vpop.eup %4153 }
 0x5c7   : > { %3865 = vmatmul.msk.f32.vlgmr.msra.gmra.mxu1 %vm668_vm1, %v1097_v54  ;;  %v1361_v2 = vsel %vm668_vm1, %v4749_v5, 0.0 }
 0x5c8   : > { %1362 = vadd.xlane.f32.xlu0 %v1361_v2 }
 0x5cb   : > { %v1413_v63 = vpop.permute.xlu2 %1412 }
 0x5cc   : > { %1433 = vmatpush.msrb.mxu3 %v1413_v63 }
 0x5cf   : > { %3866 = vmatmul.msk.f32.gmra.mxu1 %vm668_vm1, %v1123_v10 }
 0x5d3   : > { %v1547_v11 = vpop.permute.xlu2 %1546 }
 0x5d4   : > { %3891 = vmatpush.xpose.msk.msra.mxu3 %vm668_vm1, %v1547_v11 }
 0x5d5   : > { %v4778_v2 = vpop.f32.mrf.mxu2 }
 0x5d7   : > { %3867 = vmatmul.msk.f32.gmra.mxu1 %vm668_vm1, %v4695_v58 }
 0x5db   : > { %v4094_v12 = vpop.permute.xlu2 %4093 }
 0x5dc   : > { %v4096_v13 = vunpack.i.h.bf16 %v4094_v12  ;;  %v4095_v15 = vunpack.i.l.bf16 %v4094_v12  ;;  %1544 = vrot.lane.b32.xlu0 %v4547_v22, %s5574_s18 }
 0x5de   : > { %1459 = vmatpush.msrb.mxu1 %v4096_v13  ;;  %1485 = vmatpush.msrb.mxu2 %v4095_v15 }
 0x5e3   : > { %v1603_v17 = vpop.permute.xlu2 %1602 }
 0x5e4   : > { %1600 = vrot.lane.b32.xlu0 %v4551_v25, %s5574_s18  ;;  %3895 = vmatpush.xpose.msk.msra.mxu2 %vm668_vm1, %v1603_v17 }
 0x5eb   : > { %v1575_v19 = vpop.permute.xlu2 %1574 }
 0x5ec   : > { %1572 = vrot.lane.b32.xlu0 %v4555_v26, %s5574_s18  ;;  %3893 = vmatpush.xpose.msk.msra.mxu1 %vm668_vm1, %v1575_v19 }
 0x5fa   : > { %v1360_v58 = vpop.xlane.xlu0 %1359 }
 0x5fb   : > { %4155 = vrcp.f32 %v1360_v58  ;;  %v1378_v24 = vand.u32 2147483648, %v1360_v58  ;;  %v1376_v29 = vand.u32 2147483647, %v1360_v58  ;;  %vm1372_vm13 = vweird.f32 %v1360_v58 }
 0x5fd   : > { %v1379_v31 = vor.u32 1.1754944e-38, %v1378_v24  ;;  %vm1377_vm15 = vcmp.eq.f32.partialorder %v1376_v29, 8.507059e+37 }
 0x601   : > { %v4156_v20 = vpop.eup %4155 }
 0x602   : > { %v1368_v21 = vmul.f32 %v4156_v20, %v1360_v58  ;;  %vm1373_vm12 = vweird.f32 %v4156_v20 }
 0x603   : > { %vm1374_vm14 = vmor %vm1372_vm13, %vm1373_vm12 }
 0x604   : > { %v1369_v23 = vsub.f32 1.0, %v1368_v21 }
 0x606   : > { %v1370_v27 = vmul.f32 %v4156_v20, %v1369_v23 }
 0x608   : > { %v1371_v30 = vadd.f32 %v4156_v20, %v1370_v27 }
 0x60a   : > { %v1375_v33 = vsel %vm1374_vm14, %v4156_v20, %v1371_v30  ;;  %v1366_v34 = vpop.xlane.xlu1 %1365  ;;  %v4097_v30 = vpack.i.bf16 %v4551_v25, %v4555_v26 }
 0x60b   : > { %v1380_v35 = vsel %vm1377_vm15, %v1379_v31, %v1375_v33  ;;  %4157 = vrcp.f32 %v1366_v34  ;;  %v1408_v41 = vand.u32 2147483648, %v1366_v34  ;;  %v1406_v43 = vand.u32 2147483647, %v1366_v34 }
 0x60c   : > { %v1381_v36 = vmul.f32 %v4150_v52, %v1380_v35  ;;  %vm1402_vm3 = vweird.f32 %v1366_v34 }
 0x60d   : > { %v1409_v45 = vor.u32 1.1754944e-38, %v1408_v41  ;;  %vm1407_vm5 = vcmp.eq.f32.partialorder %v1406_v43, 8.507059e+37 }
 0x60e   : > { %3881 = vmatmul.msk.f32.vlgmr.msrb.gmra.mxu3 %vm668_vm1, %v1381_v36 }
 0x611   : > { %v4158_v37 = vpop.eup %4157 }
 0x612   : > { %v1398_v38 = vmul.f32 %v4158_v37, %v1366_v34  ;;  %vm1403_vm2 = vweird.f32 %v4158_v37 }
 0x613   : > { %vm1404_vm4 = vmor %vm1402_vm3, %vm1403_vm2 }
 0x614   : > { %v1399_v40 = vsub.f32 1.0, %v1398_v38 }
 0x616   : > { %v1400_v42 = vmul.f32 %v4158_v37, %v1399_v40 }
 0x618   : > { %v1401_v44 = vadd.f32 %v4158_v37, %v1400_v42 }
 0x61a   : > { %v1405_v46 = vsel %vm1404_vm4, %v4158_v37, %v1401_v44 }
 0x61b   : > { %v1410_v47 = vsel %vm1407_vm5, %v1409_v45, %v1405_v46 }
 0x61c   : > { %v1411_v48 = vmul.f32 %v4743_v60, %v1410_v47 }
 0x61e   : > { %3883 = vmatmul.msk.f32.vlgmr.msrb.gmra.mxu2 %vm668_vm1, %v1411_v48 }
 0x63b   : > { %v1363_v28 = vpop.xlane.xlu0 %1362 }
 0x63c   : > { %4159 = vrcp.f32 %v1363_v28  ;;  %v1393_v52 = vand.u32 2147483648, %v1363_v28  ;;  %v1391_v55 = vand.u32 2147483647, %v1363_v28  ;;  %vm1387_vm7 = vweird.f32 %v1363_v28 }
 0x63e   : > { %v1394_v57 = vor.u32 1.1754944e-38, %v1393_v52  ;;  %vm1392_vm9 = vcmp.eq.f32.partialorder %v1391_v55, 8.507059e+37 }
 0x642   : > { %v4160_v49 = vpop.eup %4159 }
 0x643   : > { %v1383_v50 = vmul.f32 %v4160_v49, %v1363_v28  ;;  %vm1388_vm6 = vweird.f32 %v4160_v49 }
 0x644   : > { %vm1389_vm8 = vmor %vm1387_vm7, %vm1388_vm6  ;;  %v4774_v4 = vpop.f32.mrf.mxu1 }
 0x645   : > { %v1384_v51 = vsub.f32 1.0, %v1383_v50 }
 0x647   : > { %v1385_v53 = vmul.f32 %v4160_v49, %v1384_v51 }
 0x649   : > { %v1386_v56 = vadd.f32 %v4160_v49, %v1385_v53 }
 0x64b   : > { %v1390_v61 = vsel %vm1389_vm8, %v4160_v49, %v1386_v56 }
 0x64c   : > { %v1395_v62 = vsel %vm1392_vm9, %v1394_v57, %v1390_v61  ;;  %v4776_v54 = vpop.f32.mrf.mxu1  ;;  %vm1990_vm9 = vcmask 523264  }
 0x64d   : > { %v1396_v60 = vmul.f32 %v4749_v5, %v1395_v62 }
 0x64e   : > { %v1545_v0 = vpop.permute.xlu0 %1544 }
 0x64f   : > { %3882 = vmatmul.msk.f32.vlgmr.msrb.gmra.mxu1 %vm668_vm1, %v1396_v60  ;;  %3892 = vmatmul.msk.f32.vlgmr.msra.gmra.mxu3 %vm668_vm1, %v1545_v0 }
 0x654   : > { %v4782_v5 = vpop.f32.mrf.mxu1 }
 0x656   : > { %v1601_v1 = vpop.permute.xlu0 %1600 }
 0x657   : > { %3896 = vmatmul.msk.f32.vlgmr.msra.gmra.mxu2 %vm668_vm1, %v1601_v1 }
 0x65e   : > { %v1573_v3 = vpop.permute.xlu0 %1572 }
 0x65f   : > { %3894 = vmatmul.msk.f32.vlgmr.msra.gmra.mxu1 %vm668_vm1, %v1573_v3 }
 0x691   : > { %v4780_v63 = vpop.f32.mrf.mxu3 }
 0x6a1   : > { %v4784_v10 = vpop.f32.mrf.mxu2 }
 0x6cc   : > { %v4786_v13 = vpop.f32.mrf.mxu1 }
 0x6d2   : > { %v1569_v11 = vpop.f32.mrf.mxu3 }
 0x6d3   : > { %v1628_v12 = vmul.f32 0.35355338, %v1569_v11 }
 0x6d5   : > { %v1631_v15 = vadd.f32 %v1628_v12, %v4610_v59 }
 0x6d7   : > { %v1634_v17 = vsel %vm668_vm1, %v1631_v15, -inf }
 0x6d8   : > { %1635 = vmax.xlane.f32.xlu1 %v1634_v17 }
 0x6da   : > { %v1625_v19 = vpop.f32.mrf.mxu2 }
 0x6db   : > { %v1630_v58 = vmul.f32 0.35355338, %v1625_v19 }
 0x6dc   : > { %v1597_v20 = vpop.f32.mrf.mxu1 }
 0x6dd   : > { %v1629_v21 = vmul.f32 0.35355338, %v1597_v20  ;;  %v1633_v23 = vadd.f32 %v1630_v58, %v4579_v32 }
 0x6df   : > { %v1640_v24 = vsel %vm668_vm1, %v1633_v23, -inf  ;;  %v1632_v27 = vadd.f32 %v1629_v21, %v4584_v39 }
 0x6e0   : > { %1641 = vmax.xlane.f32.xlu0 %v1640_v24 }
 0x6e1   : > { %v1637_v29 = vsel %vm668_vm1, %v1632_v27, -inf }
 0x6e2   : > { %1638 = vmax.xlane.f32.xlu2 %v1637_v29 }
 0x6f4   : > { %1790 = vrot.lane.b32.xlu0 %v4648_v6, %s5574_s18 }
 0x6fa   : > { %4098 = vrot.lane.b32.xlu2 %v4097_v30, %s5572_s17 }
 0x6fc   : > { %1786 = vrot.lane.b32.xlu0 %v4663_v8, %s5574_s18 }
 0x702   : > { %1494 = vrot.lane.b32.xlu2 %v4655_v7, %s5580_s22 }
 0x704   : > { %1490 = vrot.lane.b32.xlu0 %v4670_v9, %s5580_s22 }
 0x70a   : > { %1784 = vrot.lane.b32.xlu2 %v4670_v9, %s5574_s18 }
 0x74b   : > { %v1636_v31 = vpop.xlane.xlu1 %1635 }
 0x74c   : > { %v1643_v33 = vsub.f32 %v1631_v15, %v1636_v31 }
 0x74e   : > { %v1646_v34 = vmul.f32 1.442695, %v1643_v33 }
 0x750   : > { %4161 = vpow2.f32 %v1646_v34 }
 0x753   : > { %v1642_v25 = vpop.xlane.xlu0 %1641 }
 0x754   : > { %v1645_v38 = vsub.f32 %v1633_v23, %v1642_v25 }
 0x755   : > { %v1639_v26 = vpop.xlane.xlu2 %1638 }
 0x756   : > { %v4807_v35 = vpop.eup %4161  ;;  %v1644_v36 = vsub.f32 %v1632_v27, %v1639_v26  ;;  %v1650_v41 = vmul.f32 1.442695, %v1645_v38 }
 0x757   : > { %v1652_v37 = vsel %vm668_vm1, %v4807_v35, 0.0 }
 0x758   : > { %v1648_v40 = vmul.f32 1.442695, %v1644_v36  ;;  %1653 = vadd.xlane.f32.xlu1 %v1652_v37 }
 0x75a   : > { %4163 = vpow2.f32 %v1648_v40 }
 0x75b   : > { %4165 = vpow2.f32 %v1650_v41 }
 0x75d   : > { %v4099_v42 = vpop.permute.xlu2 %4098 }
 0x75e   : > { %v4101_v43 = vunpack.i.h.bf16 %v4099_v42  ;;  %v4100_v9 = vunpack.i.l.bf16 %v4099_v42 }
 0x760   : > { %v4164_v44 = vpop.eup %4163  ;;  %1753 = vmatpush.msrb.mxu1 %v4100_v9  ;;  %1779 = vmatpush.msrb.mxu2 %v4101_v43 }
 0x761   : > { %v1655_v45 = vsel %vm668_vm1, %v4164_v44, 0.0  ;;  %v4166_v46 = vpop.eup %4165 }
 0x762   : > { %1656 = vadd.xlane.f32.xlu1 %v1655_v45  ;;  %v1658_v47 = vsel %vm668_vm1, %v4166_v46, 0.0  ;;  %v1241_v45 = vpop.f32.mrf.mxu0 }
 0x765   : > { %v1495_v37 = vpop.permute.xlu2 %1494 }
 0x766   : > { %v1791_v26 = vpop.permute.xlu0 %1790 }
 0x76a   : > { %1659 = vadd.xlane.f32.xlu1 %v1658_v47 }
 0x76d   : > { %v1785_v42 = vpop.permute.xlu2 %1784 }
 0x76e   : > { %v1787_v40 = vpop.permute.xlu0 %1786 }
 0x783   : > { %1706 = vrot.lane.b32.xlu1 %v4547_v22, %s5572_s17  ;;  %s500_s17 = sand.u32 1, %s4318_s19  }
 0x78b   : > { %1496 = vrot.lane.b32.xlu1 %v4648_v6, %s5580_s22 }
 0x793   : > { %1788 = vrot.lane.b32.xlu1 %v4655_v7, %s5574_s18  ;;  %s5603_s18 = smov 104  }
 0x79b   : > { %1492 = vrot.lane.b32.xlu1 %v4663_v8, %s5580_s22  ;;  %s5600_s22 = smov 80  }
 0x7cb   : > { %v1654_v48 = vpop.xlane.xlu1 %1653 }
 0x7cc   : > { %4167 = vrcp.f32 %v1654_v48  ;;  %v1672_v20 = vand.u32 2147483648, %v1654_v48  ;;  %vm1666_vm4 = vweird.f32 %v1654_v48  ;;  %v1670_v23 = vand.u32 2147483647, %v1654_v48 }
 0x7ce   : > { %v1673_v31 = vor.u32 1.1754944e-38, %v1672_v20  ;;  %vm1671_vm7 = vcmp.eq.f32.partialorder %v1670_v23, 8.507059e+37 }
 0x7d2   : > { %v4168_v49 = vpop.eup %4167 }
 0x7d3   : > { %v1662_v53 = vmul.f32 %v4168_v49, %v1654_v48  ;;  %vm1667_vm15 = vweird.f32 %v4168_v49 }
 0x7d4   : > { %vm1668_vm6 = vmor %vm1666_vm4, %vm1667_vm15 }
 0x7d5   : > { %v1657_v28 = vpop.xlane.xlu1 %1656  ;;  %v1663_v57 = vsub.f32 1.0, %v1662_v53 }
 0x7d6   : > { %4169 = vrcp.f32 %v1657_v28  ;;  %v1687_v55 = vand.u32 2147483648, %v1657_v28  ;;  %v1685_v6 = vand.u32 2147483647, %v1657_v28  ;;  %vm1681_vm11 = vweird.f32 %v1657_v28 }
 0x7d7   : > { %v1664_v1 = vmul.f32 %v4168_v49, %v1663_v57 }
 0x7d8   : > { %v1688_v8 = vor.u32 1.1754944e-38, %v1687_v55  ;;  %vm1686_vm13 = vcmp.eq.f32.partialorder %v1685_v6, 8.507059e+37 }
 0x7d9   : > { %v1665_v19 = vadd.f32 %v4168_v49, %v1664_v1 }
 0x7db   : > { %v1669_v29 = vsel %vm1668_vm6, %v4168_v49, %v1665_v19 }
 0x7dc   : > { %v4170_v50 = vpop.eup %4169  ;;  %v1674_v33 = vsel %vm1671_vm7, %v1673_v31, %v1669_v29 }
 0x7dd   : > { %v1677_v51 = vmul.f32 %v4170_v50, %v1657_v28  ;;  %v1660_v52 = vpop.xlane.xlu1 %1659  ;;  %vm1682_vm10 = vweird.f32 %v4170_v50  ;;  %v1675_v25 = vmul.f32 %v4807_v35, %v1674_v33  ;;  %v1491_v35 = vpop.permute.xlu0 %1490 }
 0x7de   : > { %4171 = vrcp.f32 %v1660_v52  ;;  %vm1683_vm12 = vmor %vm1681_vm11, %vm1682_vm10  ;;  %v1702_v12 = vand.u32 2147483648, %v1660_v52  ;;  %v1700_v17 = vand.u32 2147483647, %v1660_v52  ;;  %vm1696_vm2 = vweird.f32 %v1660_v52 }
 0x7df   : > { %v1678_v22 = vsub.f32 1.0, %v1677_v51 }
 0x7e0   : > { %v1703_v21 = vor.u32 1.1754944e-38, %v1702_v12  ;;  %vm1701_vm5 = vcmp.eq.f32.partialorder %v1700_v17, 8.507059e+37 }
 0x7e1   : > { %v1679_v56 = vmul.f32 %v4170_v50, %v1678_v22 }
 0x7e3   : > { %v1680_v7 = vadd.f32 %v4170_v50, %v1679_v56 }
 0x7e4   : > { %v4172_v61 = vpop.eup %4171 }
 0x7e5   : > { %v1684_v62 = vsel %vm1683_vm12, %v4170_v50, %v1680_v7  ;;  %v1692_v60 = vmul.f32 %v4172_v61, %v1660_v52  ;;  %vm1697_vm14 = vweird.f32 %v4172_v61 }
 0x7e6   : > { %v1689_v0 = vsel %vm1686_vm13, %v1688_v8, %v1684_v62  ;;  %vm1698_vm3 = vmor %vm1696_vm2, %vm1697_vm14 }
 0x7e7   : > { %v1693_v3 = vsub.f32 1.0, %v1692_v60  ;;  %v1690_v11 = vmul.f32 %v4164_v44, %v1689_v0 }
 0x7e9   : > { %v1694_v15 = vmul.f32 %v4172_v61, %v1693_v3  ;;  %3898 = vmatmul.msk.f32.vlgmr.msrb.gmra.mxu1 %vm668_vm1, %v1690_v11  ;;  %v4339_v3 = vmov 32.0  }
 0x7ea   : > { %4173 = vrcp.f32 %v4339_v3 }
 0x7eb   : > { %v1695_v58 = vadd.f32 %v4172_v61, %v1694_v15 }
 0x7ed   : > { %v1699_v24 = vsel %vm1698_vm3, %v4172_v61, %v1695_v58 }
 0x7ee   : > { %v1704_v27 = vsel %vm1701_vm5, %v1703_v21, %v1699_v24 }
 0x7ef   : > { %v1705_v30 = vmul.f32 %v4166_v46, %v1704_v27 }
 0x7f0   : > { %v4174_v11 = vpop.eup %4173 }
 0x7f1   : > { %3899 = vmatmul.msk.f32.vlgmr.msrb.gmra.mxu2 %vm668_vm1, %v1705_v30  ;;  %v1855_v12 = vmul.f32 32.0, %v4174_v11  ;;  %vm1859_vm8 = vweird.f32 %v4174_v11 }
 0x7f3   : > { %v1856_v15 = vsub.f32 1.0, %v1855_v12 }
 0x7f5   : > { %v1707_v34 = vpop.permute.xlu1 %1706 }
 0x7f6   : > { %1727 = vmatpush.msrb.mxu3 %v1707_v34 }
 0x7f7   : > { %3897 = vmatmul.msk.f32.vlgmr.msrb.gmra.mxu3 %vm668_vm1, %v1675_v25 }
 0x7f8   : > { %3900 = vmatpush.xpose.msk.msra.mxu3 %vm668_vm1, %v1791_v26 }
 0x7fd   : > { %v1497_v36 = vpop.permute.xlu1 %1496 }
 0x7fe   : > { %3884 = vmatpush.xpose.msk.msra.mxu0 %vm668_vm1, %v1497_v36  ;;  %v566_v36 = vld [vmem:[%s5555_s11 + $0x30] sm:$0xff] }
 0x802   : > { %3885 = vmatpush.xpose.msk.msra.mxu0 %vm668_vm1, %v1495_v37  ;;  %v565_v37 = vld [vmem:[%s5555_s11 + $0x28] sm:$0xff] }
 0x805   : > { %v1789_v38 = vpop.permute.xlu1 %1788 }
 0x806   : > { %3901 = vmatpush.xpose.msk.msra.mxu3 %vm668_vm1, %v1789_v38  ;;  %v564_v38 = vld [vmem:[%s5555_s11 + $0x20] sm:$0xff] }
 0x80a   : > { %3902 = vmatpush.xpose.msk.msra.mxu3 %vm668_vm1, %v1787_v40  ;;  %v563_v40 = vld [vmem:[%s5555_s11 + $0x18] sm:$0xff] }
 0x80d   : > { %v1493_v41 = vpop.permute.xlu1 %1492 }
 0x80e   : > { %3886 = vmatpush.xpose.msk.msra.mxu0 %vm668_vm1, %v1493_v41  ;;  %3903 = vmatpush.xpose.msk.msra.mxu3 %vm668_vm1, %v1785_v42  ;;  %v562_v41 = vld [vmem:[%s5555_s11 + $0x10] sm:$0xff]  ;;  %v560_v42 = vld [vmem:[%s5555_s11] sm:$0xff] }
 0x812   : > { %3887 = vmatpush.xpose.msk.msra.mxu0 %vm668_vm1, %v1491_v35  ;;  %v561_v35 = vld [vmem:[%s5555_s11 + $0x8] sm:$0xff] }
 0x815   : > { %3888 = vmatmul.msk.f32.vlgmr.msra.gmra.mxu0 %vm668_vm1, %v4780_v63  ;;  %v1244_v63 = vpop.f32.mrf.mxu0 }
 0x816   : > { %v1245_v52 = vadd.f32 %v1244_v63, %v4776_v54 }
 0x81d   : > { %3889 = vmatmul.msk.f32.gmra.mxu0 %vm668_vm1, %v4786_v13  ;;  %v555_v13 = vld [vmem:[%s5550_s6] sm:$0x3] }
 0x81e   : > { %v1838_v48 = vperm.slane %v555_v13, 0 }
 0x825   : > { %3890 = vmatmul.msk.f32.gmra.mxu0 %vm668_vm1, %v4784_v10  ;;  %v1242_v10 = vadd.f32 %v1241_v45, %v4774_v4  ;;  %v1248_v4 = vadd.f32 %v4778_v2, %v4782_v5  ;;  %v1857_v2 = vmul.f32 %v4174_v11, %v1856_v15 }
 0x827   : > { %v1858_v5 = vadd.f32 %v4174_v11, %v1857_v2 }
 0x829   : > { %v4859_v17 = vsel %vm1859_vm8, %v4174_v11, %v1858_v5 }
 0x866   : > { %v1755_v9 = vpop.f32.mrf.mxu1 }
 0x874   : > { %v1781_v44 = vpop.f32.mrf.mxu2 }
 0x87a   : > { %v1729_v43 = vpop.f32.mrf.mxu3 }
 0x87b   : > { %3904 = vmatmul.msk.f32.vlgmr.msra.gmra.mxu3 %vm668_vm1, %v1729_v43 }
 0x883   : > { %3905 = vmatmul.msk.f32.gmra.mxu3 %vm668_vm1, %v1755_v9 }
 0x88b   : > { %3906 = vmatmul.msk.f32.gmra.mxu3 %vm668_vm1, %v1781_v44 }
 0x892   : > { %v1532_v46 = vpop.f32.mrf.mxu0 }
 0x893   : > { %v1541_v47 = vadd.f32 %v1532_v46, %v1242_v10 }
 0x89a   : > { %v1535_v50 = vpop.f32.mrf.mxu0 }
 0x89b   : > { %v1542_v22 = vadd.f32 %v1535_v50, %v1245_v52  ;;  %v556_v52 = vld [vmem:[%s5551_s7] sm:$0x3] }
 0x8a2   : > { %v1538_v7 = vpop.f32.mrf.mxu0 }
 0x8a3   : > { %v1543_v8 = vadd.f32 %v1538_v7, %v1248_v4  ;;  %v557_v7 = vld [vmem:[%s5552_s8] sm:$0x3]  ;;  %v1918_v4 = vperm.slane %v556_v52, 0  ;;  %v543_v52 = vld [vmem:[%s5547_s3 + $0xa8] sm:$0xff] }
 0x8fe   : > { %v1826_v28 = vpop.f32.mrf.mxu3 }
 0x8ff   : > { %v1835_v49 = vadd.f32 %v1826_v28, %v1541_v47  ;;  %v580_v47 = vld [vmem:[%s5557_s13 + $0x18] sm:$0xff]  ;;  %v579_v28 = vld [vmem:[%s5557_s13 + $0x10] sm:$0xff] }
 0x900   : > { %3918 = vmatpush.xpose.msk.msra.mxu1 %vm1990_vm9, %v580_v47 }
 0x901   : > { %v1839_v51 = vadd.f32 %v1838_v48, %v1835_v49 }
 0x903   : > { %v1842_v53 = vadd.f32 %v1839_v51, %v4531_v14 }
 0x904   : > { %3919 = vmatpush.xpose.msk.msra.mxu1 %vm1990_vm9, %v579_v28 }
 0x905   : > { %v1845_v55 = vsel %vm593_vm0, %v1842_v53, 0.0 }
 0x906   : > { %v1829_v56 = vpop.f32.mrf.mxu3  ;;  %1846 = vadd.xlane.f32.xlu1 %v1845_v55 }
 0x907   : > { %v1836_v6 = vadd.f32 %v1829_v56, %v1542_v22  ;;  %v578_v56 = vld [vmem:[%s5557_s13 + $0x8] sm:$0xff] }
 0x908   : > { %3920 = vmatpush.xpose.msk.msra.mxu1 %vm1990_vm9, %v578_v56 }
 0x909   : > { %v1840_v57 = vadd.f32 %v1838_v48, %v1836_v6 }
 0x90b   : > { %v1843_v61 = vadd.f32 %v1840_v57, %v4536_v16  ;;  %v567_v16 = vld [vmem:[%s5555_s11 + $0x38] sm:$0xff] }
 0x90c   : > { %3907 = vmatpush.xpose.msk.msrb.mxu0 %vm593_vm0, %v567_v16 }
 0x90d   : > { %v1848_v62 = vsel %vm593_vm0, %v1843_v61, 0.0 }
 0x90e   : > { %v1832_v60 = vpop.f32.mrf.mxu3  ;;  %1849 = vadd.xlane.f32.xlu2 %v1848_v62 }
 0x90f   : > { %v1837_v54 = vadd.f32 %v1832_v60, %v1543_v8  ;;  %v1922_v60 = vperm.slane %v557_v7, 0 }
 0x910   : > { %3908 = vmatpush.xpose.msk.msrb.mxu0 %vm593_vm0, %v566_v36 }
 0x911   : > { %v1841_v14 = vadd.f32 %v1838_v48, %v1837_v54 }
 0x913   : > { %v1844_v0 = vadd.f32 %v1841_v14, %v4540_v18 }
 0x914   : > { %3909 = vmatpush.xpose.msk.msrb.mxu0 %vm593_vm0, %v565_v37 }
 0x915   : > { %v1851_v1 = vsel %vm593_vm0, %v1844_v0, 0.0 }
 0x916   : > { %1852 = vadd.xlane.f32.xlu0 %v1851_v1 }
 0x918   : > { %3910 = vmatpush.xpose.msk.msrb.mxu0 %vm593_vm0, %v564_v38 }
 0x91c   : > { %3911 = vmatpush.xpose.msk.msrb.mxu0 %vm593_vm0, %v563_v40 }
 0x920   : > { %3912 = vmatpush.xpose.msk.msrb.mxu0 %vm593_vm0, %v562_v41 }
 0x924   : > { %3913 = vmatpush.xpose.msk.msrb.mxu0 %vm593_vm0, %v561_v35  ;;  %v585_v35 = vld [vmem:[%s5558_s14] sm:$0x3] }
 0x928   : > { %3914 = vmatpush.xpose.msk.msrb.mxu0 %vm593_vm0, %v560_v42  ;;  %v1989_v42 = vperm.slane %v585_v35, 0 }
 0x979   : > { %v1847_v18 = vpop.xlane.xlu1 %1846 }
 0x97a   : > { %v1861_v19 = vmul.f32 %v4859_v17, %v1847_v18 }
 0x97c   : > { %v4862_v58 = vsub.f32 %v1842_v53, %v1861_v19 }
 0x97e   : > { %v1867_v20 = vmul.f32 %v4862_v58, %v4862_v58 }
 0x980   : > { %v1870_v21 = vsel %vm593_vm0, %v1867_v20, 0.0 }
 0x981   : > { %1871 = vadd.xlane.f32.xlu2 %v1870_v21  ;;  %v1850_v23 = vpop.xlane.xlu2 %1849 }
 0x982   : > { %v1862_v24 = vmul.f32 %v4859_v17, %v1850_v23 }
 0x984   : > { %v4868_v27 = vsub.f32 %v1843_v61, %v1862_v24 }
 0x986   : > { %v1868_v29 = vmul.f32 %v4868_v27, %v4868_v27 }
 0x988   : > { %v1873_v30 = vsel %vm593_vm0, %v1868_v29, 0.0 }
 0x989   : > { %1874 = vadd.xlane.f32.xlu1 %v1873_v30  ;;  %v1853_v31 = vpop.xlane.xlu0 %1852  ;;  %v576_v30 = vld [vmem:[%s5556_s12] sm:$0x3] }
 0x98a   : > { %v1863_v33 = vmul.f32 %v4859_v17, %v1853_v31  ;;  %v1926_v31 = vperm.slane %v576_v30, 0 }
 0x98c   : > { %v4874_v34 = vsub.f32 %v1844_v0, %v1863_v33 }
 0x98e   : > { %v1869_v25 = vmul.f32 %v4874_v34, %v4874_v34 }
 0x990   : > { %v1876_v26 = vsel %vm593_vm0, %v1869_v25, 0.0 }
 0x991   : > { %1877 = vadd.xlane.f32.xlu0 %v1876_v26 }
 0x9f4   : > { %v1872_v43 = vpop.xlane.xlu2 %1871 }
 0x9f5   : > { %v1879_v9 = vmul.f32 %v1872_v43, %v4859_v17 }
 0x9f7   : > { %v1882_v44 = vadd.f32 1e-05, %v1879_v9 }
 0x9f9   : > { %4175 = vrsqrt.f32 %v1882_v44  ;;  %vm1891_vm11 = vweird.f32 %v1882_v44 }
 0x9fc   : > { %v1875_v45 = vpop.xlane.xlu1 %1874 }
 0x9fd   : > { %v1880_v63 = vmul.f32 %v1875_v45, %v4859_v17 }
 0x9ff   : > { %v4176_v46 = vpop.eup %4175  ;;  %v1883_v13 = vadd.f32 1e-05, %v1880_v63 }
 0xa00   : > { %v1886_v10 = vmul.f32 %v4176_v46, %v1882_v44  ;;  %vm1892_vm10 = vweird.f32 %v4176_v46 }
 0xa01   : > { %4177 = vrsqrt.f32 %v1883_v13  ;;  %vm1893_vm12 = vmor %vm1891_vm11, %vm1892_vm10  ;;  %vm1901_vm14 = vweird.f32 %v1883_v13 }
 0xa02   : > { %v1887_v48 = vmul.f32 %v4176_v46, %v1886_v10 }
 0xa04   : > { %v1888_v49 = vmul.f32 0.5, %v1887_v48  ;;  %v1878_v50 = vpop.xlane.xlu0 %1877 }
 0xa05   : > { %v1881_v51 = vmul.f32 %v1878_v50, %v4859_v17  ;;  %v545_v50 = vld [vmem:[%s5547_s3 + $0xb8] sm:$0xff] }
 0xa06   : > { %v1889_v53 = vsub.f32 1.5, %v1888_v49  ;;  %3925 = vmatpush.xpose.msk.msra.mxu2 %vm593_vm0, %v545_v50 }
 0xa07   : > { %v4178_v22 = vpop.eup %4177  ;;  %v1884_v55 = vadd.f32 1e-05, %v1881_v51  ;;  %v544_v51 = vld [vmem:[%s5547_s3 + $0xb0] sm:$0xff] }
 0xa08   : > { %v1890_v6 = vmul.f32 %v4176_v46, %v1889_v53  ;;  %v1896_v57 = vmul.f32 %v4178_v22, %v1883_v13  ;;  %vm1902_vm13 = vweird.f32 %v4178_v22 }
 0xa09   : > { %4179 = vrsqrt.f32 %v1884_v55  ;;  %vm1903_vm15 = vmor %vm1901_vm14, %vm1902_vm13  ;;  %vm1911_vm3 = vweird.f32 %v1884_v55 }
 0xa0a   : > { %v1894_v61 = vsel %vm1893_vm12, %v4176_v46, %v1890_v6  ;;  %v1897_v8 = vmul.f32 %v4178_v22, %v1896_v57  ;;  %3926 = vmatpush.xpose.msk.msra.mxu2 %vm593_vm0, %v544_v51  ;;  %v541_v57 = vld [vmem:[%s5547_s3 + $0x98] sm:$0xff] }
 0xa0b   : > { %v1915_v62 = vmul.f32 %v1894_v61, %v4862_v58 }
 0xa0c   : > { %v1898_v54 = vmul.f32 0.5, %v1897_v8 }
 0xa0d   : > { %v1919_v14 = vmul.f32 %v1918_v4, %v1915_v62 }
 0xa0e   : > { %v1899_v0 = vsub.f32 1.5, %v1898_v54  ;;  %3927 = vmatpush.xpose.msk.msra.mxu2 %vm593_vm0, %v543_v52 }
 0xa0f   : > { %v4180_v1 = vpop.eup %4179  ;;  %v1923_v3 = vadd.f32 %v1922_v60, %v1919_v14 }
 0xa10   : > { %v1900_v11 = vmul.f32 %v4178_v22, %v1899_v0  ;;  %v1906_v12 = vmul.f32 %v4180_v1, %v1884_v55  ;;  %vm1912_vm2 = vweird.f32 %v4180_v1  ;;  %v542_v55 = vld [vmem:[%s5547_s3 + $0xa0] sm:$0xff] }
 0xa11   : > { %3915 = vmatmul.msk.f32.vlgmr.msrb.gmra.mxu0 %vm593_vm0, %v1923_v3  ;;  %vm1913_vm4 = vmor %vm1911_vm3, %vm1912_vm2 }
 0xa12   : > { %v1904_v15 = vsel %vm1903_vm15, %v4178_v22, %v1900_v11  ;;  %v1907_v2 = vmul.f32 %v4180_v1, %v1906_v12  ;;  %3928 = vmatpush.xpose.msk.msra.mxu2 %vm593_vm0, %v542_v55  ;;  %v540_v11 = vld [vmem:[%s5547_s3 + $0x90] sm:$0xff]  ;;  %v539_v12 = vld [vmem:[%s5547_s3 + $0x88] sm:$0xff] }
 0xa13   : > { %v1916_v16 = vmul.f32 %v1904_v15, %v4868_v27  ;;  %v577_v27 = vld [vmem:[%s5557_s13] sm:$0xff] }
 0xa14   : > { %v1908_v5 = vmul.f32 0.5, %v1907_v2  ;;  %3921 = vmatpush.xpose.msk.msra.mxu1 %vm1990_vm9, %v577_v27  ;;  %v538_v15 = vld [vmem:[%s5547_s3 + $0x80] sm:$0xff]  ;;  %v537_v2 = vld [vmem:[%s5547_s3 + $0x78] sm:$0xff] }
 0xa15   : > { %v1920_v18 = vmul.f32 %v1918_v4, %v1916_v16  ;;  %v536_v16 = vld [vmem:[%s5547_s3 + $0x70] sm:$0xff] }
 0xa16   : > { %v1909_v19 = vsub.f32 1.5, %v1908_v5  ;;  %3929 = vmatpush.xpose.msk.msra.mxu2 %vm593_vm0, %v541_v57  ;;  %v535_v5 = vld [vmem:[%s5547_s3 + $0x68] sm:$0xff] }
 0xa17   : > { %v1924_v58 = vadd.f32 %v1922_v60, %v1920_v18  ;;  %v534_v18 = vld [vmem:[%s5547_s3 + $0x60] sm:$0xff] }
 0xa18   : > { %v1910_v20 = vmul.f32 %v4180_v1, %v1909_v19 }
 0xa19   : > { %3916 = vmatmul.msk.f32.gmra.mxu0 %vm593_vm0, %v1924_v58 }
 0xa1a   : > { %v1914_v21 = vsel %vm1913_vm4, %v4180_v1, %v1910_v20  ;;  %3930 = vmatpush.xpose.msk.msra.mxu2 %vm593_vm0, %v540_v11 }
 0xa1b   : > { %v1917_v23 = vmul.f32 %v1914_v21, %v4874_v34 }
 0xa1d   : > { %v1921_v24 = vmul.f32 %v1918_v4, %v1917_v23 }
 0xa1e   : > { %3931 = vmatpush.xpose.msk.msra.mxu2 %vm593_vm0, %v539_v12 }
 0xa1f   : > { %v1925_v29 = vadd.f32 %v1922_v60, %v1921_v24 }
 0xa21   : > { %3917 = vmatmul.msk.f32.gmra.mxu0 %vm593_vm0, %v1925_v29 }
 0xa22   : > { %3932 = vmatpush.xpose.msk.msra.mxu2 %vm593_vm0, %v538_v15 }
 0xa26   : > { %3933 = vmatpush.xpose.msk.msra.mxu2 %vm593_vm0, %v537_v2 }
 0xa2a   : > { %3934 = vmatpush.xpose.msk.msra.mxu2 %vm593_vm0, %v536_v16 }
 0xa2e   : > { %3935 = vmatpush.xpose.msk.msra.mxu2 %vm593_vm0, %v535_v5 }
 0xa32   : > { %3936 = vmatpush.xpose.msk.msra.mxu2 %vm593_vm0, %v534_v18 }
 0xa8e   : > { %v1977_v33 = vpop.f32.mrf.mxu0 }
 0xa8f   : > { %v1978_v25 = vadd.f32 %v1977_v33, %v1926_v31 }
 0xa91   : > { %v1986_v26 = vmax.f32 %v1978_v25, 0.0 }
 0xa93   : > { %3922 = vmatmul.msk.f32.vlgmr.msra.gmra.mxu1 %vm1990_vm9, %v1986_v26  ;;  %v558_v26 = vld [vmem:[%s5553_s9] sm:$0x3] }
 0xa94   : > { %v2107_v35 = vperm.slane %v558_v26, 0 }
 0xa96   : > { %v1980_v34 = vpop.f32.mrf.mxu0 }
 0xa97   : > { %v1981_v36 = vadd.f32 %v1980_v34, %v1926_v31 }
 0xa99   : > { %v1987_v37 = vmax.f32 %v1981_v36, 0.0 }
 0xa9b   : > { %3923 = vmatmul.msk.f32.gmra.mxu1 %vm1990_vm9, %v1987_v37 }
 0xa9e   : > { %v1983_v38 = vpop.f32.mrf.mxu0 }
 0xa9f   : > { %v1984_v40 = vadd.f32 %v1983_v38, %v1926_v31 }
 0xaa1   : > { %v1988_v41 = vmax.f32 %v1984_v40, 0.0 }
 0xaa3   : > { %3924 = vmatmul.msk.f32.gmra.mxu1 %vm1990_vm9, %v1988_v41  ;;  %v559_v41 = vld [vmem:[%s5554_s10] sm:$0x3] }
 0xb10   : > { %v2029_v43 = vpop.f32.mrf.mxu1 }
 0xb11   : > { %v2030_v9 = vadd.f32 %v2029_v43, %v1989_v42 }
 0xb13   : > { %v2038_v44 = vadd.f32 %v2030_v9, %v1923_v3 }
 0xb15   : > { %v2041_v45 = vsel %vm593_vm0, %v2038_v44, 0.0 }
 0xb16   : > { %2042 = vadd.xlane.f32.xlu2 %v2041_v45 }
 0xb18   : > { %v2032_v63 = vpop.f32.mrf.mxu1 }
 0xb19   : > { %v2033_v46 = vadd.f32 %v2032_v63, %v1989_v42 }
 0xb1b   : > { %v2039_v13 = vadd.f32 %v2033_v46, %v1924_v58 }
 0xb1d   : > { %v2044_v10 = vsel %vm593_vm0, %v2039_v13, 0.0 }
 0xb1e   : > { %2045 = vadd.xlane.f32.xlu1 %v2044_v10 }
 0xb20   : > { %v2035_v47 = vpop.f32.mrf.mxu1 }
 0xb21   : > { %v2036_v48 = vadd.f32 %v2035_v47, %v1989_v42 }
 0xb23   : > { %v2040_v28 = vadd.f32 %v2036_v48, %v1925_v29 }
 0xb25   : > { %v2047_v49 = vsel %vm593_vm0, %v2040_v28, 0.0 }
 0xb26   : > { %2048 = vadd.xlane.f32.xlu0 %v2047_v49 }
 0xb89   : > { %v2043_v53 = vpop.xlane.xlu2 %2042 }
 0xb8a   : > { %v2050_v22 = vmul.f32 %v2043_v53, %v4859_v17 }
 0xb8c   : > { %v2053_v56 = vsub.f32 %v2038_v44, %v2050_v22  ;;  %v2111_v44 = vperm.slane %v559_v41, 0 }
 0xb8e   : > { %v2056_v6 = vmul.f32 %v2053_v56, %v2053_v56 }
 0xb90   : > { %v2059_v7 = vsel %vm593_vm0, %v2056_v6, 0.0 }
 0xb91   : > { %v2046_v4 = vpop.xlane.xlu1 %2045  ;;  %2060 = vadd.xlane.f32.xlu2 %v2059_v7 }
 0xb92   : > { %v2051_v61 = vmul.f32 %v2046_v4, %v4859_v17  ;;  %v4253_v4 = vld [vmem:[%s5548_s4] sm:$0x3] }
 0xb94   : > { %v4973_v8 = vsub.f32 %v2039_v13, %v2051_v61  ;;  %v2115_v61 = vperm.slane %v4253_v4, 1 }
 0xb96   : > { %v2057_v62 = vmul.f32 %v4973_v8, %v4973_v8 }
 0xb98   : > { %v2062_v60 = vsel %vm593_vm0, %v2057_v62, 0.0 }
 0xb99   : > { %2063 = vadd.xlane.f32.xlu1 %v2062_v60  ;;  %v2049_v54 = vpop.xlane.xlu0 %2048 }
 0xb9a   : > { %v2052_v14 = vmul.f32 %v2049_v54, %v4859_v17 }
 0xb9c   : > { %v4979_v0 = vsub.f32 %v2040_v28, %v2052_v14 }
 0xb9e   : > { %v2058_v1 = vmul.f32 %v4979_v0, %v4979_v0 }
 0xba0   : > { %v2065_v3 = vsel %vm593_vm0, %v2058_v1, 0.0 }
 0xba1   : > { %2066 = vadd.xlane.f32.xlu0 %v2065_v3 }
 0xc04   : > { %v2061_v19 = vpop.xlane.xlu2 %2060 }
 0xc05   : > { %v2068_v58 = vmul.f32 %v2061_v19, %v4859_v17 }
 0xc07   : > { %v2071_v20 = vadd.f32 1e-05, %v2068_v58 }
 0xc09   : > { %4181 = vrsqrt.f32 %v2071_v20  ;;  %vm2080_vm6 = vweird.f32 %v2071_v20 }
 0xc0c   : > { %v2064_v21 = vpop.xlane.xlu1 %2063 }
 0xc0d   : > { %v2069_v23 = vmul.f32 %v2064_v21, %v4859_v17 }
 0xc0f   : > { %v4182_v24 = vpop.eup %4181  ;;  %v2072_v29 = vadd.f32 1e-05, %v2069_v23 }
 0xc10   : > { %v2075_v27 = vmul.f32 %v4182_v24, %v2071_v20  ;;  %vm2081_vm5 = vweird.f32 %v4182_v24 }
 0xc11   : > { %4183 = vrsqrt.f32 %v2072_v29  ;;  %vm2082_vm7 = vmor %vm2080_vm6, %vm2081_vm5  ;;  %vm2090_vm10 = vweird.f32 %v2072_v29 }
 0xc12   : > { %v2076_v30 = vmul.f32 %v4182_v24, %v2075_v27 }
 0xc14   : > { %v2077_v31 = vmul.f32 0.5, %v2076_v30  ;;  %v2067_v33 = vpop.xlane.xlu0 %2066 }
 0xc15   : > { %v2070_v25 = vmul.f32 %v2067_v33, %v4859_v17 }
 0xc16   : > { %v2078_v34 = vsub.f32 1.5, %v2077_v31 }
 0xc17   : > { %v4184_v36 = vpop.eup %4183  ;;  %v2073_v37 = vadd.f32 1e-05, %v2070_v25 }
 0xc18   : > { %v2079_v38 = vmul.f32 %v4182_v24, %v2078_v34  ;;  %v2085_v40 = vmul.f32 %v4184_v36, %v2072_v29  ;;  %vm2091_vm8 = vweird.f32 %v4184_v36 }
 0xc19   : > { %4185 = vrsqrt.f32 %v2073_v37  ;;  %vm2092_vm11 = vmor %vm2090_vm10, %vm2091_vm8  ;;  %vm2100_vm13 = vweird.f32 %v2073_v37 }
 0xc1a   : > { %v2083_v42 = vsel %vm2082_vm7, %v4182_v24, %v2079_v38  ;;  %v2086_v43 = vmul.f32 %v4184_v36, %v2085_v40 }
 0xc1b   : > { %v2104_v9 = vmul.f32 %v2083_v42, %v2053_v56 }
 0xc1c   : > { %v2087_v45 = vmul.f32 0.5, %v2086_v43 }
 0xc1d   : > { %v2108_v63 = vmul.f32 %v2107_v35, %v2104_v9 }
 0xc1e   : > { %v2088_v46 = vsub.f32 1.5, %v2087_v45 }
 0xc1f   : > { %v4186_v13 = vpop.eup %4185  ;;  %v5021_v10 = vadd.f32 %v2111_v44, %v2108_v63 }
 0xc20   : > { %v2089_v47 = vmul.f32 %v4184_v36, %v2088_v46  ;;  %v2095_v48 = vmul.f32 %v4186_v13, %v2073_v37  ;;  %vm2101_vm12 = vweird.f32 %v4186_v13 }
 0xc21   : > { %3937 = vmatmul.msk.f32.vlgmr.msra.gmra.mxu2 %vm593_vm0, %v5021_v10  ;;  %vm2102_vm14 = vmor %vm2100_vm13, %vm2101_vm12 }
 0xc22   : > { %v2093_v28 = vsel %vm2092_vm11, %v4184_v36, %v2089_v47  ;;  %v2096_v49 = vmul.f32 %v4186_v13, %v2095_v48 }
 0xc23   : > { %v2105_v50 = vmul.f32 %v2093_v28, %v4973_v8 }
 0xc24   : > { %v2097_v51 = vmul.f32 0.5, %v2096_v49 }
 0xc25   : > { %v2109_v52 = vmul.f32 %v2107_v35, %v2105_v50 }
 0xc26   : > { %v2098_v53 = vsub.f32 1.5, %v2097_v51 }
 0xc27   : > { %v5026_v22 = vadd.f32 %v2111_v44, %v2109_v52 }
 0xc28   : > { %v2099_v55 = vmul.f32 %v4186_v13, %v2098_v53 }
 0xc29   : > { %3938 = vmatmul.msk.f32.gmra.mxu2 %vm593_vm0, %v5026_v22 }
 0xc2a   : > { %v2103_v56 = vsel %vm2102_vm14, %v4186_v13, %v2099_v55 }
 0xc2b   : > { %v2106_v6 = vmul.f32 %v2103_v56, %v4979_v0 }
 0xc2d   : > { %v2110_v57 = vmul.f32 %v2107_v35, %v2106_v6 }
 0xc2f   : > { %v5031_v7 = vadd.f32 %v2111_v44, %v2110_v57 }
 0xc31   : > { %3939 = vmatmul.msk.f32.gmra.mxu2 %vm593_vm0, %v5031_v7 }
 0xca4   : > { %v2178_v8 = vpop.f32.mrf.mxu2 }
 0xca5   : > { %v5038_v62 = vadd.f32 %v2178_v8, %v2115_v61 }
 0xca7   : > { %2188 = vrot.lane.b32.xlu2 %v5038_v62, %s4328_s24 }
 0xcac   : > { %v2181_v60 = vpop.f32.mrf.mxu2 }
 0xcad   : > { %v5042_v54 = vadd.f32 %v2181_v60, %v2115_v61 }
 0xcaf   : > { %2215 = vrot.lane.b32.xlu0 %v5042_v54, %s4328_s24 }
 0xcb4   : > { %v2184_v14 = vpop.f32.mrf.mxu2 }
 0xcb5   : > { %v5046_v0 = vadd.f32 %v2184_v14, %v2115_v61 }
 0xcb7   : > { %2242 = vrot.lane.b32.xlu1 %v5046_v0, %s4328_s24  ;;  %v4102_v21 = vpack.i.bf16 %v5046_v0, %v5042_v54  ;;  %s5597_s24 = smov 64  }
 0xcbf   : > { %2454 = vrot.lane.b32.xlu1 %v5042_v54, %s5596_s29 }
 0xd01   : > { %v2189_v1 = vpop.permute.xlu2 %2188 }
 0xd02   : > { %3940 = vmatpush.xpose.msk.msrb.mxu3 %vm668_vm1, %v2189_v1 }
 0xd05   : > { %3941 = vmatmul.msk.f32.vlgmr.msrb.gmra.mxu3 %vm668_vm1, %v5038_v62 }
 0xd21   : > { %v2216_v3 = vpop.permute.xlu0 %2215 }
 0xd22   : > { %3942 = vmatpush.xpose.msk.msra.mxu0 %vm668_vm1, %v2216_v3 }
 0xd25   : > { %3943 = vmatmul.msk.f32.vlgmr.msra.gmra.mxu0 %vm668_vm1, %v5042_v54 }
 0xd29   : > { %v2243_v11 = vpop.permute.xlu1 %2242 }
 0xd2a   : > { %3944 = vmatpush.xpose.msk.msra.mxu3 %vm668_vm1, %v2243_v11 }
 0xd2d   : > { %3945 = vmatmul.msk.f32.vlgmr.msra.gmra.mxu3 %vm668_vm1, %v5046_v0 }
 0xd31   : > { %v2455_v40 = vpop.permute.xlu1 %2454 }
 0xd88   : > { %v2211_v5 = vpop.f32.mrf.mxu3 }
 0xd89   : > { %v2268_v41 = vmul.f32 0.35355338, %v2211_v5 }
 0xd8b   : > { %v2271_v35 = vadd.f32 %v2268_v41, %v4610_v59 }
 0xd8d   : > { %v2274_v42 = vsel %vm668_vm1, %v2271_v35, -inf }
 0xda2   : > { %v2238_v12 = vpop.f32.mrf.mxu0 }
 0xda3   : > { %v2269_v15 = vmul.f32 0.35355338, %v2238_v12 }
 0xda5   : > { %v2272_v2 = vadd.f32 %v2269_v15, %v4584_v39 }
 0xda7   : > { %v2277_v16 = vsel %vm668_vm1, %v2272_v2, -inf }
 0xda8   : > { %2278 = vmax.xlane.f32.xlu2 %v2277_v16 }
 0xdb0   : > { %v2265_v18 = vpop.f32.mrf.mxu3 }
 0xdb1   : > { %v2270_v19 = vmul.f32 0.35355338, %v2265_v18 }
 0xdb3   : > { %v2273_v58 = vadd.f32 %v2270_v19, %v4579_v32 }
 0xdb5   : > { %v2280_v20 = vsel %vm668_vm1, %v2273_v58, -inf }
 0xdb6   : > { %2281 = vmax.xlane.f32.xlu0 %v2280_v20 }
 0xdca   : > { %4103 = vrot.lane.b32.xlu0 %v4102_v21, %s5597_s24 }
 0xdd2   : > { %2452 = vrot.lane.b32.xlu0 %v5042_v54, %s4330_s30 }
 0xdda   : > { %4108 = vrot.lane.b32.xlu0 %v4102_v21, %s5598_s26 }
 0xde2   : > { %2762 = vrot.lane.b32.xlu0 %v5038_v62, %s5599_s25 }
 0xe1b   : > { %v2279_v23 = vpop.xlane.xlu2 %2278 }
 0xe1c   : > { %v2284_v24 = vsub.f32 %v2272_v2, %v2279_v23 }
 0xe1e   : > { %v2288_v29 = vmul.f32 1.442695, %v2284_v24 }
 0xe20   : > { %4187 = vpow2.f32 %v2288_v29 }
 0xe26   : > { %v4188_v27 = vpop.eup %4187 }
 0xe27   : > { %v2295_v30 = vsel %vm668_vm1, %v4188_v27, 0.0 }
 0xe28   : > { %2296 = vadd.xlane.f32.xlu1 %v2295_v30 }
 0xe29   : > { %v2282_v31 = vpop.xlane.xlu0 %2281 }
 0xe2a   : > { %v2285_v33 = vsub.f32 %v2273_v58, %v2282_v31 }
 0xe2c   : > { %v2290_v25 = vmul.f32 1.442695, %v2285_v33 }
 0xe2e   : > { %4189 = vpow2.f32 %v2290_v25 }
 0xe34   : > { %v4190_v26 = vpop.eup %4189 }
 0xe35   : > { %v2298_v34 = vsel %vm668_vm1, %v4190_v26, 0.0 }
 0xe36   : > { %2299 = vadd.xlane.f32.xlu2 %v2298_v34 }
 0xe3c   : > { %v4104_v36 = vpop.permute.xlu0 %4103 }
 0xe3d   : > { %v4106_v37 = vunpack.i.h.bf16 %v4104_v36  ;;  %v4105_v38 = vunpack.i.l.bf16 %v4104_v36 }
 0xe3f   : > { %2393 = vmatpush.msrb.mxu1 %v4105_v38  ;;  %2419 = vmatpush.msrb.mxu3 %v4106_v37 }
 0xe41   : > { %3951 = vmatpush.xpose.msk.msra.mxu1 %vm668_vm1, %v2455_v40  ;;  %2480 = vrot.lane.b32.xlu1 %v5046_v0, %s4330_s30 }
 0xe44   : > { %v2453_v9 = vpop.permute.xlu0 %2452 }
 0xe49   : > { %2764 = vrot.lane.b32.xlu1 %v5038_v62, %s5600_s22 }
 0xe4c   : > { %v4109_v50 = vpop.permute.xlu0 %4108 }
 0xe4d   : > { %v4110_v55 = vunpack.i.l.bf16 %v4109_v50  ;;  %v4111_v16 = vunpack.i.h.bf16 %v4109_v50 }
 0xe4e   : > { %2482 = vrot.lane.b32.xlu2 %v5046_v0, %s5596_s29 }
 0xe77   : > { %2275 = vmax.xlane.f32.xlu2 %v2274_v42 }
 0xe9b   : > { %v2297_v43 = vpop.xlane.xlu1 %2296 }
 0xe9c   : > { %4191 = vrcp.f32 %v2297_v43  ;;  %v2327_v46 = vand.u32 2147483648, %v2297_v43  ;;  %v2325_v47 = vand.u32 2147483647, %v2297_v43  ;;  %vm2321_vm2 = vweird.f32 %v2297_v43 }
 0xe9e   : > { %v2328_v49 = vor.u32 1.1754944e-38, %v2327_v46  ;;  %vm2326_vm4 = vcmp.eq.f32.partialorder %v2325_v47, 8.507059e+37 }
 0xea2   : > { %v4192_v44 = vpop.eup %4191 }
 0xea3   : > { %v2317_v45 = vmul.f32 %v4192_v44, %v2297_v43  ;;  %vm2322_vm15 = vweird.f32 %v4192_v44 }
 0xea4   : > { %vm2323_vm3 = vmor %vm2321_vm2, %vm2322_vm15 }
 0xea5   : > { %v2318_v63 = vsub.f32 1.0, %v2317_v45 }
 0xea7   : > { %v2319_v13 = vmul.f32 %v4192_v44, %v2318_v63 }
 0xea9   : > { %v2320_v48 = vadd.f32 %v4192_v44, %v2319_v13  ;;  %v2300_v28 = vpop.xlane.xlu2 %2299  ;;  %v2763_v13 = vpop.permute.xlu0 %2762 }
 0xeaa   : > { %4193 = vrcp.f32 %v2300_v28  ;;  %v2342_v8 = vand.u32 2147483648, %v2300_v28  ;;  %v2340_v14 = vand.u32 2147483647, %v2300_v28  ;;  %vm2336_vm6 = vweird.f32 %v2300_v28 }
 0xeab   : > { %v2324_v51 = vsel %vm2323_vm3, %v4192_v44, %v2320_v48 }
 0xeac   : > { %v2329_v52 = vsel %vm2326_vm4, %v2328_v49, %v2324_v51  ;;  %v2343_v3 = vor.u32 1.1754944e-38, %v2342_v8  ;;  %vm2341_vm8 = vcmp.eq.f32.partialorder %v2340_v14, 8.507059e+37 }
 0xead   : > { %v2330_v53 = vmul.f32 %v4188_v27, %v2329_v52 }
 0xeaf   : > { %3947 = vmatmul.msk.f32.vlgmr.msrb.gmra.mxu1 %vm668_vm1, %v2330_v53 }
 0xeb0   : > { %v4194_v56 = vpop.eup %4193  ;;  %2633 = vmatpush.msrb.mxu1 %v4110_v55 }
 0xeb1   : > { %v2332_v6 = vmul.f32 %v4194_v56, %v2300_v28  ;;  %v2483_v57 = vpop.permute.xlu2 %2482  ;;  %vm2337_vm5 = vweird.f32 %v4194_v56 }
 0xeb2   : > { %3953 = vmatpush.xpose.msk.msra.mxu3 %vm668_vm1, %v2483_v57  ;;  %vm2338_vm7 = vmor %vm2336_vm6, %vm2337_vm5 }
 0xeb3   : > { %v2333_v4 = vsub.f32 1.0, %v2332_v6  ;;  %v2481_v61 = vpop.permute.xlu1 %2480 }
 0xeb5   : > { %v2334_v60 = vmul.f32 %v4194_v56, %v2333_v4 }
 0xeb7   : > { %v2335_v1 = vadd.f32 %v4194_v56, %v2334_v60  ;;  %3952 = vmatmul.msk.f32.vlgmr.msra.gmra.mxu1 %vm668_vm1, %v2453_v9 }
 0xeb9   : > { %v2339_v11 = vsel %vm2338_vm7, %v4194_v56, %v2335_v1 }
 0xeba   : > { %v2344_v12 = vsel %vm2341_vm8, %v2343_v3, %v2339_v11 }
 0xebb   : > { %v2765_v15 = vpop.permute.xlu1 %2764  ;;  %v2345_v2 = vmul.f32 %v4190_v26, %v2344_v12 }
 0xebc   : > { %3972 = vmatpush.xpose.msk.msra.mxu1 %vm668_vm1, %v2765_v15 }
 0xebd   : > { %3948 = vmatmul.msk.f32.vlgmr.msrb.gmra.mxu3 %vm668_vm1, %v2345_v2 }
 0xebe   : > { %2659 = vmatpush.msrb.mxu3 %v4111_v16 }
 0xec5   : > { %3954 = vmatmul.msk.f32.vlgmr.msra.gmra.mxu3 %vm668_vm1, %v2481_v61 }
 0xeea   : > { %v2276_v5 = vpop.xlane.xlu2 %2275 }
 0xeeb   : > { %v2283_v18 = vsub.f32 %v2271_v35, %v2276_v5 }
 0xeed   : > { %v2286_v19 = vmul.f32 1.442695, %v2283_v18 }
 0xeef   : > { %4195 = vpow2.f32 %v2286_v19 }
 0xef5   : > { %v4196_v58 = vpop.eup %4195 }
 0xef6   : > { %v2292_v20 = vsel %vm668_vm1, %v4196_v58, 0.0 }
 0xef7   : > { %2293 = vadd.xlane.f32.xlu2 %v2292_v20 }
 0xf0f   : > { %2346 = vrot.lane.b32.xlu2 %v5038_v62, %s5597_s24 }
 0xf17   : > { %2426 = vrot.lane.b32.xlu2 %v5038_v62, %s5596_s29  ;;  %s4028_s29 = smul.u32 3, %s500_s17 }
 0xf1f   : > { %2820 = vrot.lane.b32.xlu2 %v5046_v0, %s5600_s22 }
 0xf2c   : > { %v5097_v21 = vpop.f32.mrf.mxu1 }
 0xf34   : > { %v2477_v23 = vpop.f32.mrf.mxu1 }
 0xf35   : > { %v2509_v24 = vmul.f32 0.35355338, %v2477_v23 }
 0xf37   : > { %v2512_v29 = vadd.f32 %v2509_v24, %v4584_v39 }
 0xf39   : > { %v2517_v27 = vsel %vm668_vm1, %v2512_v29, -inf }
 0xf3a   : > { %2518 = vmax.xlane.f32.xlu0 %v2517_v27 }
 0xf40   : > { %v5101_v30 = vpop.f32.mrf.mxu3 }
 0xf48   : > { %v2505_v31 = vpop.f32.mrf.mxu3 }
 0xf49   : > { %v2510_v33 = vmul.f32 0.35355338, %v2505_v31 }
 0xf4b   : > { %v2513_v25 = vadd.f32 %v2510_v33, %v4579_v32 }
 0xf4d   : > { %v2520_v26 = vsel %vm668_vm1, %v2513_v25, -inf }
 0xf4e   : > { %2521 = vmax.xlane.f32.xlu1 %v2520_v26  ;;  %2792 = vrot.lane.b32.xlu0 %v5042_v54, %s5600_s22 }
 0xf67   : > { %2424 = vrot.lane.b32.xlu1 %v5038_v62, %s4330_s30 }
 0xf6a   : > { %v2294_v34 = vpop.xlane.xlu2 %2293 }
 0xf6b   : > { %4197 = vrcp.f32 %v2294_v34  ;;  %v2312_v41 = vand.u32 2147483648, %v2294_v34  ;;  %v2310_v42 = vand.u32 2147483647, %v2294_v34  ;;  %vm2306_vm11 = vweird.f32 %v2294_v34 }
 0xf6d   : > { %v2313_v9 = vor.u32 1.1754944e-38, %v2312_v41  ;;  %vm2311_vm13 = vcmp.eq.f32.partialorder %v2310_v42, 8.507059e+37  ;;  %v4112_v42 = vpack.i.bf16 %v5042_v54, %v5046_v0 }
 0xf71   : > { %v4198_v36 = vpop.eup %4197 }
 0xf72   : > { %v2302_v37 = vmul.f32 %v4198_v36, %v2294_v34  ;;  %v2347_v38 = vpop.permute.xlu2 %2346  ;;  %vm2307_vm10 = vweird.f32 %v4198_v36 }
 0xf73   : > { %2367 = vmatpush.msrb.mxu0 %v2347_v38  ;;  %vm2308_vm12 = vmor %vm2306_vm11, %vm2307_vm10 }
 0xf74   : > { %v2303_v40 = vsub.f32 1.0, %v2302_v37 }
 0xf76   : > { %v2304_v35 = vmul.f32 %v4198_v36, %v2303_v40 }
 0xf78   : > { %v2305_v43 = vadd.f32 %v4198_v36, %v2304_v35 }
 0xf7a   : > { %v2309_v44 = vsel %vm2308_vm12, %v4198_v36, %v2305_v43  ;;  %v2427_v45 = vpop.permute.xlu2 %2426 }
 0xf7b   : > { %v2314_v63 = vsel %vm2311_vm13, %v2313_v9, %v2309_v44  ;;  %3949 = vmatpush.xpose.msk.msra.mxu0 %vm668_vm1, %v2427_v45 }
 0xf7c   : > { %v2315_v46 = vmul.f32 %v4196_v58, %v2314_v63 }
 0xf7e   : > { %3946 = vmatmul.msk.f32.vlgmr.msrb.gmra.mxu0 %vm668_vm1, %v2315_v46 }
 0xf82   : > { %v2821_v5 = vpop.permute.xlu2 %2820 }
 0xfad   : > { %v2519_v47 = vpop.xlane.xlu0 %2518 }
 0xfae   : > { %v2524_v48 = vsub.f32 %v2512_v29, %v2519_v47 }
 0xfb0   : > { %v2528_v28 = vmul.f32 1.442695, %v2524_v48 }
 0xfb2   : > { %4199 = vpow2.f32 %v2528_v28 }
 0xfb8   : > { %v4200_v49 = vpop.eup %4199 }
 0xfb9   : > { %v2535_v50 = vsel %vm668_vm1, %v4200_v49, 0.0 }
 0xfba   : > { %2536 = vadd.xlane.f32.xlu0 %v2535_v50 }
 0xfc0   : > { %v2793_v51 = vpop.permute.xlu0 %2792 }
 0xfc1   : > { %v2522_v52 = vpop.xlane.xlu1 %2521  ;;  %3974 = vmatpush.xpose.msk.msra.mxu3 %vm668_vm1, %v2793_v51 }
 0xfc2   : > { %v2525_v53 = vsub.f32 %v2513_v25, %v2522_v52 }
 0xfc4   : > { %v2530_v55 = vmul.f32 1.442695, %v2525_v53 }
 0xfc6   : > { %4201 = vpow2.f32 %v2530_v55 }
 0xfcc   : > { %v4202_v56 = vpop.eup %4201 }
 0xfcd   : > { %v2538_v6 = vsel %vm668_vm1, %v4202_v56, 0.0 }
 0xfce   : > { %2539 = vadd.xlane.f32.xlu1 %v2538_v6  ;;  %2790 = vrot.lane.b32.xlu0 %v5042_v54, %s5599_s25 }
 0xfd9   : > { %v2425_v57 = vpop.permute.xlu1 %2424 }
 0xfda   : > { %3950 = vmatmul.msk.f32.vlgmr.msra.gmra.mxu0 %vm668_vm1, %v2425_v57 }
 0xfe7   : > { %2818 = vrot.lane.b32.xlu1 %v5046_v0, %s5599_s25 }
 0xffb   : > { %v5122_v27 = vpop.f32.mrf.mxu0 }
0x102d   : > { %v2537_v4 = vpop.xlane.xlu0 %2536 }
0x102e   : > { %4203 = vrcp.f32 %v2537_v4  ;;  %v2567_v14 = vand.u32 2147483648, %v2537_v4  ;;  %v2565_v3 = vand.u32 2147483647, %v2537_v4  ;;  %vm2561_vm15 = vweird.f32 %v2537_v4 }
0x1030   : > { %v2568_v12 = vor.u32 1.1754944e-38, %v2567_v14  ;;  %vm2566_vm3 = vcmp.eq.f32.partialorder %v2565_v3, 8.507059e+37 }
0x1034   : > { %v4204_v61 = vpop.eup %4203 }
0x1035   : > { %v2557_v8 = vmul.f32 %v4204_v61, %v2537_v4  ;;  %vm2562_vm14 = vweird.f32 %v4204_v61 }
0x1036   : > { %vm2563_vm2 = vmor %vm2561_vm15, %vm2562_vm14 }
0x1037   : > { %v2558_v60 = vsub.f32 1.0, %v2557_v8 }
0x1039   : > { %v2559_v1 = vmul.f32 %v4204_v61, %v2558_v60 }
0x103b   : > { %v2560_v11 = vadd.f32 %v4204_v61, %v2559_v1 }
0x103d   : > { %v2564_v15 = vsel %vm2563_vm2, %v4204_v61, %v2560_v11 }
0x103e   : > { %v2569_v2 = vsel %vm2566_vm3, %v2568_v12, %v2564_v15 }
0x103f   : > { %v2570_v16 = vmul.f32 %v4200_v49, %v2569_v2 }
0x1040   : > { %v2791_v41 = vpop.permute.xlu0 %2790 }
0x1041   : > { %v2540_v18 = vpop.xlane.xlu1 %2539  ;;  %3956 = vmatmul.msk.f32.vlgmr.msrb.gmra.mxu1 %vm668_vm1, %v2570_v16 }
0x1042   : > { %4205 = vrcp.f32 %v2540_v18  ;;  %3976 = vmatpush.xpose.msk.msrb.mxu1 %vm668_vm1, %v2821_v5  ;;  %v2582_v23 = vand.u32 2147483648, %v2540_v18  ;;  %v2580_v29 = vand.u32 2147483647, %v2540_v18  ;;  %vm2576_vm5 = vweird.f32 %v2540_v18 }
0x1044   : > { %v2583_v33 = vor.u32 1.1754944e-38, %v2582_v23  ;;  %vm2581_vm7 = vcmp.eq.f32.partialorder %v2580_v29, 8.507059e+37 }
0x1048   : > { %v4206_v19 = vpop.eup %4205 }
0x1049   : > { %v2572_v58 = vmul.f32 %v4206_v19, %v2540_v18  ;;  %3973 = vmatmul.msk.f32.vlgmr.msra.gmra.mxu1 %vm668_vm1, %v2763_v13  ;;  %vm2577_vm4 = vweird.f32 %v4206_v19 }
0x104a   : > { %vm2578_vm6 = vmor %vm2576_vm5, %vm2577_vm4 }
0x104b   : > { %v2573_v20 = vsub.f32 1.0, %v2572_v58 }
0x104d   : > { %v2574_v24 = vmul.f32 %v4206_v19, %v2573_v20 }
0x104f   : > { %v2575_v31 = vadd.f32 %v4206_v19, %v2574_v24  ;;  %v5167_v24 = vld [vmem:[%s5549_s5 + $0x38] sm:$0xff] }
0x1051   : > { %v2579_v25 = vsel %vm2578_vm6, %v4206_v19, %v2575_v31 }
0x1052   : > { %v2584_v26 = vsel %vm2581_vm7, %v2583_v33, %v2579_v25 }
0x1053   : > { %v2585_v34 = vmul.f32 %v4202_v56, %v2584_v26 }
0x1055   : > { %3957 = vmatmul.msk.f32.vlgmr.msrb.gmra.mxu3 %vm668_vm1, %v2585_v34 }
0x1057   : > { %v2449_v36 = vpop.f32.mrf.mxu0 }
0x1058   : > { %v2508_v37 = vmul.f32 0.35355338, %v2449_v36  ;;  %v5176_v36 = vld [vmem:[%s5549_s5 + $0x30] sm:$0xff] }
0x1059   : > { %v2819_v38 = vpop.permute.xlu1 %2818 }
0x105a   : > { %3977 = vmatmul.msk.f32.vlgmr.msrb.gmra.mxu1 %vm668_vm1, %v2819_v38  ;;  %v2511_v40 = vadd.f32 %v2508_v37, %v4610_v59 }
0x105c   : > { %v2514_v35 = vsel %vm668_vm1, %v2511_v40, -inf }
0x105d   : > { %2515 = vmax.xlane.f32.xlu0 %v2514_v35  ;;  %3975 = vmatmul.msk.f32.vlgmr.msra.gmra.mxu3 %vm668_vm1, %v2791_v41  ;;  %v5185_v35 = vld [vmem:[%s5549_s5 + $0x28] sm:$0xff] }
0x1071   : > { %4113 = vrot.lane.b32.xlu0 %v4112_v42, %s5601_s20 }
0x1079   : > { %3086 = vrot.lane.b32.xlu0 %v5042_v54, %s5602_s16 }
0x10be   : > { %v5134_v43 = vpop.f32.mrf.mxu1 }
0x10c6   : > { %v2787_v9 = vpop.f32.mrf.mxu1 }
0x10c7   : > { %v2846_v44 = vmul.f32 0.35355338, %v2787_v9 }
0x10c9   : > { %v2849_v45 = vadd.f32 %v2846_v44, %v4610_v59  ;;  %v5193_v44 = vld [vmem:[%s5549_s5 + $0x20] sm:$0xff] }
0x10cb   : > { %v2852_v63 = vsel %vm668_vm1, %v2849_v45, -inf }
0x10cc   : > { %2853 = vmax.xlane.f32.xlu2 %v2852_v63 }
0x10d0   : > { %v2516_v46 = vpop.xlane.xlu0 %2515 }
0x10d1   : > { %v2523_v13 = vsub.f32 %v2511_v40, %v2516_v46 }
0x10d3   : > { %v2526_v47 = vmul.f32 1.442695, %v2523_v13 }
0x10d5   : > { %4207 = vpow2.f32 %v2526_v47 }
0x10d7   : > { %v2843_v48 = vpop.f32.mrf.mxu1 }
0x10d8   : > { %v2848_v28 = vmul.f32 0.35355338, %v2843_v48  ;;  %v5138_v49 = vpop.f32.mrf.mxu3 }
0x10da   : > { %v2851_v50 = vadd.f32 %v2848_v28, %v4579_v32 }
0x10db   : > { %v4208_v53 = vpop.eup %4207 }
0x10dc   : > { %v2858_v51 = vsel %vm668_vm1, %v2851_v50, -inf  ;;  %v2532_v4 = vsel %vm668_vm1, %v4208_v53, 0.0 }
0x10dd   : > { %2859 = vmax.xlane.f32.xlu1 %v2858_v51 }
0x10e0   : > { %v2815_v52 = vpop.f32.mrf.mxu3 }
0x10e1   : > { %v2847_v55 = vmul.f32 0.35355338, %v2815_v52 }
0x10e3   : > { %v5142_v56 = vpop.permute.xlu0 %4113  ;;  %v2850_v6 = vadd.f32 %v2847_v55, %v4584_v39 }
0x10e4   : > { %v4116_v57 = vunpack.i.h.bf16 %v5142_v56 }
0x10e5   : > { %2533 = vadd.xlane.f32.xlu1 %v2532_v4  ;;  %v2855_v61 = vsel %vm668_vm1, %v2850_v6, -inf }
0x10e6   : > { %2856 = vmax.xlane.f32.xlu2 %v2855_v61  ;;  %2971 = vmatpush.msra.mxu1 %v4116_v57 }
0x10fe   : > { %2586 = vrot.lane.b32.xlu2 %v5038_v62, %s5598_s26  ;;  %2924 = vrot.lane.b32.xlu1 %v5038_v62, %s5601_s20 }
0x1106   : > { %3084 = vrot.lane.b32.xlu1 %v5042_v54, %s5603_s18 }
0x110e   : > { %3114 = vrot.lane.b32.xlu1 %v5046_v0, %s5602_s16 }
0x113f   : > { %v2854_v8 = vpop.xlane.xlu2 %2853 }
0x1140   : > { %v2861_v60 = vsub.f32 %v2849_v45, %v2854_v8  ;;  %v4115_v45 = vunpack.i.l.bf16 %v5142_v56 }
0x1142   : > { %v2864_v14 = vmul.f32 1.442695, %v2861_v60 }
0x1144   : > { %4209 = vpow2.f32 %v2864_v14 }
0x114a   : > { %v5156_v1 = vpop.eup %4209 }
0x114b   : > { %v2870_v3 = vsel %vm668_vm1, %v5156_v1, 0.0 }
0x114c   : > { %2871 = vadd.xlane.f32.xlu0 %v2870_v3 }
0x1150   : > { %v2860_v11 = vpop.xlane.xlu1 %2859 }
0x1151   : > { %v2863_v12 = vsub.f32 %v2851_v50, %v2860_v11 }
0x1153   : > { %v2868_v15 = vmul.f32 1.442695, %v2863_v12 }
0x1155   : > { %4211 = vpow2.f32 %v2868_v15 }
0x1158   : > { %v2534_v2 = vpop.xlane.xlu1 %2533 }
0x1159   : > { %4213 = vrcp.f32 %v2534_v2  ;;  %v2857_v16 = vpop.xlane.xlu2 %2856  ;;  %v2552_v33 = vand.u32 2147483648, %v2534_v2  ;;  %v2550_v34 = vand.u32 2147483647, %v2534_v2  ;;  %vm2546_vm10 = vweird.f32 %v2534_v2 }
0x115a   : > { %v2862_v5 = vsub.f32 %v2850_v6, %v2857_v16 }
0x115b   : > { %v5160_v18 = vpop.eup %4211  ;;  %v2553_v40 = vor.u32 1.1754944e-38, %v2552_v33  ;;  %vm2551_vm12 = vcmp.eq.f32.partialorder %v2550_v34, 8.507059e+37 }
0x115c   : > { %v2866_v19 = vmul.f32 1.442695, %v2862_v5  ;;  %v2876_v58 = vsel %vm668_vm1, %v5160_v18, 0.0 }
0x115d   : > { %2877 = vadd.xlane.f32.xlu2 %v2876_v58 }
0x115e   : > { %4215 = vpow2.f32 %v2866_v19 }
0x115f   : > { %v4214_v20 = vpop.eup %4213 }
0x1160   : > { %v2542_v23 = vmul.f32 %v4214_v20, %v2534_v2  ;;  %vm2547_vm8 = vweird.f32 %v4214_v20 }
0x1161   : > { %v2587_v29 = vpop.permute.xlu2 %2586  ;;  %vm2548_vm11 = vmor %vm2546_vm10, %vm2547_vm8 }
0x1162   : > { %v2543_v31 = vsub.f32 1.0, %v2542_v23  ;;  %2607 = vmatpush.msrb.mxu0 %v2587_v29 }
0x1164   : > { %3965 = vmatpush.xpose.msk.msra.mxu0 %vm668_vm1, %v5167_v24  ;;  %v5171_v25 = vpop.eup %4215  ;;  %v2544_v26 = vmul.f32 %v4214_v20, %v2543_v31 }
0x1165   : > { %v2873_v37 = vsel %vm668_vm1, %v5171_v25, 0.0 }
0x1166   : > { %v2545_v38 = vadd.f32 %v4214_v20, %v2544_v26  ;;  %2874 = vadd.xlane.f32.xlu0 %v2873_v37 }
0x1168   : > { %3966 = vmatpush.xpose.msk.msra.mxu0 %vm668_vm1, %v5176_v36  ;;  %v2549_v41 = vsel %vm2548_vm11, %v4214_v20, %v2545_v38 }
0x1169   : > { %v2554_v42 = vsel %vm2551_vm12, %v2553_v40, %v2549_v41 }
0x116a   : > { %v2555_v9 = vmul.f32 %v4208_v53, %v2554_v42 }
0x116c   : > { %3967 = vmatpush.xpose.msk.msra.mxu0 %vm668_vm1, %v5185_v35 }
0x116d   : > { %3955 = vmatmul.msk.f32.vlgmr.msrb.gmra.mxu0 %vm668_vm1, %v2555_v9 }
0x1170   : > { %3968 = vmatpush.xpose.msk.msra.mxu0 %vm668_vm1, %v5193_v44  ;;  %v2925_v63 = vpop.permute.xlu1 %2924 }
0x1171   : > { %2945 = vmatpush.msrb.mxu3 %v2925_v63 }
0x1173   : > { %2997 = vmatpush.msra.mxu3 %v4115_v45 }
0x1175   : > { %3969 = vmatmul.msk.f32.vlgmr.msra.gmra.mxu0 %vm668_vm1, %v5122_v27  ;;  %3058 = vrot.lane.b32.xlu2 %v5038_v62, %s5602_s16  ;;  %v3087_v27 = vpop.permute.xlu0 %3086  ;;  %s5604_s16 = smov 40  }
0x1178   : > { %v5202_v46 = vpop.permute.xlu1 %3084 }
0x117a   : > { %3056 = vrot.lane.b32.xlu0 %v5038_v62, %s5603_s18 }
0x117d   : > { %3970 = vmatmul.msk.f32.gmra.mxu0 %vm668_vm1, %v5097_v21  ;;  %3112 = vrot.lane.b32.xlu2 %v5046_v0, %s5603_s18 }
0x1180   : > { %v3115_v13 = vpop.permute.xlu1 %3114 }
0x1181   : > { %3992 = vmatpush.xpose.msk.msrb.mxu0 %vm668_vm1, %v3115_v13 }
0x1185   : > { %3971 = vmatmul.msk.f32.gmra.mxu0 %vm668_vm1, %v5101_v30 }
0x11bf   : > { %v2872_v47 = vpop.xlane.xlu0 %2871 }
0x11c0   : > { %4217 = vrcp.f32 %v2872_v47  ;;  %v2890_v51 = vand.u32 2147483648, %v2872_v47  ;;  %v2888_v53 = vand.u32 2147483647, %v2872_v47  ;;  %vm2884_vm14 = vweird.f32 %v2872_v47 }
0x11c2   : > { %v2891_v55 = vor.u32 1.1754944e-38, %v2890_v51  ;;  %vm2889_vm2 = vcmp.eq.f32.partialorder %v2888_v53, 8.507059e+37 }
0x11c6   : > { %v4218_v48 = vpop.eup %4217 }
0x11c7   : > { %v2880_v28 = vmul.f32 %v4218_v48, %v2872_v47  ;;  %vm2885_vm13 = vweird.f32 %v4218_v48 }
0x11c8   : > { %vm2886_vm15 = vmor %vm2884_vm14, %vm2885_vm13 }
0x11c9   : > { %v2881_v50 = vsub.f32 1.0, %v2880_v28 }
0x11cb   : > { %v2882_v52 = vmul.f32 %v4218_v48, %v2881_v50 }
0x11cd   : > { %v2883_v21 = vadd.f32 %v4218_v48, %v2882_v52 }
0x11cf   : > { %v2887_v56 = vsel %vm2886_vm15, %v4218_v48, %v2883_v21 }
0x11d0   : > { %v2892_v6 = vsel %vm2889_vm2, %v2891_v55, %v2887_v56  ;;  %v2878_v57 = vpop.xlane.xlu2 %2877 }
0x11d1   : > { %4219 = vrcp.f32 %v2878_v57  ;;  %v2893_v30 = vmul.f32 %v5156_v1, %v2892_v6  ;;  %v2920_v3 = vand.u32 2147483648, %v2878_v57  ;;  %v2918_v12 = vand.u32 2147483647, %v2878_v57 }
0x11d2   : > { %vm2914_vm4 = vweird.f32 %v2878_v57 }
0x11d3   : > { %3978 = vmatmul.msk.f32.vlgmr.msrb.gmra.mxu3 %vm668_vm1, %v2893_v30  ;;  %v2921_v1 = vor.u32 1.1754944e-38, %v2920_v3  ;;  %vm2919_vm6 = vcmp.eq.f32.partialorder %v2918_v12, 8.507059e+37 }
0x11d4   : > { %3990 = vmatpush.xpose.msk.msrb.mxu3 %vm668_vm1, %v3087_v27 }
0x11d7   : > { %v4220_v4 = vpop.eup %4219 }
0x11d8   : > { %v2910_v61 = vmul.f32 %v4220_v4, %v2878_v57  ;;  %v3059_v8 = vpop.permute.xlu2 %3058  ;;  %vm2915_vm3 = vweird.f32 %v4220_v4 }
0x11d9   : > { %v2875_v60 = vpop.xlane.xlu0 %2874  ;;  %3988 = vmatpush.xpose.msk.msrb.mxu1 %vm668_vm1, %v3059_v8  ;;  %vm2916_vm5 = vmor %vm2914_vm4, %vm2915_vm3 }
0x11da   : > { %v2911_v14 = vsub.f32 1.0, %v2910_v61  ;;  %4221 = vrcp.f32 %v2875_v60  ;;  %v2905_v29 = vand.u32 2147483648, %v2875_v60  ;;  %v2903_v33 = vand.u32 2147483647, %v2875_v60 }
0x11db   : > { %vm2899_vm8 = vweird.f32 %v2875_v60 }
0x11dc   : > { %v2912_v11 = vmul.f32 %v4220_v4, %v2911_v14  ;;  %v2906_v34 = vor.u32 1.1754944e-38, %v2905_v29  ;;  %vm2904_vm11 = vcmp.eq.f32.partialorder %v2903_v33, 8.507059e+37 }
0x11de   : > { %v2913_v15 = vadd.f32 %v4220_v4, %v2912_v11 }
0x11e0   : > { %v4222_v2 = vpop.eup %4221  ;;  %v2917_v16 = vsel %vm2916_vm5, %v4220_v4, %v2913_v15  ;;  %v3113_v5 = vpop.permute.xlu2 %3112 }
0x11e1   : > { %v2922_v19 = vsel %vm2919_vm6, %v2921_v1, %v2917_v16  ;;  %v2895_v58 = vmul.f32 %v4222_v2, %v2875_v60  ;;  %3993 = vmatmul.msk.f32.vlgmr.msrb.gmra.mxu0 %vm668_vm1, %v3113_v5  ;;  %vm2900_vm7 = vweird.f32 %v4222_v2  ;;  %v4117_v1 = vpack.i.bf16 %v5042_v54, %v5038_v62 }
0x11e2   : > { %v2923_v20 = vmul.f32 %v5160_v18, %v2922_v19  ;;  %vm2901_vm10 = vmor %vm2899_vm8, %vm2900_vm7 }
0x11e3   : > { %v2896_v23 = vsub.f32 1.0, %v2895_v58 }
0x11e4   : > { %3980 = vmatmul.msk.f32.vlgmr.msra.gmra.mxu3 %vm668_vm1, %v2923_v20 }
0x11e5   : > { %v2897_v31 = vmul.f32 %v4222_v2, %v2896_v23 }
0x11e7   : > { %v2898_v26 = vadd.f32 %v4222_v2, %v2897_v31 }
0x11e9   : > { %v2902_v37 = vsel %vm2901_vm10, %v4222_v2, %v2898_v26 }
0x11ea   : > { %v2907_v38 = vsel %vm2904_vm11, %v2906_v34, %v2902_v37  ;;  %v5225_v41 = vpop.f32.mrf.mxu0 }
0x11eb   : > { %v2908_v40 = vmul.f32 %v5171_v25, %v2907_v38 }
0x11ec   : > { %3991 = vmatmul.msk.f32.vlgmr.msrb.gmra.mxu3 %vm668_vm1, %v5202_v46  ;;  %v3057_v18 = vpop.permute.xlu0 %3056 }
0x11ed   : > { %3979 = vmatmul.msk.f32.vlgmr.msra.gmra.mxu1 %vm668_vm1, %v2908_v40 }
0x11f2   : > { %v5227_v42 = vpop.f32.mrf.mxu0 }
0x11f5   : > { %3989 = vmatmul.msk.f32.vlgmr.msrb.gmra.mxu1 %vm668_vm1, %v3057_v18 }
0x11fa   : > { %v5229_v9 = vpop.f32.mrf.mxu0 }
0x1202   : > { %v5231_v45 = vpop.f32.mrf.mxu0 }
0x1256   : > { %v5233_v13 = vpop.f32.mrf.mxu3 }
0x125e   : > { %v3137_v63 = vpop.f32.mrf.mxu0 }
0x125f   : > { %v3142_v25 = vmul.f32 0.35355338, %v3137_v63 }
0x1261   : > { %v3145_v27 = vadd.f32 %v3142_v25, %v4579_v32 }
0x1263   : > { %v3152_v46 = vsel %vm668_vm1, %v3145_v27, -inf }
0x1264   : > { %3153 = vmax.xlane.f32.xlu2 %v3152_v46 }
0x1267   : > { %v5237_v47 = vpop.f32.mrf.mxu3 }
0x126a   : > { %v5239_v48 = vpop.f32.mrf.mxu1 }
0x126f   : > { %v3109_v28 = vpop.f32.mrf.mxu3 }
0x1270   : > { %v3141_v50 = vmul.f32 0.35355338, %v3109_v28 }
0x1272   : > { %v3081_v51 = vpop.f32.mrf.mxu1  ;;  %v3144_v52 = vadd.f32 %v3141_v50, %v4584_v39 }
0x1273   : > { %v3140_v53 = vmul.f32 0.35355338, %v3081_v51 }
0x1274   : > { %v3149_v21 = vsel %vm668_vm1, %v3144_v52, -inf }
0x1275   : > { %3150 = vmax.xlane.f32.xlu1 %v3149_v21  ;;  %v3143_v55 = vadd.f32 %v3140_v53, %v4610_v59 }
0x1277   : > { %v3146_v32 = vsel %vm668_vm1, %v3143_v55, -inf }
0x1278   : > { %3147 = vmax.xlane.f32.xlu0 %v3146_v32 }
0x12d7   : > { %v3154_v56 = vpop.xlane.xlu2 %3153 }
0x12d8   : > { %v3157_v6 = vsub.f32 %v3145_v27, %v3154_v56 }
0x12da   : > { %v3162_v57 = vmul.f32 1.442695, %v3157_v6 }
0x12dc   : > { %4223 = vpow2.f32 %v3162_v57 }
0x12e2   : > { %v5245_v30 = vpop.eup %4223 }
0x12e3   : > { %v3170_v4 = vsel %vm668_vm1, %v5245_v30, 0.0 }
0x12e4   : > { %3171 = vadd.xlane.f32.xlu1 %v3170_v4 }
0x12e8   : > { %v3151_v39 = vpop.xlane.xlu1 %3150 }
0x12e9   : > { %v3156_v61 = vsub.f32 %v3144_v52, %v3151_v39 }
0x12eb   : > { %v3160_v8 = vmul.f32 1.442695, %v3156_v61  ;;  %v3148_v60 = vpop.xlane.xlu0 %3147 }
0x12ec   : > { %v3155_v14 = vsub.f32 %v3143_v55, %v3148_v60 }
0x12ed   : > { %4225 = vpow2.f32 %v3160_v8 }
0x12ee   : > { %v3158_v59 = vmul.f32 1.442695, %v3155_v14 }
0x12f0   : > { %4227 = vpow2.f32 %v3158_v59 }
0x12f3   : > { %v5249_v3 = vpop.eup %4225 }
0x12f4   : > { %v3167_v11 = vsel %vm668_vm1, %v5249_v3, 0.0 }
0x12f5   : > { %3168 = vadd.xlane.f32.xlu0 %v3167_v11 }
0x12f6   : > { %v5253_v12 = vpop.eup %4227 }
0x12f7   : > { %v3164_v15 = vsel %vm668_vm1, %v5253_v12, 0.0 }
0x12f8   : > { %3165 = vadd.xlane.f32.xlu2 %v3164_v15 }
0x12fd   : > { %2674 = vrot.lane.b32.xlu1 %v5167_v24, %s4330_s30 }
0x1305   : > { %2668 = vrot.lane.b32.xlu1 %v5193_v44, %s4330_s30 }
0x1309   : > { %3270 = vrot.lane.b32.xlu0 %v5046_v0, %s5604_s16 }
0x130d   : > { %3004 = vrot.lane.b32.xlu1 %v5185_v35, %s5599_s25 }
0x1310   : > { %4118 = vrot.lane.b32.xlu2 %v4117_v1, %s5604_s16  ;;  %s4284_s16 = scalar_lea.hbm %s5559_s15, 6 }
0x1311   : > { %2672 = vrot.lane.b32.xlu0 %v5176_v36, %s4330_s30 }
0x1315   : > { %3300 = vrot.lane.b32.xlu1 %v5176_v36, %s5603_s18 }
0x1318   : > { %2670 = vrot.lane.b32.xlu2 %v5185_v35, %s4330_s30 }
0x1319   : > { %3008 = vrot.lane.b32.xlu0 %v5167_v24, %s5599_s25 }
0x1320   : > { %3006 = vrot.lane.b32.xlu2 %v5176_v36, %s5599_s25 }
0x1321   : > { %3302 = vrot.lane.b32.xlu0 %v5167_v24, %s5603_s18 }
0x1328   : > { %3002 = vrot.lane.b32.xlu2 %v5193_v44, %s5599_s25  ;;  %s3748_s25 = scalar_lea.hbm %s5559_s15, %s4498_s27 }
0x1329   : > { %3298 = vrot.lane.b32.xlu0 %v5185_v35, %s5603_s18  ;;  %s5510_s27 = sshll.u32 %s3748_s25, 4  ;;  %s3752_s27 = int_to_ptr.hbm [resolvable:$true] %s5510_s27 }
0x132a   : > { %s4278_s26 = sshra.s32 %s3752_s27, 4  ;;  %s4279_s26 = int_to_ptr.hbm [resolvable:$true] %s4278_s26 }
0x132b   : > { %s4280_s22 = scalar_lea.hbm %s4279_s26, 3  ;;  %p4285_p0 = scmp.lt.s32.totalorder %s4279_s26, %s5559_s15 }
0x132c   : > { %p4281_p11 = scmp.ne.s32.totalorder %s4279_s26, %s4280_s22  ;;  %p4286_p1 = scmp.lt.s32.totalorder %s4284_s16, %s4280_s22 }
0x132e   : > { %p4282_p12 = pnand %p4281_p11, %p4459_p5  ;;  %p4287_p2 = por %p4286_p1, %p4285_p0 }
0x1330   : > { %3296 = vrot.lane.b32.xlu2 %v5193_v44, %s5603_s18  ;;  %s502_s18 = scalar_lea.vmem [#allocation2], %s4028_s29  ;;  %p4283_p13 = pneg %p4282_p12 }
0x1331   : > { %s3749_s24 = sshll.u32 %s502_s18, 4  ;;  %s3750_s24 = int_to_ptr.vmem [resolvable:$true] %s3749_s24 }
0x1332   : > { %p4288_p3 = pnand %p4287_p2, %p4283_p13 }
0x1357   : > { %v3172_v62 = vpop.xlane.xlu1 %3171 }
0x1358   : > { %4229 = vrcp.f32 %v3172_v62  ;;  %v3212_v35 = vand.u32 2147483647, %v3172_v62  ;;  %v3214_v44 = vand.u32 2147483648, %v3172_v62  ;;  %vm3208_vm13 = vweird.f32 %v3172_v62 }
0x135a   : > { %vm3213_vm2 = vcmp.eq.f32.partialorder %v3212_v35, 8.507059e+37  ;;  %v3215_v27 = vor.u32 1.1754944e-38, %v3214_v44 }
0x135e   : > { %v4230_v54 = vpop.eup %4229 }
0x135f   : > { %v3204_v0 = vmul.f32 %v4230_v54, %v3172_v62  ;;  %vm3209_vm12 = vweird.f32 %v4230_v54 }
0x1360   : > { %vm5287_vm14 = vmor %vm3208_vm13, %vm3209_vm12 }
0x1361   : > { %v3205_v16 = vsub.f32 1.0, %v3204_v0 }
0x1363   : > { %v3206_v5 = vmul.f32 %v4230_v54, %v3205_v16 }
0x1365   : > { %v3207_v20 = vadd.f32 %v4230_v54, %v3206_v5 }
0x1367   : > { %v3211_v63 = vsel %vm5287_vm14, %v4230_v54, %v3207_v20 }
0x1368   : > { %v3169_v2 = vpop.xlane.xlu0 %3168  ;;  %v3216_v53 = vsel %vm3213_vm2, %v3215_v27, %v3211_v63  ;;  %v575_v27 = vld [vmem:[%s5555_s11 + $0x78] sm:$0xff] }
0x1369   : > { %4231 = vrcp.f32 %v3169_v2  ;;  %v3197_v31 = vand.u32 2147483647, %v3169_v2  ;;  %v3199_v33 = vand.u32 2147483648, %v3169_v2  ;;  %vm3193_vm3 = vweird.f32 %v3169_v2 }
0x136a   : > { %v3217_v39 = vmul.f32 %v5245_v30, %v3216_v53 }
0x136b   : > { %v3166_v36 = vpop.xlane.xlu2 %3165  ;;  %v3200_v50 = vor.u32 1.1754944e-38, %v3199_v33  ;;  %vm3198_vm6 = vcmp.eq.f32.partialorder %v3197_v31, 8.507059e+37 }
0x136c   : > { %4233 = vrcp.f32 %v3166_v36  ;;  %v3184_v28 = vand.u32 2147483648, %v3166_v36  ;;  %v3182_v52 = vand.u32 2147483647, %v3166_v36  ;;  %vm3178_vm7 = vweird.f32 %v3166_v36 }
0x136e   : > { %v3185_v56 = vor.u32 1.1754944e-38, %v3184_v28  ;;  %vm3183_vm10 = vcmp.eq.f32.partialorder %v3182_v52, 8.507059e+37 }
0x136f   : > { %v4232_v24 = vpop.eup %4231  ;;  %v2675_v19 = vpop.permute.xlu1 %2674 }
0x1370   : > { %v3189_v58 = vmul.f32 %v4232_v24, %v3169_v2  ;;  %3958 = vmatpush.xpose.msk.msrb.mxu2 %vm668_vm1, %v2675_v19  ;;  %vm3194_vm15 = vweird.f32 %v4232_v24 }
0x1371   : > { %vm3195_vm4 = vmor %vm3193_vm3, %vm3194_vm15 }
0x1372   : > { %v4234_v23 = vpop.eup %4233  ;;  %v3190_v29 = vsub.f32 1.0, %v3189_v58 }
0x1373   : > { %v3174_v26 = vmul.f32 %v4234_v23, %v3166_v36  ;;  %v4119_v34 = vpop.permute.xlu2 %4118  ;;  %vm3179_vm5 = vweird.f32 %v4234_v23 }
0x1374   : > { %v3191_v38 = vmul.f32 %v4232_v24, %v3190_v29  ;;  %v4121_v40 = vunpack.i.h.bf16 %v4119_v34  ;;  %v4120_v18 = vunpack.i.l.bf16 %v4119_v34  ;;  %vm3180_vm8 = vmor %vm3178_vm7, %vm3179_vm5 }
0x1375   : > { %v3175_v25 = vsub.f32 1.0, %v3174_v26 }
0x1376   : > { %v3192_v46 = vadd.f32 %v4232_v24, %v3191_v38  ;;  %3239 = vmatpush.msra.mxu1 %v4120_v18  ;;  %3265 = vmatpush.msra.mxu3 %v4121_v40 }
0x1377   : > { %v3176_v51 = vmul.f32 %v4234_v23, %v3175_v25  ;;  %v2669_v59 = vpop.permute.xlu1 %2668 }
0x1378   : > { %v3196_v21 = vsel %vm3195_vm4, %v4232_v24, %v3192_v46 }
0x1379   : > { %v3201_v55 = vsel %vm3198_vm6, %v3200_v50, %v3196_v21  ;;  %v3177_v32 = vadd.f32 %v4234_v23, %v3176_v51 }
0x137a   : > { %v3202_v6 = vmul.f32 %v5249_v3, %v3201_v55 }
0x137b   : > { %v3181_v57 = vsel %vm3180_vm8, %v4234_v23, %v3177_v32  ;;  %v3271_v4 = vpop.permute.xlu0 %3270  ;;  %v2671_v14 = vpop.permute.xlu2 %2670 }
0x137c   : > { %v3186_v61 = vsel %vm3183_vm10, %v3185_v56, %v3181_v57  ;;  %3995 = vmatmul.msk.f32.vlgmr.msra.gmra.mxu3 %vm668_vm1, %v3202_v6  ;;  %3291 = vmatpush.msra.mxu0 %v3271_v4  ;;  %v574_v4 = vld [vmem:[%s5555_s11 + $0x70] sm:$0xff] }
0x137d   : > { %3996 = vmatmul.msk.f32.vlgmr.msra.gmra.mxu0 %vm668_vm1, %v3217_v39  ;;  %v3187_v8 = vmul.f32 %v5253_v12, %v3186_v61  ;;  %v573_v39 = vld [vmem:[%s5555_s11 + $0x68] sm:$0xff]  ;;  %v572_v61 = vld [vmem:[%s5555_s11 + $0x60] sm:$0xff] }
0x137f   : > { %3994 = vmatmul.msk.f32.vlgmr.msra.gmra.mxu1 %vm668_vm1, %v3187_v8  ;;  %v3005_v11 = vpop.permute.xlu1 %3004  ;;  %v571_v8 = vld [vmem:[%s5555_s11 + $0x58] sm:$0xff] }
0x1383   : > { %v2673_v60 = vpop.permute.xlu0 %2672  ;;  %v3007_v30 = vpop.permute.xlu2 %3006 }
0x1384   : > { %3959 = vmatpush.xpose.msk.msrb.mxu2 %vm668_vm1, %v2673_v60  ;;  %v570_v60 = vld [vmem:[%s5555_s11 + $0x50] sm:$0xff] }
0x1387   : > { %v3301_v1 = vpop.permute.xlu1 %3300 }
0x1388   : > { %3960 = vmatpush.xpose.msk.msrb.mxu2 %vm668_vm1, %v2671_v14  ;;  %v569_v14 = vld [vmem:[%s5555_s11 + $0x48] sm:$0xff] }
0x138b   : > { %v3009_v3 = vpop.permute.xlu0 %3008  ;;  %v3003_v12 = vpop.permute.xlu2 %3002 }
0x138c   : > { %3961 = vmatpush.xpose.msk.msrb.mxu2 %vm668_vm1, %v2669_v59  ;;  %v568_v59 = vld [vmem:[%s5555_s11 + $0x40] sm:$0xff] }
0x138f   : > { %3962 = vmatmul.msk.f32.vlgmr.msrb.gmra.mxu2 %vm668_vm1, %v5225_v41 }
0x1390   : > { %3981 = vmatpush.xpose.msk.msra.mxu2 %vm668_vm1, %v3009_v3 }
0x1393   : > { %v3303_v15 = vpop.permute.xlu0 %3302  ;;  %v3297_v62 = vpop.permute.xlu2 %3296 }
0x1394   : > { %3982 = vmatpush.xpose.msk.msra.mxu2 %vm668_vm1, %v3007_v30  ;;  %3997 = vmatpush.xpose.msk.msrb.mxu1 %vm668_vm1, %v3303_v15 }
0x1397   : > { %3963 = vmatmul.msk.f32.gmra.mxu2 %vm668_vm1, %v5134_v43 }
0x1398   : > { %3983 = vmatpush.xpose.msk.msra.mxu2 %vm668_vm1, %v3005_v11  ;;  %3998 = vmatpush.xpose.msk.msrb.mxu1 %vm668_vm1, %v3301_v1 }
0x139b   : > { %v3299_v41 = vpop.permute.xlu0 %3298 }
0x139c   : > { %3984 = vmatpush.xpose.msk.msra.mxu2 %vm668_vm1, %v3003_v12  ;;  %3999 = vmatpush.xpose.msk.msrb.mxu1 %vm668_vm1, %v3299_v41 }
0x139f   : > { %3964 = vmatmul.msk.f32.gmra.mxu2 %vm668_vm1, %v5138_v49 }
0x13a0   : > { %4000 = vmatpush.xpose.msk.msrb.mxu1 %vm668_vm1, %v3297_v62  ;;  %4004 = vmatpush.xpose.msk.msrb.mxu2 %vm593_vm0, %v575_v27 }
0x13a4   : > { %4005 = vmatpush.xpose.msk.msrb.mxu2 %vm593_vm0, %v574_v4 }
0x13a7   : > { %3985 = vmatmul.msk.f32.vlgmr.msra.gmra.mxu2 %vm668_vm1, %v5233_v13 }
0x13a8   : > { %4006 = vmatpush.xpose.msk.msrb.mxu2 %vm593_vm0, %v573_v39 }
0x13ac   : > { %4007 = vmatpush.xpose.msk.msrb.mxu2 %vm593_vm0, %v572_v61  ;;  %v4258_v61 = vld [vmem:[%s5558_s14] sm:$0x3] }
0x13af   : > { %3986 = vmatmul.msk.f32.gmra.mxu2 %vm668_vm1, %v5239_v48 }
0x13b0   : > { %4008 = vmatpush.xpose.msk.msrb.mxu2 %vm593_vm0, %v571_v8  ;;  %v3494_v8 = vperm.slane %v4258_v61, 1 }
0x13b4   : > { %4009 = vmatpush.xpose.msk.msrb.mxu2 %vm593_vm0, %v570_v60 }
0x13b7   : > { %3987 = vmatmul.msk.f32.gmra.mxu2 %vm668_vm1, %v5237_v47  ;;  %v4254_v47 = vld [vmem:[%s5550_s6] sm:$0x3] }
0x13b8   : > { %v3350_v48 = vperm.slane %v4254_v47, 1  ;;  %4010 = vmatpush.xpose.msk.msrb.mxu2 %vm593_vm0, %v569_v14  ;;  %v582_v47 = vld [vmem:[%s5557_s13 + $0x28] sm:$0xff] }
0x13bc   : > { %4011 = vmatpush.xpose.msk.msrb.mxu2 %vm593_vm0, %v568_v59 }
0x13fa   : > { %v3293_v49 = vpop.f32.mrf.mxu0 }
0x13fc   : > { %v3241_v43 = vpop.f32.mrf.mxu1 }
0x13fd   : > { %4001 = vmatmul.msk.f32.vlgmr.msrb.gmra.mxu1 %vm668_vm1, %v3241_v43  ;;  %v584_v43 = vld [vmem:[%s5557_s13 + $0x38] sm:$0xff] }
0x13fe   : > { %4015 = vmatpush.xpose.msk.msrb.mxu3 %vm1990_vm9, %v584_v43 }
0x13ff   : > { %v3267_v54 = vpop.f32.mrf.mxu3 }
0x1405   : > { %4002 = vmatmul.msk.f32.gmra.mxu1 %vm668_vm1, %v3267_v54 }
0x140d   : > { %4003 = vmatmul.msk.f32.gmra.mxu1 %vm668_vm1, %v3293_v49  ;;  %v583_v49 = vld [vmem:[%s5557_s13 + $0x30] sm:$0xff] }
0x140e   : > { %4016 = vmatpush.xpose.msk.msrb.mxu3 %vm1990_vm9, %v583_v49 }
0x1412   : > { %v2710_v0 = vpop.f32.mrf.mxu2  ;;  %4017 = vmatpush.xpose.msk.msrb.mxu3 %vm1990_vm9, %v582_v47 }
0x1413   : > { %v2754_v13 = vadd.f32 %v5227_v42, %v2710_v0 }
0x141a   : > { %v2713_v2 = vpop.f32.mrf.mxu2 }
0x141b   : > { %v2757_v35 = vadd.f32 %v5229_v9, %v2713_v2 }
0x1422   : > { %v2716_v16 = vpop.f32.mrf.mxu2 }
0x1423   : > { %v2760_v34 = vadd.f32 %v5231_v45, %v2716_v16 }
0x142a   : > { %v3044_v36 = vpop.f32.mrf.mxu2 }
0x142b   : > { %v3053_v5 = vadd.f32 %v3044_v36, %v2754_v13 }
0x1432   : > { %v3047_v58 = vpop.f32.mrf.mxu2 }
0x1433   : > { %v3054_v44 = vadd.f32 %v3047_v58, %v2757_v35 }
0x143a   : > { %v3050_v26 = vpop.f32.mrf.mxu2 }
0x143b   : > { %v3055_v38 = vadd.f32 %v3050_v26, %v2760_v34 }
0x147a   : > { %v3338_v24 = vpop.f32.mrf.mxu1 }
0x147b   : > { %v3347_v19 = vadd.f32 %v3338_v24, %v3053_v5 }
0x147d   : > { %v3351_v20 = vadd.f32 %v3350_v48, %v3347_v19  ;;  %v4255_v19 = vld [vmem:[%s5551_s7] sm:$0x3] }
0x147e   : > { %v3423_v58 = vperm.slane %v4255_v19, 1 }
0x147f   : > { %v3354_v23 = vadd.f32 %v3351_v20, %v5021_v10 }
0x1481   : > { %v3357_v29 = vsel %vm593_vm0, %v3354_v23, 0.0 }
0x1482   : > { %3358 = vadd.xlane.f32.xlu1 %v3357_v29  ;;  %v3341_v31 = vpop.f32.mrf.mxu1 }
0x1483   : > { %v3348_v42 = vadd.f32 %v3341_v31, %v3054_v44  ;;  %v4256_v44 = vld [vmem:[%s5552_s8] sm:$0x3] }
0x1484   : > { %v3427_v29 = vperm.slane %v4256_v44, 1 }
0x1485   : > { %v3352_v33 = vadd.f32 %v3350_v48, %v3348_v42 }
0x1487   : > { %v3355_v37 = vadd.f32 %v3352_v33, %v5026_v22 }
0x1489   : > { %v3360_v40 = vsel %vm593_vm0, %v3355_v37, 0.0 }
0x148a   : > { %3361 = vadd.xlane.f32.xlu0 %v3360_v40  ;;  %v3344_v18 = vpop.f32.mrf.mxu1 }
0x148b   : > { %v3349_v9 = vadd.f32 %v3344_v18, %v3055_v38 }
0x148d   : > { %v3353_v63 = vadd.f32 %v3350_v48, %v3349_v9 }
0x148f   : > { %v3356_v10 = vadd.f32 %v3353_v63, %v5031_v7 }
0x1491   : > { %v3363_v25 = vsel %vm593_vm0, %v3356_v10, 0.0 }
0x1492   : > { %3364 = vadd.xlane.f32.xlu2 %v3363_v25 }
0x14f5   : > { %v3359_v45 = vpop.xlane.xlu1 %3358 }
0x14f6   : > { %v3366_v22 = vmul.f32 %v3359_v45, %v4859_v17 }
0x14f8   : > { %v5342_v46 = vsub.f32 %v3354_v23, %v3366_v22 }
0x14fa   : > { %v3372_v28 = vmul.f32 %v5342_v46, %v5342_v46 }
0x14fc   : > { %v3375_v50 = vsel %vm593_vm0, %v3372_v28, 0.0 }
0x14fd   : > { %3376 = vadd.xlane.f32.xlu1 %v3375_v50  ;;  %v3362_v7 = vpop.xlane.xlu0 %3361 }
0x14fe   : > { %v3367_v51 = vmul.f32 %v3362_v7, %v4859_v17  ;;  %v581_v7 = vld [vmem:[%s5557_s13 + $0x20] sm:$0xff] }
0x14ff   : > { %4018 = vmatpush.xpose.msk.msrb.mxu3 %vm1990_vm9, %v581_v7 }
0x1500   : > { %v5348_v52 = vsub.f32 %v3355_v37, %v3367_v51  ;;  %v4257_v51 = vld [vmem:[%s5556_s12] sm:$0x3] }
0x1502   : > { %v3373_v53 = vmul.f32 %v5348_v52, %v5348_v52 }
0x1504   : > { %v3378_v21 = vsel %vm593_vm0, %v3373_v53, 0.0 }
0x1505   : > { %3379 = vadd.xlane.f32.xlu0 %v3378_v21  ;;  %v3365_v55 = vpop.xlane.xlu2 %3364 }
0x1506   : > { %v3368_v32 = vmul.f32 %v3365_v55, %v4859_v17 }
0x1508   : > { %v5354_v56 = vsub.f32 %v3356_v10, %v3368_v32 }
0x150a   : > { %v3374_v6 = vmul.f32 %v5354_v56, %v5354_v56 }
0x150c   : > { %v3381_v57 = vsel %vm593_vm0, %v3374_v6, 0.0 }
0x150d   : > { %3382 = vadd.xlane.f32.xlu2 %v3381_v57 }
0x1570   : > { %v3377_v3 = vpop.xlane.xlu1 %3376 }
0x1571   : > { %v3384_v30 = vmul.f32 %v3377_v3, %v4859_v17 }
0x1573   : > { %v3387_v11 = vadd.f32 1e-05, %v3384_v30 }
0x1575   : > { %4235 = vrsqrt.f32 %v3387_v11  ;;  %vm3396_vm11 = vweird.f32 %v3387_v11 }
0x1578   : > { %v3380_v12 = vpop.xlane.xlu0 %3379 }
0x1579   : > { %v3385_v15 = vmul.f32 %v3380_v12, %v4859_v17 }
0x157b   : > { %v4236_v1 = vpop.eup %4235  ;;  %v3388_v41 = vadd.f32 1e-05, %v3385_v15 }
0x157c   : > { %v3391_v62 = vmul.f32 %v4236_v1, %v3387_v11  ;;  %vm3397_vm1 = vweird.f32 %v4236_v1 }
0x157d   : > { %4237 = vrsqrt.f32 %v3388_v41  ;;  %vm3398_vm12 = vmor %vm3396_vm11, %vm3397_vm1  ;;  %vm3406_vm14 = vweird.f32 %v3388_v41 }
0x157e   : > { %v3392_v54 = vmul.f32 %v4236_v1, %v3391_v62 }
0x1580   : > { %v3393_v0 = vmul.f32 0.5, %v3392_v54  ;;  %v3383_v2 = vpop.xlane.xlu2 %3382  ;;  %v3623_v54 = vlaneseq }
0x1581   : > { %v3386_v16 = vmul.f32 %v3383_v2, %v4859_v17 }
0x1582   : > { %v3394_v36 = vsub.f32 1.5, %v3393_v0  ;;  %v3624_v49 = vshrl.u32 %v3623_v54, 7 }
0x1583   : > { %v4238_v13 = vpop.eup %4237  ;;  %v3389_v5 = vadd.f32 1e-05, %v3386_v16 }
0x1584   : > { %v3395_v48 = vmul.f32 %v4236_v1, %v3394_v36  ;;  %v3401_v24 = vmul.f32 %v4238_v13, %v3388_v41  ;;  %vm3407_vm13 = vweird.f32 %v4238_v13  ;;  %4122 = vset.pattern.permute.xlu1 %v3624_v49  ;;  %4123 = vset.pattern.permute.xlu0 %v3624_v49 }
0x1585   : > { %4239 = vrsqrt.f32 %v3389_v5  ;;  %vm3408_vm15 = vmor %vm3406_vm14, %vm3407_vm13  ;;  %vm3416_vm3 = vweird.f32 %v3389_v5  ;;  %4124 = vset.pattern.permute.xlu2 %v3624_v49  ;;  %vm3733_vm13 = vcmask 253952  }
0x1586   : > { %v3399_v20 = vsel %vm3398_vm12, %v4236_v1, %v3395_v48  ;;  %v3402_v35 = vmul.f32 %v4238_v13, %v3401_v24 }
0x1587   : > { %v3420_v23 = vmul.f32 %v3399_v20, %v5342_v46 }
0x1588   : > { %v3403_v31 = vmul.f32 0.5, %v3402_v35 }
0x1589   : > { %v3424_v42 = vmul.f32 %v3423_v58, %v3420_v23 }
0x158a   : > { %v3404_v33 = vsub.f32 1.5, %v3403_v31 }
0x158b   : > { %v4240_v26 = vpop.eup %4239  ;;  %v3428_v34 = vadd.f32 %v3427_v29, %v3424_v42  ;;  %v4260_v42 = vld [vmem:[%s4576_s23 + $0x1] sm:$0x1] }
0x158c   : > { %v3405_v37 = vmul.f32 %v4238_v13, %v3404_v33  ;;  %v3411_v38 = vmul.f32 %v4240_v26, %v3389_v5  ;;  %vm3417_vm2 = vweird.f32 %v4240_v26  ;;  %v3620_v33 = vsub.f32 1.0, %v4260_v42 }
0x158d   : > { %4012 = vmatmul.msk.f32.vlgmr.msrb.gmra.mxu2 %vm593_vm0, %v3428_v34  ;;  %vm3418_vm4 = vmor %vm3416_vm3, %vm3417_vm2 }
0x158e   : > { %v3409_v40 = vsel %vm3408_vm15, %v4238_v13, %v3405_v37  ;;  %v3412_v18 = vmul.f32 %v4240_v26, %v3411_v38  ;;  %v4261_v37 = vld [vmem:[%s4576_s23 + $0x2] sm:$0x1] }
0x158f   : > { %v3421_v9 = vmul.f32 %v3409_v40, %v5348_v52  ;;  %v3431_v52 = vperm.slane %v4257_v51, 1  ;;  %v3621_v38 = vsub.f32 1.0, %v4261_v37 }
0x1590   : > { %v3413_v63 = vmul.f32 0.5, %v3412_v18 }
0x1591   : > { %v3425_v10 = vmul.f32 %v3423_v58, %v3421_v9  ;;  %v3636_v40 = vperm.slane %v3621_v38, 0 }
0x1592   : > { %v3414_v25 = vsub.f32 1.5, %v3413_v63 }
0x1593   : > { %v3429_v27 = vadd.f32 %v3427_v29, %v3425_v10 }
0x1594   : > { %v3415_v45 = vmul.f32 %v4240_v26, %v3414_v25 }
0x1595   : > { %4013 = vmatmul.msk.f32.gmra.mxu2 %vm593_vm0, %v3429_v27 }
0x1596   : > { %v3419_v22 = vsel %vm3418_vm4, %v4240_v26, %v3415_v45 }
0x1597   : > { %v3422_v46 = vmul.f32 %v3419_v22, %v5354_v56 }
0x1599   : > { %v3426_v28 = vmul.f32 %v3423_v58, %v3422_v46 }
0x159b   : > { %v3430_v50 = vadd.f32 %v3427_v29, %v3426_v28  ;;  %v4259_v29 = vld [vmem:[%s4576_s23] sm:$0x1]  ;;  %s3738_s23 = scalar_lea.sflag [#allocation3], %s500_s17 }
0x159c   : > { %v3619_v31 = vsub.f32 1.0, %v4259_v29 }
0x159d   : > { %4014 = vmatmul.msk.f32.gmra.mxu2 %vm593_vm0, %v3430_v50 }
0x159e   : > { %v3622_v26 = vperm.slane %v3619_v31, 0 }
0x1610   : > { %v3482_v53 = vpop.f32.mrf.mxu2 }
0x1611   : > { %v3483_v21 = vadd.f32 %v3482_v53, %v3431_v52 }
0x1613   : > { %v3491_v55 = vmax.f32 %v3483_v21, 0.0 }
0x1615   : > { %4019 = vmatmul.msk.f32.vlgmr.msrb.gmra.mxu3 %vm1990_vm9, %v3491_v55 }
0x1618   : > { %v3485_v32 = vpop.f32.mrf.mxu2 }
0x1619   : > { %v3486_v56 = vadd.f32 %v3485_v32, %v3431_v52  ;;  %v4262_v32 = vld [vmem:[%s5553_s9] sm:$0x3] }
0x161b   : > { %v3492_v6 = vmax.f32 %v3486_v56, 0.0  ;;  %v3611_v56 = vperm.slane %v4262_v32, 1 }
0x161d   : > { %4020 = vmatmul.msk.f32.gmra.mxu3 %vm1990_vm9, %v3492_v6 }
0x1620   : > { %v3488_v57 = vpop.f32.mrf.mxu2 }
0x1621   : > { %v3489_v4 = vadd.f32 %v3488_v57, %v3431_v52 }
0x1623   : > { %v3493_v39 = vmax.f32 %v3489_v4, 0.0 }
0x1625   : > { %4021 = vmatmul.msk.f32.gmra.mxu3 %vm1990_vm9, %v3493_v39 }
0x1698   : > { %v3533_v60 = vpop.f32.mrf.mxu3 }
0x1699   : > { %v3534_v14 = vadd.f32 %v3533_v60, %v3494_v8 }
0x169b   : > { %v3542_v59 = vadd.f32 %v3534_v14, %v3428_v34  ;;  %v3629_v34 = vperm.slane %v3620_v33, 0 }
0x169d   : > { %v3545_v3 = vsel %vm593_vm0, %v3542_v59, 0.0 }
0x169e   : > { %3546 = vadd.xlane.f32.xlu1 %v3545_v3 }
0x16a0   : > { %v3536_v30 = vpop.f32.mrf.mxu3 }
0x16a1   : > { %v3537_v11 = vadd.f32 %v3536_v30, %v3494_v8 }
0x16a3   : > { %v3543_v12 = vadd.f32 %v3537_v11, %v3429_v27 }
0x16a5   : > { %v3548_v15 = vsel %vm593_vm0, %v3543_v12, 0.0 }
0x16a6   : > { %3549 = vadd.xlane.f32.xlu0 %v3548_v15 }
0x16a8   : > { %v3539_v1 = vpop.f32.mrf.mxu3 }
0x16a9   : > { %v3540_v41 = vadd.f32 %v3539_v1, %v3494_v8 }
0x16ab   : > { %v3544_v62 = vadd.f32 %v3540_v41, %v3430_v50 }
0x16ad   : > { %v3551_v43 = vsel %vm593_vm0, %v3544_v62, 0.0 }
0x16ae   : > { %3552 = vadd.xlane.f32.xlu2 %v3551_v43 }
0x1711   : > { %v3547_v0 = vpop.xlane.xlu1 %3546 }
0x1712   : > { %v3554_v2 = vmul.f32 %v3547_v0, %v4859_v17 }
0x1714   : > { %v3557_v16 = vsub.f32 %v3542_v59, %v3554_v2 }
0x1716   : > { %v3560_v36 = vmul.f32 %v3557_v16, %v3557_v16 }
0x1718   : > { %v3563_v13 = vsel %vm593_vm0, %v3560_v36, 0.0 }
0x1719   : > { %3564 = vadd.xlane.f32.xlu1 %v3563_v13  ;;  %v3550_v5 = vpop.xlane.xlu0 %3549 }
0x171a   : > { %v3555_v47 = vmul.f32 %v3550_v5, %v4859_v17 }
0x171c   : > { %v5433_v48 = vsub.f32 %v3543_v12, %v3555_v47 }
0x171e   : > { %v3561_v24 = vmul.f32 %v5433_v48, %v5433_v48 }
0x1720   : > { %v3566_v19 = vsel %vm593_vm0, %v3561_v24, 0.0 }
0x1721   : > { %3567 = vadd.xlane.f32.xlu0 %v3566_v19  ;;  %v3553_v58 = vpop.xlane.xlu2 %3552 }
0x1722   : > { %v3556_v20 = vmul.f32 %v3553_v58, %v4859_v17 }
0x1724   : > { %v5439_v35 = vsub.f32 %v3544_v62, %v3556_v20 }
0x1726   : > { %v3562_v23 = vmul.f32 %v5439_v35, %v5439_v35 }
0x1728   : > { %v3569_v44 = vsel %vm593_vm0, %v3562_v23, 0.0 }
0x1729   : > { %3570 = vadd.xlane.f32.xlu2 %v3569_v44 }
0x1732   : > { %3627 = vperm.xlu1 %4122, %v3622_v26  }
0x1735   : > { %3634 = vperm.xlu0 %4123, %v3629_v34  }
0x1741   : > { %3641 = vperm.xlu2 %4124, %v3636_v40  }
0x178c   : > { %v3565_v18 = vpop.xlane.xlu1 %3564 }
0x178d   : > { %v3572_v9 = vmul.f32 %v3565_v18, %v4859_v17 }
0x178f   : > { %v3575_v63 = vadd.f32 1e-05, %v3572_v9 }
0x1791   : > { %4241 = vrsqrt.f32 %v3575_v63  ;;  %vm3584_vm5 = vweird.f32 %v3575_v63 }
0x1794   : > { %v3568_v10 = vpop.xlane.xlu0 %3567 }
0x1795   : > { %v3573_v25 = vmul.f32 %v3568_v10, %v4859_v17 }
0x1797   : > { %v4242_v27 = vpop.eup %4241  ;;  %v3576_v45 = vadd.f32 1e-05, %v3573_v25 }
0x1798   : > { %v3579_v22 = vmul.f32 %v4242_v27, %v3575_v63  ;;  %vm3585_vm9 = vweird.f32 %v4242_v27 }
0x1799   : > { %4243 = vrsqrt.f32 %v3576_v45  ;;  %vm3586_vm6 = vmor %vm3584_vm5, %vm3585_vm9  ;;  %vm3594_vm8 = vweird.f32 %v3576_v45 }
0x179a   : > { %v3580_v46 = vmul.f32 %v4242_v27, %v3579_v22 }
0x179c   : > { %v3581_v28 = vmul.f32 0.5, %v3580_v46  ;;  %v3571_v50 = vpop.xlane.xlu2 %3570 }
0x179d   : > { %v3574_v7 = vmul.f32 %v3571_v50, %v4859_v17  ;;  %v4263_v17 = vld [vmem:[%s5554_s10] sm:$0x3] }
0x179e   : > { %v3582_v51 = vsub.f32 1.5, %v3581_v28  ;;  %v3615_v39 = vperm.slane %v4263_v17, 1 }
0x179f   : > { %v4244_v52 = vpop.eup %4243  ;;  %v3577_v53 = vadd.f32 1e-05, %v3574_v7 }
0x17a0   : > { %v3583_v21 = vmul.f32 %v4242_v27, %v3582_v51  ;;  %v3589_v55 = vmul.f32 %v4244_v52, %v3576_v45  ;;  %vm3595_vm7 = vweird.f32 %v4244_v52 }
0x17a1   : > { %4245 = vrsqrt.f32 %v3577_v53  ;;  %vm3596_vm10 = vmor %vm3594_vm8, %vm3595_vm7  ;;  %vm3604_vm11 = vweird.f32 %v3577_v53 }
0x17a2   : > { %v3590_v6 = vmul.f32 %v4244_v52, %v3589_v55  ;;  %v3587_v57 = vsel %vm3586_vm6, %v4242_v27, %v3583_v21 }
0x17a3   : > { %v3608_v4 = vmul.f32 %v3587_v57, %v3557_v16 }
0x17a4   : > { %v3591_v61 = vmul.f32 0.5, %v3590_v6  ;;  %v3628_v8 = vpop.permute.xlu1 %3627  ;;  %v5456_v60 = vpop.permute.xlu2 %3641 }
0x17a5   : > { %v3612_v14 = vmul.f32 %v3611_v56, %v3608_v4  ;;  %v3667_v59 = vrot.slane %v3628_v8, 4  ;;  %v3679_v3 = vrot.slane %v5456_v60, 4 }
0x17a6   : > { %v3592_v30 = vsub.f32 1.5, %v3591_v61 }
0x17a7   : > { %v4246_v11 = vpop.eup %4245  ;;  %v3616_v12 = vadd.f32 %v3615_v39, %v3612_v14  ;;  %v3668_v15 = vadd.f32 %v3667_v59, %v3628_v8  ;;  %v3680_v1 = vadd.f32 %v3679_v3, %v5456_v60  ;;  %v3635_v41 = vpop.permute.xlu0 %3634 }
0x17a8   : > { %v3593_v62 = vmul.f32 %v4244_v52, %v3592_v30  ;;  %v3599_v43 = vmul.f32 %v4246_v11, %v3577_v53  ;;  %v3673_v54 = vrot.slane %v3635_v41, 4  ;;  %vm3605_vm1 = vweird.f32 %v4246_v11 }
0x17a9   : > { %v3643_v49 = vmul.f32 %v3628_v8, %v3616_v12  ;;  %v3669_v0 = vrot.slane %v3668_v15, 2  ;;  %v3681_v2 = vrot.slane %v3680_v1, 2  ;;  %vm3606_vm12 = vmor %vm3604_vm11, %vm3605_vm1 }
0x17aa   : > { %v3600_v16 = vmul.f32 %v4246_v11, %v3599_v43  ;;  %v3597_v36 = vsel %vm3596_vm10, %v4244_v52, %v3593_v62  ;;  %v3674_v13 = vadd.f32 %v3673_v54, %v3635_v41 }
0x17ab   : > { %v3646_v5 = vsel %vm593_vm0, %v3643_v49, 0.0  ;;  %v3670_v47 = vadd.f32 %v3669_v0, %v3668_v15  ;;  %v3682_v24 = vadd.f32 %v3681_v2, %v3680_v1  ;;  %v3609_v19 = vmul.f32 %v3597_v36, %v5433_v48 }
0x17ac   : > { %v3601_v58 = vmul.f32 0.5, %v3600_v16  ;;  %v3647_v20 = vrot.slane %v3646_v5, 4  ;;  %v3675_v23 = vrot.slane %v3674_v13, 2 }
0x17ad   : > { %v3671_v44 = vrot.slane %v3670_v47, 1  ;;  %v3683_v29 = vrot.slane %v3682_v24, 1  ;;  %v3613_v31 = vmul.f32 %v3611_v56, %v3609_v19 }
0x17ae   : > { %v3602_v42 = vsub.f32 1.5, %v3601_v58  ;;  %v3676_v33 = vadd.f32 %v3675_v23, %v3674_v13  ;;  %v3648_v40 = vadd.f32 %v3647_v20, %v3646_v5 }
0x17af   : > { %v3672_v26 = vadd.f32 %v3671_v44, %v3670_v47  ;;  %v3684_v34 = vadd.f32 %v3683_v29, %v3682_v24  ;;  %v3617_v37 = vadd.f32 %v3615_v39, %v3613_v31 }
0x17b0   : > { %v3603_v38 = vmul.f32 %v4246_v11, %v3602_v42  ;;  %v3677_v18 = vrot.slane %v3676_v33, 1  ;;  %v3649_v27 = vrot.slane %v3648_v40, 2 }
0x17b1   : > { %v3685_v9 = vmax.f32 %v3672_v26, 1.0  ;;  %v5462_v63 = vmax.f32 %v3684_v34, 1.0  ;;  %v3644_v10 = vmul.f32 %v3635_v41, %v3617_v37 }
0x17b2   : > { %v3607_v48 = vsel %vm3606_vm12, %v4246_v11, %v3603_v38  ;;  %v3678_v25 = vadd.f32 %v3677_v18, %v3676_v33  ;;  %v3650_v7 = vadd.f32 %v3649_v27, %v3648_v40 }
0x17b3   : > { %4247 = vrcp.f32 %v3685_v9  ;;  %v3610_v45 = vmul.f32 %v3607_v48, %v5439_v35  ;;  %v3653_v46 = vsel %vm593_vm0, %v3644_v10, 0.0  ;;  %v3697_v32 = vand.u32 2147483647, %v3685_v9 }
0x17b4   : > { %4249 = vrcp.f32 %v5462_v63  ;;  %v5467_v28 = vmax.f32 %v3678_v25, 1.0  ;;  %v3654_v50 = vrot.slane %v3653_v46, 4  ;;  %v3699_v6 = vand.u32 2147483648, %v3685_v9 }
0x17b5   : > { %v3614_v22 = vmul.f32 %v3611_v56, %v3610_v45  ;;  %v3651_v4 = vrot.slane %v3650_v7, 1  ;;  %vm3693_vm14 = vweird.f32 %v3685_v9  ;;  %vm3723_vm15 = vweird.f32 %v5462_v63 }
0x17b6   : > { %4251 = vrcp.f32 %v5467_v28  ;;  %v3655_v53 = vadd.f32 %v3654_v50, %v3653_v46  ;;  %vm5478_vm3 = vcmp.eq.f32.partialorder %v3697_v32, 8.507059e+37  ;;  %v3700_v30 = vor.u32 1.1754944e-38, %v3699_v6 }
0x17b7   : > { %v3618_v51 = vadd.f32 %v3615_v39, %v3614_v22  ;;  %v3652_v1 = vadd.f32 %v3651_v4, %v3650_v7  ;;  %v3727_v62 = vand.u32 2147483647, %v5462_v63  ;;  %v3729_v43 = vand.u32 2147483648, %v5462_v63 }
0x17b8   : > { %v3656_v57 = vrot.slane %v3655_v53, 2  ;;  %v3712_v36 = vand.u32 2147483647, %v5467_v28  ;;  %v3714_v13 = vand.u32 2147483648, %v5467_v28  ;;  %vm3708_vm6 = vweird.f32 %v5467_v28 }
0x17b9   : > { %v4248_v52 = vpop.eup %4247  ;;  %v3645_v35 = vmul.f32 %v5456_v60, %v3618_v51  ;;  %vm3728_vm7 = vcmp.eq.f32.partialorder %v3727_v62, 8.507059e+37  ;;  %v3730_v29 = vor.u32 1.1754944e-38, %v3729_v43 }
0x17ba   : > { %v5470_v21 = vpop.eup %4249  ;;  %v3689_v55 = vmul.f32 %v4248_v52, %v3685_v9  ;;  %vm3694_vm2 = vweird.f32 %v4248_v52  ;;  %v3657_v3 = vadd.f32 %v3656_v57, %v3655_v53  ;;  %v3715_v31 = vor.u32 1.1754944e-38, %v3714_v13 }
0x17bb   : > { %v3719_v56 = vmul.f32 %v5470_v21, %v5462_v63  ;;  %v3660_v39 = vsel %vm593_vm0, %v3645_v35, 0.0  ;;  %vm3695_vm0 = vmor %vm3693_vm14, %vm3694_vm2  ;;  %vm3724_vm4 = vweird.f32 %v5470_v21  ;;  %vm3713_vm10 = vcmp.eq.f32.partialorder %v3712_v36, 8.507059e+37 }
0x17bc   : > { %v3690_v17 = vsub.f32 1.0, %v3689_v55  ;;  %v3661_v61 = vrot.slane %v3660_v39, 4  ;;  %v4252_v14 = vpop.eup %4251  ;;  %v3658_v16 = vrot.slane %v3657_v3, 1  ;;  %vm5501_vm5 = vmor %vm3723_vm15, %vm3724_vm4 }
0x17bd   : > { %v3720_v8 = vsub.f32 1.0, %v3719_v56  ;;  %v3704_v15 = vmul.f32 %v4252_v14, %v5467_v28  ;;  %vm3709_vm9 = vweird.f32 %v4252_v14 }
0x17be   : > { %v3691_v59 = vmul.f32 %v4248_v52, %v3690_v17  ;;  %v3662_v11 = vadd.f32 %v3661_v61, %v3660_v39  ;;  %vm3710_vm8 = vmor %vm3708_vm6, %vm3709_vm9  ;;  %v3659_v33 = vadd.f32 %v3658_v16, %v3657_v3 }
0x17bf   : > { %v3721_v12 = vmul.f32 %v5470_v21, %v3720_v8  ;;  %v3705_v0 = vsub.f32 1.0, %v3704_v15 }
0x17c0   : > { %v3692_v41 = vadd.f32 %v4248_v52, %v3691_v59  ;;  %v3663_v54 = vrot.slane %v3662_v11, 2 }
0x17c1   : > { %v3722_v49 = vadd.f32 %v5470_v21, %v3721_v12  ;;  %v3706_v24 = vmul.f32 %v4252_v14, %v3705_v0 }
0x17c2   : > { %v3696_v2 = vsel %vm3695_vm0, %v4248_v52, %v3692_v41  ;;  %v3664_v47 = vadd.f32 %v3663_v54, %v3662_v11 }
0x17c3   : > { %v3701_v5 = vsel %vm5478_vm3, %v3700_v30, %v3696_v2  ;;  %v3726_v23 = vsel %vm5501_vm5, %v5470_v21, %v3722_v49  ;;  %v3707_v44 = vadd.f32 %v4252_v14, %v3706_v24 }
0x17c4   : > { %v3702_v19 = vmul.f32 %v3701_v5, %v3652_v1  ;;  %v3665_v20 = vrot.slane %v3664_v47, 1  ;;  %v3731_v34 = vsel %vm3728_vm7, %v3730_v29, %v3726_v23 }
0x17c5   : > { %v3711_v26 = vsel %vm3710_vm8, %v4252_v14, %v3707_v44 }
0x17c6   : > { %3734 = vst.msk [vmem:[%s502_s18] sm:$0x1] %vm3733_vm13, %v3702_v19  ;;  %v3666_v42 = vadd.f32 %v3665_v20, %v3664_v47  ;;  %v3716_v37 = vsel %vm3713_vm10, %v3715_v31, %v3711_v26 }
0x17c7   : > { %v3717_v40 = vmul.f32 %v3716_v37, %v3659_v33 }
0x17c8   : > { %v3732_v38 = vmul.f32 %v3731_v34, %v3666_v42 }
0x17c9   : > { %3735 = vst.msk [vmem:[%s502_s18 + $0x1] sm:$0x1] %vm3733_vm13, %v3717_v40 }
0x17ca   : > { %3736 = vst.msk [vmem:[%s502_s18 + $0x2] sm:$0x1] %vm3733_vm13, %v3732_v38 }
0x17cb   : > { %4291 = shalt.err (!%p4288_p3)
}
0x17cc   : > { %s4340_s17 = smov 16   ;;  %s4341_s18 = smov 1  }
0x17cd   : > { %4029 = dma.vmem_to_hbm [thread:$0]  (%p4459_p5), %s3750_s24, 48, %s3752_s27, %s3738_s23, %s4340_s17, %s4340_s17, %s4341_s18  }
0x17ce PF: > { %s5611_s0 = sld [smem:[#allocation5_spill]]  ;;  %p4035_p4 = scmp.ge.s32.totalorder %s4326_s21, 2 }
0x17d0   : > { %p4032_p7 = pnand %p4035_p4, %p4463_p6 }
0x17d2   : > { %p4033_p8 = pneg %p4032_p7 }
0x17d4   : > { %s3766_s20 = sand.u32 1, %s5611_s0  }
0x17d5   : > { %s3767_s29 = scalar_lea.sflag [#allocation3], %s3766_s20 }
0x17d6   : > { %4309 = dma.done.wait (%p4033_p8), %s3767_s29, 48  }
0x17d7   : > { %4311 = vsyncadd (%p4033_p8), %s3767_s29, 4294967248  ;;  %s5613_s21 = sld [smem:[#allocation7_spill]]  ;;  %s5616_s18 = smov %s4318_s19 }
0x17d8   : > { %s5614_s26 = sld [smem:[#allocation6_spill]] }
0x17d9   : > { %s5615_s20 = sld [smem:[#allocation8_spill]] }
0x17dd   : > { %p25_p9 = scmp.ge.s32.totalorder %s5613_s21, 4  }
0x17de   : > { %s5617_s19 = smov %s5614_s26 }
0x17df   :  { %27 = sbr.rel (!%p25_p9) target bundleno = 6 (0x6), region = 118 }
0x17e4   :  { %3773 = vsyncpa [#allocation3], 1 }
0x17e5   :  { %3775 = vsyncpa [#allocation3 + $0x1], 1 }

</bundles_post_ra>
